<compile_context>
chip_gen: v7x
topology: tpu7x:2x2x1
jax: 0.10.0
libtpu: 0.0.40
codegen_flags: <defaults>
</compile_context>

<pallas_src>
import jax
import jax.numpy as jnp
from jax import lax
from jax.experimental import pallas as pl
from jax.experimental.pallas import tpu as pltpu


# ----------------------------------------------------------------------------
# In-kernel helpers
# ----------------------------------------------------------------------------
def _silu(y):
    # SiLU in f32; exp + approx reciprocal both issue to the EUP slot.
    return y * pl.reciprocal(1.0 + jnp.exp(-y), approx=True)


def _pad_im2col_3x3(pad_ref, x):
    """3x3 / stride-1 / pad-1 im2col for a whole image.

    x       : (H, W, C) f32 value
    pad_ref : (H+2, W+2, C) f32 VMEM scratch (used for the zero border)
    returns : (H*W, 9*C) LHS; taps in (ki, kj) row-major order, channels
              fastest -> matches w.reshape(9*C, Cout) of an HWIO weight.
    """
    H, W, C = x.shape
    pad_ref[...] = jnp.zeros((H + 2, W + 2, C), jnp.float32)
    pad_ref[1:H + 1, 1:W + 1, :] = x
    taps = [pad_ref[ki:ki + H, kj:kj + W, :]
            for ki in range(3) for kj in range(3)]
    return jnp.concatenate(taps, axis=-1).reshape(H * W, 9 * C)


# ----------------------------------------------------------------------------
# The fused kernel: stem -> block1 -> block2-expand -> (b2p+head) 1x1 ->
# global-avg-pool -> flatten -> Linear(128, 2).   One grid step per sample.
# ----------------------------------------------------------------------------
def _effnetv2_fused_kernel(
        x_ref, sel_s_ref, sel_b_ref,
        w_stem_ref, s_stem_ref, b_stem_ref,
        w_b1_ref, s_b1_ref, b_b1_ref,
        w_b2_ref, s_b2_ref, b_b2_ref,
        w_head_ref, b_head_ref,
        w_cls_ref, b_cls_ref,
        o_ref,
        pad_stem_ref, pad_blk_ref):
    bf16 = jnp.bfloat16

    # --- stem: 3x3 s2 pad1, 3 -> 16, BN + SiLU -------------------------------
    x = x_ref[0]                                              # (16, 16, 3) f32
    lhs = _pad_im2col_3x3(pad_stem_ref, x)                    # (256, 27)
    y = jnp.dot(lhs.astype(bf16), w_stem_ref[...],
                preferred_element_type=jnp.float32)           # (256, 16)
    y = _silu(y * s_stem_ref[...] + b_stem_ref[...])
    # stride-2 subsample via exact 0/1 selection matmul -> (64, 16)
    stem = jnp.dot(sel_s_ref[...], y.astype(bf16),
                   preferred_element_type=jnp.float32)

    # --- block1: fused-MBConv(expand=1): 3x3 s1, 16->16, BN+SiLU + residual --
    lhs = _pad_im2col_3x3(pad_blk_ref, stem.reshape(8, 8, 16))   # (64, 144)
    y = jnp.dot(lhs.astype(bf16), w_b1_ref[...],
                preferred_element_type=jnp.float32)              # (64, 16)
    b1 = _silu(y * s_b1_ref[...] + b_b1_ref[...]) + stem

    # --- block2 expand: 3x3 s2 pad1, 16 -> 64, BN + SiLU ---------------------
    lhs = _pad_im2col_3x3(pad_blk_ref, b1.reshape(8, 8, 16))     # (64, 144)
    y = jnp.dot(lhs.astype(bf16), w_b2_ref[...],
                preferred_element_type=jnp.float32)              # (64, 64)
    y = _silu(y * s_b2_ref[...] + b_b2_ref[...])
    b2 = jnp.dot(sel_b_ref[...], y.astype(bf16),
                 preferred_element_type=jnp.float32)             # (16, 64)

    # --- fused (b2p 1x1 + head bottleneck 1x1) + SiLU + global-avg-pool ------
    h = jnp.dot(b2.astype(bf16), w_head_ref[...],
                preferred_element_type=jnp.float32)              # (16, 128)
    h = _silu(h + b_head_ref[...])
    pooled = jnp.sum(h, axis=0, keepdims=True) * (1.0 / 16.0)    # (1, 128)

    # --- classifier: flatten (identity) + Linear(128, 2) ---------------------
    logits = jnp.dot(pooled, w_cls_ref[...],
                     preferred_element_type=jnp.float32) + b_cls_ref[...]
    o_ref[0] = logits.astype(o_ref.dtype)                        # (1, 2)


# ----------------------------------------------------------------------------
# Wrapper
# ----------------------------------------------------------------------------
def _subsample_matrix(H, W):
    """0/1 matrix selecting stride-2 positions of a stride-1 conv output
    laid out as (H*W, C) rows."""
    Ho, Wo = H // 2, W // 2
    idx = jnp.arange(Ho * Wo)
    src = (idx // Wo) * (2 * W) + (idx % Wo) * 2
    return (src[:, None] == jnp.arange(H * W)[None, :]).astype(jnp.bfloat16)


def _rep_spec(shape):
    nd = len(shape)
    return pl.BlockSpec(shape, lambda b: (0,) * nd)


def efficientnetv2_binary_forward(params, x_nchw):
    B = x_nchw.shape[0]
    x = jnp.transpose(x_nchw, (0, 2, 3, 1)).astype(jnp.float32)  # NHWC

    # Fold b2p (1x1 64->32, BN, no act) with head bottleneck (1x1 32->128, BN)
    # into one 64->128 matmul (exact: no nonlinearity between them).
    w1 = params['b2p_w'].reshape(64, 32)
    w2 = params['head_w'].reshape(32, 128)
    w_head = ((w1 * params['b2p_s'][None, :]) @ w2) * params['head_s'][None, :]
    b_head = (params['b2p_b'] @ w2) * params['head_s'] + params['head_b']

    bf16, f32 = jnp.bfloat16, jnp.float32
    args = (
        x,
        _subsample_matrix(16, 16),                              # (64, 256)
        _subsample_matrix(8, 8),                                # (16, 64)
        params['stem_w'].reshape(27, 16).astype(bf16),
        params['stem_s'].reshape(1, 16).astype(f32),
        params['stem_b'].reshape(1, 16).astype(f32),
        params['b1_w'].reshape(144, 16).astype(bf16),
        params['b1_s'].reshape(1, 16).astype(f32),
        params['b1_b'].reshape(1, 16).astype(f32),
        params['b2e_w'].reshape(144, 64).astype(bf16),
        params['b2e_s'].reshape(1, 64).astype(f32),
        params['b2e_b'].reshape(1, 64).astype(f32),
        w_head.astype(bf16),                                    # (64, 128)
        b_head.reshape(1, 128).astype(f32),
        params['cls_w'].astype(f32),                            # (128, 2)
        params['cls_b'].reshape(1, 2).astype(f32),
    )
    in_specs = [pl.BlockSpec((1, 16, 16, 3), lambda b: (b, 0, 0, 0))]
    in_specs += [_rep_spec(a.shape) for a in args[1:]]

    logits = pl.pallas_call(
        _effnetv2_fused_kernel,
        out_shape=jax.ShapeDtypeStruct((B, 1, 2), jnp.float32),
        grid=(B,),
        in_specs=in_specs,
        out_specs=pl.BlockSpec((1, 1, 2), lambda b: (b, 0, 0)),
        scratch_shapes=[pltpu.VMEM((18, 18, 3), jnp.float32),
                        pltpu.VMEM((10, 10, 16), jnp.float32)],
        compiler_params=pltpu.CompilerParams(
            dimension_semantics=("parallel",)),
    )(*args)
    return logits.reshape(B, 2)


# ----------------------------------------------------------------------------
# Synthetic EfficientNetV2Binary parameters (deterministic)
# ----------------------------------------------------------------------------
def make_params(key):
    ks = jax.random.split(key, 12)

    def conv_w(k, kh, kw, cin, cout):
        fan_in = kh * kw * cin
        return (jax.random.normal(k, (kh, kw, cin, cout), jnp.float32)
                / jnp.sqrt(float(fan_in)))

    def bn_fold(k, c):
        k1, k2, k3, k4 = jax.random.split(k, 4)
        gamma = 1.0 + 0.1 * jax.random.normal(k1, (c,), jnp.float32)
        beta = 0.1 * jax.random.normal(k2, (c,), jnp.float32)
        mean = 0.1 * jax.random.normal(k3, (c,), jnp.float32)
        var = jnp.abs(jax.random.normal(k4, (c,), jnp.float32)) + 0.5
        scale = gamma * jax.lax.rsqrt(var + 1e-3)
        bias = beta - mean * scale
        return scale, bias

    p = {}
    p['stem_w'] = conv_w(ks[0], 3, 3, 3, 16)          # stem: 3x3 s2, 3->16
    p['stem_s'], p['stem_b'] = bn_fold(ks[1], 16)
    p['b1_w'] = conv_w(ks[2], 3, 3, 16, 16)           # block1: 3x3 s1 + res
    p['b1_s'], p['b1_b'] = bn_fold(ks[3], 16)
    p['b2e_w'] = conv_w(ks[4], 3, 3, 16, 64)          # block2 expand: 3x3 s2
    p['b2e_s'], p['b2e_b'] = bn_fold(ks[5], 64)
    p['b2p_w'] = conv_w(ks[6], 1, 1, 64, 32)          # block2 project: 1x1
    p['b2p_s'], p['b2p_b'] = bn_fold(ks[7], 32)
    p['head_w'] = conv_w(ks[8], 1, 1, 32, 128)        # head bottleneck: 1x1
    p['head_s'], p['head_b'] = bn_fold(ks[9], 128)
    p['cls_w'] = jax.random.normal(ks[10], (128, 2), jnp.float32) / jnp.sqrt(128.0)
    p['cls_b'] = 0.01 * jax.random.normal(ks[11], (2,), jnp.float32)
    return p


# ----------------------------------------------------------------------------
# Pure-JAX reference (independent formulation, f32) for a tolerance check
# ----------------------------------------------------------------------------
def _reference_forward(params, x_nchw):
    x = jnp.transpose(x_nchw, (0, 2, 3, 1)).astype(jnp.float32)

    def conv(v, w, stride):
        return lax.conv_general_dilated(
            v, w, window_strides=(stride, stride), padding=((1, 1), (1, 1)),
            dimension_numbers=('NHWC', 'HWIO', 'NHWC'))

    silu = lambda v: v * jax.nn.sigmoid(v)
    y = silu(conv(x, params['stem_w'], 2) * params['stem_s'] + params['stem_b'])
    y = silu(conv(y, params['b1_w'], 1) * params['b1_s'] + params['b1_b']) + y
    y = silu(conv(y, params['b2e_w'], 2) * params['b2e_s'] + params['b2e_b'])
    y = (jnp.einsum('bhwc,cd->bhwd', y, params['b2p_w'].reshape(64, 32))
         * params['b2p_s'] + params['b2p_b'])
    y = silu(jnp.einsum('bhwc,cd->bhwd', y, params['head_w'].reshape(32, 128))
             * params['head_s'] + params['head_b'])
    pooled = jnp.mean(y, axis=(1, 2))                 # (B, 128)
    return pooled @ params['cls_w'] + params['cls_b']


if __name__ == "__main__":
    key = jax.random.PRNGKey(0)
    kp, kx = jax.random.split(key)
    params = make_params(kp)
    # Small NCHW input consistent with the module's image-classifier forward.
    x = jax.random.normal(kx, (2, 3, 16, 16), jnp.float32)

    fwd = jax.jit(efficientnetv2_binary_forward)
    logits = fwd(params, x)
    jax.block_until_ready(logits)

    assert logits.shape == (2, 2), logits.shape
    assert bool(jnp.all(jnp.isfinite(logits)))
    ref = _reference_forward(params, x)
    assert bool(jnp.allclose(logits, ref, atol=1e-1, rtol=1e-1)), (logits, ref)
    print("KERNEL_OK")
</pallas_src>

<mosaic_0001>
module attributes {stable_mosaic.version = 11 : i64} {
  func.func @_effnetv2_fused_kernel(%arg0: i32, %arg1: memref<1x16x16x3xf32, #tpu.memory_space<vmem>>, %arg2: memref<64x256xbf16, #tpu.memory_space<vmem>>, %arg3: memref<16x64xbf16, #tpu.memory_space<vmem>>, %arg4: memref<27x16xbf16, #tpu.memory_space<vmem>>, %arg5: memref<1x16xf32, #tpu.memory_space<vmem>>, %arg6: memref<1x16xf32, #tpu.memory_space<vmem>>, %arg7: memref<144x16xbf16, #tpu.memory_space<vmem>>, %arg8: memref<1x16xf32, #tpu.memory_space<vmem>>, %arg9: memref<1x16xf32, #tpu.memory_space<vmem>>, %arg10: memref<144x64xbf16, #tpu.memory_space<vmem>>, %arg11: memref<1x64xf32, #tpu.memory_space<vmem>>, %arg12: memref<1x64xf32, #tpu.memory_space<vmem>>, %arg13: memref<64x128xbf16, #tpu.memory_space<vmem>>, %arg14: memref<1x128xf32, #tpu.memory_space<vmem>>, %arg15: memref<128x2xf32, #tpu.memory_space<vmem>>, %arg16: memref<1x2xf32, #tpu.memory_space<vmem>>, %arg17: memref<1x1x2xf32, #tpu.memory_space<vmem>>, %arg18: memref<18x18x3xf32, #tpu.memory_space<vmem>>, %arg19: memref<10x10x16xf32, #tpu.memory_space<vmem>>) attributes {dimension_semantics = [#tpu.dimension_semantics<parallel>], iteration_bounds = array<i64: 2>, scalar_prefetch = 0 : i64, scratch_operands = 2 : i64, tpu.core_type = #tpu.core_type<tc>, window_params = [{transform_indices = @transform_0, window_bounds = array<i64: 1, 16, 16, 3>}, {pipeline_mode = #tpu.pipeline_mode<synchronous>, transform_indices = @transform_1, window_bounds = array<i64: 64, 256>}, {pipeline_mode = #tpu.pipeline_mode<synchronous>, transform_indices = @transform_2, window_bounds = array<i64: 16, 64>}, {pipeline_mode = #tpu.pipeline_mode<synchronous>, transform_indices = @transform_3, window_bounds = array<i64: 27, 16>}, {pipeline_mode = #tpu.pipeline_mode<synchronous>, transform_indices = @transform_4, window_bounds = array<i64: 1, 16>}, {pipeline_mode = #tpu.pipeline_mode<synchronous>, transform_indices = @transform_5, window_bounds = array<i64: 1, 16>}, {pipeline_mode = #tpu.pipeline_mode<synchronous>, transform_indices = @transform_6, window_bounds = array<i64: 144, 16>}, {pipeline_mode = #tpu.pipeline_mode<synchronous>, transform_indices = @transform_7, window_bounds = array<i64: 1, 16>}, {pipeline_mode = #tpu.pipeline_mode<synchronous>, transform_indices = @transform_8, window_bounds = array<i64: 1, 16>}, {pipeline_mode = #tpu.pipeline_mode<synchronous>, transform_indices = @transform_9, window_bounds = array<i64: 144, 64>}, {pipeline_mode = #tpu.pipeline_mode<synchronous>, transform_indices = @transform_10, window_bounds = array<i64: 1, 64>}, {pipeline_mode = #tpu.pipeline_mode<synchronous>, transform_indices = @transform_11, window_bounds = array<i64: 1, 64>}, {pipeline_mode = #tpu.pipeline_mode<synchronous>, transform_indices = @transform_12, window_bounds = array<i64: 64, 128>}, {pipeline_mode = #tpu.pipeline_mode<synchronous>, transform_indices = @transform_13, window_bounds = array<i64: 1, 128>}, {pipeline_mode = #tpu.pipeline_mode<synchronous>, transform_indices = @transform_14, window_bounds = array<i64: 128, 2>}, {pipeline_mode = #tpu.pipeline_mode<synchronous>, transform_indices = @transform_15, window_bounds = array<i64: 1, 2>}, {transform_indices = @transform_16, window_bounds = array<i64: 1, 1, 2>}]} {
    %c0 = arith.constant 0 : index
    %c0_0 = arith.constant 0 : index
    %c0_1 = arith.constant 0 : index
    %c0_2 = arith.constant 0 : index
    %0 = vector.load %arg1[%c0, %c0_0, %c0_1, %c0_2] : memref<1x16x16x3xf32, #tpu.memory_space<vmem>>, vector<1x16x16x3xf32>
    %1 = vector.shape_cast %0 : vector<1x16x16x3xf32> to vector<16x16x3xf32>
    %cst = arith.constant 0.000000e+00 : f32
    %2 = vector.broadcast %cst : f32 to vector<18x18x3xf32>
    %c0_3 = arith.constant 0 : index
    %c0_4 = arith.constant 0 : index
    %c0_5 = arith.constant 0 : index
    %3 = vector.load %arg18[%c0_3, %c0_4, %c0_5] : memref<18x18x3xf32, #tpu.memory_space<vmem>>, vector<18x18x3xf32>
    tpu.vector_store %arg18[%c0_3, %c0_4, %c0_5], %2 {strides = array<i32>} : memref<18x18x3xf32, #tpu.memory_space<vmem>>, vector<18x18x3xf32>,
    %c1 = arith.constant 1 : index
    %c1_6 = arith.constant 1 : index
    %c0_7 = arith.constant 0 : index
    %4 = vector.load %arg18[%c1, %c1_6, %c0_7] : memref<18x18x3xf32, #tpu.memory_space<vmem>>, vector<16x16x3xf32>
    tpu.vector_store %arg18[%c1, %c1_6, %c0_7], %1 {strides = array<i32>} : memref<18x18x3xf32, #tpu.memory_space<vmem>>, vector<16x16x3xf32>,
    %c0_8 = arith.constant 0 : index
    %c0_9 = arith.constant 0 : index
    %c0_10 = arith.constant 0 : index
    %5 = vector.load %arg18[%c0_8, %c0_9, %c0_10] : memref<18x18x3xf32, #tpu.memory_space<vmem>>, vector<16x16x3xf32>
    %c0_11 = arith.constant 0 : index
    %c1_12 = arith.constant 1 : index
    %c0_13 = arith.constant 0 : index
    %6 = vector.load %arg18[%c0_11, %c1_12, %c0_13] : memref<18x18x3xf32, #tpu.memory_space<vmem>>, vector<16x16x3xf32>
    %c0_14 = arith.constant 0 : index
    %c2 = arith.constant 2 : index
    %c0_15 = arith.constant 0 : index
    %7 = vector.load %arg18[%c0_14, %c2, %c0_15] : memref<18x18x3xf32, #tpu.memory_space<vmem>>, vector<16x16x3xf32>
    %c1_16 = arith.constant 1 : index
    %c0_17 = arith.constant 0 : index
    %c0_18 = arith.constant 0 : index
    %8 = vector.load %arg18[%c1_16, %c0_17, %c0_18] : memref<18x18x3xf32, #tpu.memory_space<vmem>>, vector<16x16x3xf32>
    %c1_19 = arith.constant 1 : index
    %c1_20 = arith.constant 1 : index
    %c0_21 = arith.constant 0 : index
    %9 = vector.load %arg18[%c1_19, %c1_20, %c0_21] : memref<18x18x3xf32, #tpu.memory_space<vmem>>, vector<16x16x3xf32>
    %c1_22 = arith.constant 1 : index
    %c2_23 = arith.constant 2 : index
    %c0_24 = arith.constant 0 : index
    %10 = vector.load %arg18[%c1_22, %c2_23, %c0_24] : memref<18x18x3xf32, #tpu.memory_space<vmem>>, vector<16x16x3xf32>
    %c2_25 = arith.constant 2 : index
    %c0_26 = arith.constant 0 : index
    %c0_27 = arith.constant 0 : index
    %11 = vector.load %arg18[%c2_25, %c0_26, %c0_27] : memref<18x18x3xf32, #tpu.memory_space<vmem>>, vector<16x16x3xf32>
    %c2_28 = arith.constant 2 : index
    %c1_29 = arith.constant 1 : index
    %c0_30 = arith.constant 0 : index
    %12 = vector.load %arg18[%c2_28, %c1_29, %c0_30] : memref<18x18x3xf32, #tpu.memory_space<vmem>>, vector<16x16x3xf32>
    %c2_31 = arith.constant 2 : index
    %c2_32 = arith.constant 2 : index
    %c0_33 = arith.constant 0 : index
    %13 = vector.load %arg18[%c2_31, %c2_32, %c0_33] : memref<18x18x3xf32, #tpu.memory_space<vmem>>, vector<16x16x3xf32>
    %14 = tpu.concatenate %5, %6, %7, %8, %9, %10, %11, %12, %13 in 2 : vector<16x16x3xf32>, vector<16x16x3xf32>, vector<16x16x3xf32>, vector<16x16x3xf32>, vector<16x16x3xf32>, vector<16x16x3xf32>, vector<16x16x3xf32>, vector<16x16x3xf32>, vector<16x16x3xf32> -> vector<16x16x27xf32>
    %15 = vector.shape_cast %14 : vector<16x16x27xf32> to vector<256x27xf32>
    %16 = arith.truncf %15 : vector<256x27xf32> to vector<256x27xbf16>
    %c0_34 = arith.constant 0 : index
    %c0_35 = arith.constant 0 : index
    %17 = vector.load %arg4[%c0_34, %c0_35] : memref<27x16xbf16, #tpu.memory_space<vmem>>, vector<27x16xbf16>
    %cst_36 = arith.constant dense<0.000000e+00> : vector<256x16xf32>
    %18 = tpu.matmul %16, %17, %cst_36 {dimension_numbers = #tpu.dot_dimension_numbers<[1], [0], [0], [1], [0, 0, 1, 1], [], []>} : vector<256x27xbf16>, vector<27x16xbf16>, vector<256x16xf32> -> vector<256x16xf32>
    %c0_37 = arith.constant 0 : index
    %c0_38 = arith.constant 0 : index
    %19 = vector.load %arg5[%c0_37, %c0_38] : memref<1x16xf32, #tpu.memory_space<vmem>>, vector<1x16xf32>
    %20 = vector.broadcast %19 : vector<1x16xf32> to vector<256x16xf32>
    %21 = arith.mulf %18, %20 : vector<256x16xf32>
    %c0_39 = arith.constant 0 : index
    %c0_40 = arith.constant 0 : index
    %22 = vector.load %arg6[%c0_39, %c0_40] : memref<1x16xf32, #tpu.memory_space<vmem>>, vector<1x16xf32>
    %23 = vector.broadcast %22 : vector<1x16xf32> to vector<256x16xf32>
    %24 = arith.addf %21, %23 : vector<256x16xf32>
    %cst_41 = arith.constant 0.000000e+00 : f32
    %25 = vector.broadcast %cst_41 : f32 to vector<256x16xf32>
    %26 = arith.subf %25, %24 : vector<256x16xf32>
    %27 = math.exp %26 : vector<256x16xf32>
    %cst_42 = arith.constant 1.000000e+00 : f32
    %28 = vector.broadcast %cst_42 : f32 to vector<256x16xf32>
    %29 = arith.addf %28, %27 : vector<256x16xf32>
    %30 = tpu.reciprocal %29 {approx = true} : vector<256x16xf32> -> vector<256x16xf32>
    %31 = arith.mulf %24, %30 : vector<256x16xf32>
    %c0_43 = arith.constant 0 : index
    %c0_44 = arith.constant 0 : index
    %32 = vector.load %arg2[%c0_43, %c0_44] : memref<64x256xbf16, #tpu.memory_space<vmem>>, vector<64x256xbf16>
    %33 = arith.truncf %31 : vector<256x16xf32> to vector<256x16xbf16>
    %cst_45 = arith.constant dense<0.000000e+00> : vector<64x16xf32>
    %34 = tpu.matmul %32, %33, %cst_45 {dimension_numbers = #tpu.dot_dimension_numbers<[1], [0], [0], [1], [0, 0, 1, 1], [], []>} : vector<64x256xbf16>, vector<256x16xbf16>, vector<64x16xf32> -> vector<64x16xf32>
    %35 = vector.shape_cast %34 : vector<64x16xf32> to vector<8x8x16xf32>
    %cst_46 = arith.constant 0.000000e+00 : f32
    %36 = vector.broadcast %cst_46 : f32 to vector<10x10x16xf32>
    %c0_47 = arith.constant 0 : index
    %c0_48 = arith.constant 0 : index
    %c0_49 = arith.constant 0 : index
    %37 = vector.load %arg19[%c0_47, %c0_48, %c0_49] : memref<10x10x16xf32, #tpu.memory_space<vmem>>, vector<10x10x16xf32>
    tpu.vector_store %arg19[%c0_47, %c0_48, %c0_49], %36 {strides = array<i32>} : memref<10x10x16xf32, #tpu.memory_space<vmem>>, vector<10x10x16xf32>,
    %c1_50 = arith.constant 1 : index
    %c1_51 = arith.constant 1 : index
    %c0_52 = arith.constant 0 : index
    %38 = vector.load %arg19[%c1_50, %c1_51, %c0_52] : memref<10x10x16xf32, #tpu.memory_space<vmem>>, vector<8x8x16xf32>
    tpu.vector_store %arg19[%c1_50, %c1_51, %c0_52], %35 {strides = array<i32>} : memref<10x10x16xf32, #tpu.memory_space<vmem>>, vector<8x8x16xf32>,
    %c0_53 = arith.constant 0 : index
    %c0_54 = arith.constant 0 : index
    %c0_55 = arith.constant 0 : index
    %39 = vector.load %arg19[%c0_53, %c0_54, %c0_55] : memref<10x10x16xf32, #tpu.memory_space<vmem>>, vector<8x8x16xf32>
    %c0_56 = arith.constant 0 : index
    %c1_57 = arith.constant 1 : index
    %c0_58 = arith.constant 0 : index
    %40 = vector.load %arg19[%c0_56, %c1_57, %c0_58] : memref<10x10x16xf32, #tpu.memory_space<vmem>>, vector<8x8x16xf32>
    %c0_59 = arith.constant 0 : index
    %c2_60 = arith.constant 2 : index
    %c0_61 = arith.constant 0 : index
    %41 = vector.load %arg19[%c0_59, %c2_60, %c0_61] : memref<10x10x16xf32, #tpu.memory_space<vmem>>, vector<8x8x16xf32>
    %c1_62 = arith.constant 1 : index
    %c0_63 = arith.constant 0 : index
    %c0_64 = arith.constant 0 : index
    %42 = vector.load %arg19[%c1_62, %c0_63, %c0_64] : memref<10x10x16xf32, #tpu.memory_space<vmem>>, vector<8x8x16xf32>
    %c1_65 = arith.constant 1 : index
    %c1_66 = arith.constant 1 : index
    %c0_67 = arith.constant 0 : index
    %43 = vector.load %arg19[%c1_65, %c1_66, %c0_67] : memref<10x10x16xf32, #tpu.memory_space<vmem>>, vector<8x8x16xf32>
    %c1_68 = arith.constant 1 : index
    %c2_69 = arith.constant 2 : index
    %c0_70 = arith.constant 0 : index
    %44 = vector.load %arg19[%c1_68, %c2_69, %c0_70] : memref<10x10x16xf32, #tpu.memory_space<vmem>>, vector<8x8x16xf32>
    %c2_71 = arith.constant 2 : index
    %c0_72 = arith.constant 0 : index
    %c0_73 = arith.constant 0 : index
    %45 = vector.load %arg19[%c2_71, %c0_72, %c0_73] : memref<10x10x16xf32, #tpu.memory_space<vmem>>, vector<8x8x16xf32>
    %c2_74 = arith.constant 2 : index
    %c1_75 = arith.constant 1 : index
    %c0_76 = arith.constant 0 : index
    %46 = vector.load %arg19[%c2_74, %c1_75, %c0_76] : memref<10x10x16xf32, #tpu.memory_space<vmem>>, vector<8x8x16xf32>
    %c2_77 = arith.constant 2 : index
    %c2_78 = arith.constant 2 : index
    %c0_79 = arith.constant 0 : index
    %47 = vector.load %arg19[%c2_77, %c2_78, %c0_79] : memref<10x10x16xf32, #tpu.memory_space<vmem>>, vector<8x8x16xf32>
    %48 = tpu.concatenate %39, %40, %41, %42, %43, %44, %45, %46, %47 in 2 : vector<8x8x16xf32>, vector<8x8x16xf32>, vector<8x8x16xf32>, vector<8x8x16xf32>, vector<8x8x16xf32>, vector<8x8x16xf32>, vector<8x8x16xf32>, vector<8x8x16xf32>, vector<8x8x16xf32> -> vector<8x8x144xf32>
    %49 = vector.shape_cast %48 : vector<8x8x144xf32> to vector<64x144xf32>
    %50 = arith.truncf %49 : vector<64x144xf32> to vector<64x144xbf16>
    %c0_80 = arith.constant 0 : index
    %c0_81 = arith.constant 0 : index
    %51 = vector.load %arg7[%c0_80, %c0_81] : memref<144x16xbf16, #tpu.memory_space<vmem>>, vector<144x16xbf16>
    %cst_82 = arith.constant dense<0.000000e+00> : vector<64x16xf32>
    %52 = tpu.matmul %50, %51, %cst_82 {dimension_numbers = #tpu.dot_dimension_numbers<[1], [0], [0], [1], [0, 0, 1, 1], [], []>} : vector<64x144xbf16>, vector<144x16xbf16>, vector<64x16xf32> -> vector<64x16xf32>
    %c0_83 = arith.constant 0 : index
    %c0_84 = arith.constant 0 : index
    %53 = vector.load %arg8[%c0_83, %c0_84] : memref<1x16xf32, #tpu.memory_space<vmem>>, vector<1x16xf32>
    %54 = vector.broadcast %53 : vector<1x16xf32> to vector<64x16xf32>
    %55 = arith.mulf %52, %54 : vector<64x16xf32>
    %c0_85 = arith.constant 0 : index
    %c0_86 = arith.constant 0 : index
    %56 = vector.load %arg9[%c0_85, %c0_86] : memref<1x16xf32, #tpu.memory_space<vmem>>, vector<1x16xf32>
    %57 = vector.broadcast %56 : vector<1x16xf32> to vector<64x16xf32>
    %58 = arith.addf %55, %57 : vector<64x16xf32>
    %cst_87 = arith.constant 0.000000e+00 : f32
    %59 = vector.broadcast %cst_87 : f32 to vector<64x16xf32>
    %60 = arith.subf %59, %58 : vector<64x16xf32>
    %61 = math.exp %60 : vector<64x16xf32>
    %cst_88 = arith.constant 1.000000e+00 : f32
    %62 = vector.broadcast %cst_88 : f32 to vector<64x16xf32>
    %63 = arith.addf %62, %61 : vector<64x16xf32>
    %64 = tpu.reciprocal %63 {approx = true} : vector<64x16xf32> -> vector<64x16xf32>
    %65 = arith.mulf %58, %64 : vector<64x16xf32>
    %66 = arith.addf %65, %34 : vector<64x16xf32>
    %67 = vector.shape_cast %66 : vector<64x16xf32> to vector<8x8x16xf32>
    %cst_89 = arith.constant 0.000000e+00 : f32
    %68 = vector.broadcast %cst_89 : f32 to vector<10x10x16xf32>
    %c0_90 = arith.constant 0 : index
    %c0_91 = arith.constant 0 : index
    %c0_92 = arith.constant 0 : index
    %69 = vector.load %arg19[%c0_90, %c0_91, %c0_92] : memref<10x10x16xf32, #tpu.memory_space<vmem>>, vector<10x10x16xf32>
    tpu.vector_store %arg19[%c0_90, %c0_91, %c0_92], %68 {strides = array<i32>} : memref<10x10x16xf32, #tpu.memory_space<vmem>>, vector<10x10x16xf32>,
    %c1_93 = arith.constant 1 : index
    %c1_94 = arith.constant 1 : index
    %c0_95 = arith.constant 0 : index
    %70 = vector.load %arg19[%c1_93, %c1_94, %c0_95] : memref<10x10x16xf32, #tpu.memory_space<vmem>>, vector<8x8x16xf32>
    tpu.vector_store %arg19[%c1_93, %c1_94, %c0_95], %67 {strides = array<i32>} : memref<10x10x16xf32, #tpu.memory_space<vmem>>, vector<8x8x16xf32>,
    %c0_96 = arith.constant 0 : index
    %c0_97 = arith.constant 0 : index
    %c0_98 = arith.constant 0 : index
    %71 = vector.load %arg19[%c0_96, %c0_97, %c0_98] : memref<10x10x16xf32, #tpu.memory_space<vmem>>, vector<8x8x16xf32>
    %c0_99 = arith.constant 0 : index
    %c1_100 = arith.constant 1 : index
    %c0_101 = arith.constant 0 : index
    %72 = vector.load %arg19[%c0_99, %c1_100, %c0_101] : memref<10x10x16xf32, #tpu.memory_space<vmem>>, vector<8x8x16xf32>
    %c0_102 = arith.constant 0 : index
    %c2_103 = arith.constant 2 : index
    %c0_104 = arith.constant 0 : index
    %73 = vector.load %arg19[%c0_102, %c2_103, %c0_104] : memref<10x10x16xf32, #tpu.memory_space<vmem>>, vector<8x8x16xf32>
    %c1_105 = arith.constant 1 : index
    %c0_106 = arith.constant 0 : index
    %c0_107 = arith.constant 0 : index
    %74 = vector.load %arg19[%c1_105, %c0_106, %c0_107] : memref<10x10x16xf32, #tpu.memory_space<vmem>>, vector<8x8x16xf32>
    %c1_108 = arith.constant 1 : index
    %c1_109 = arith.constant 1 : index
    %c0_110 = arith.constant 0 : index
    %75 = vector.load %arg19[%c1_108, %c1_109, %c0_110] : memref<10x10x16xf32, #tpu.memory_space<vmem>>, vector<8x8x16xf32>
    %c1_111 = arith.constant 1 : index
    %c2_112 = arith.constant 2 : index
    %c0_113 = arith.constant 0 : index
    %76 = vector.load %arg19[%c1_111, %c2_112, %c0_113] : memref<10x10x16xf32, #tpu.memory_space<vmem>>, vector<8x8x16xf32>
    %c2_114 = arith.constant 2 : index
    %c0_115 = arith.constant 0 : index
    %c0_116 = arith.constant 0 : index
    %77 = vector.load %arg19[%c2_114, %c0_115, %c0_116] : memref<10x10x16xf32, #tpu.memory_space<vmem>>, vector<8x8x16xf32>
    %c2_117 = arith.constant 2 : index
    %c1_118 = arith.constant 1 : index
    %c0_119 = arith.constant 0 : index
    %78 = vector.load %arg19[%c2_117, %c1_118, %c0_119] : memref<10x10x16xf32, #tpu.memory_space<vmem>>, vector<8x8x16xf32>
    %c2_120 = arith.constant 2 : index
    %c2_121 = arith.constant 2 : index
    %c0_122 = arith.constant 0 : index
    %79 = vector.load %arg19[%c2_120, %c2_121, %c0_122] : memref<10x10x16xf32, #tpu.memory_space<vmem>>, vector<8x8x16xf32>
    %80 = tpu.concatenate %71, %72, %73, %74, %75, %76, %77, %78, %79 in 2 : vector<8x8x16xf32>, vector<8x8x16xf32>, vector<8x8x16xf32>, vector<8x8x16xf32>, vector<8x8x16xf32>, vector<8x8x16xf32>, vector<8x8x16xf32>, vector<8x8x16xf32>, vector<8x8x16xf32> -> vector<8x8x144xf32>
    %81 = vector.shape_cast %80 : vector<8x8x144xf32> to vector<64x144xf32>
    %82 = arith.truncf %81 : vector<64x144xf32> to vector<64x144xbf16>
    %c0_123 = arith.constant 0 : index
    %c0_124 = arith.constant 0 : index
    %83 = vector.load %arg10[%c0_123, %c0_124] : memref<144x64xbf16, #tpu.memory_space<vmem>>, vector<144x64xbf16>
    %cst_125 = arith.constant dense<0.000000e+00> : vector<64x64xf32>
    %84 = tpu.matmul %82, %83, %cst_125 {dimension_numbers = #tpu.dot_dimension_numbers<[1], [0], [0], [1], [0, 0, 1, 1], [], []>} : vector<64x144xbf16>, vector<144x64xbf16>, vector<64x64xf32> -> vector<64x64xf32>
    %c0_126 = arith.constant 0 : index
    %c0_127 = arith.constant 0 : index
    %85 = vector.load %arg11[%c0_126, %c0_127] : memref<1x64xf32, #tpu.memory_space<vmem>>, vector<1x64xf32>
    %86 = vector.broadcast %85 : vector<1x64xf32> to vector<64x64xf32>
    %87 = arith.mulf %84, %86 : vector<64x64xf32>
    %c0_128 = arith.constant 0 : index
    %c0_129 = arith.constant 0 : index
    %88 = vector.load %arg12[%c0_128, %c0_129] : memref<1x64xf32, #tpu.memory_space<vmem>>, vector<1x64xf32>
    %89 = vector.broadcast %88 : vector<1x64xf32> to vector<64x64xf32>
    %90 = arith.addf %87, %89 : vector<64x64xf32>
    %cst_130 = arith.constant 0.000000e+00 : f32
    %91 = vector.broadcast %cst_130 : f32 to vector<64x64xf32>
    %92 = arith.subf %91, %90 : vector<64x64xf32>
    %93 = math.exp %92 : vector<64x64xf32>
    %cst_131 = arith.constant 1.000000e+00 : f32
    %94 = vector.broadcast %cst_131 : f32 to vector<64x64xf32>
    %95 = arith.addf %94, %93 : vector<64x64xf32>
    %96 = tpu.reciprocal %95 {approx = true} : vector<64x64xf32> -> vector<64x64xf32>
    %97 = arith.mulf %90, %96 : vector<64x64xf32>
    %c0_132 = arith.constant 0 : index
    %c0_133 = arith.constant 0 : index
    %98 = vector.load %arg3[%c0_132, %c0_133] : memref<16x64xbf16, #tpu.memory_space<vmem>>, vector<16x64xbf16>
    %99 = arith.truncf %97 : vector<64x64xf32> to vector<64x64xbf16>
    %cst_134 = arith.constant dense<0.000000e+00> : vector<16x64xf32>
    %100 = tpu.matmul %98, %99, %cst_134 {dimension_numbers = #tpu.dot_dimension_numbers<[1], [0], [0], [1], [0, 0, 1, 1], [], []>} : vector<16x64xbf16>, vector<64x64xbf16>, vector<16x64xf32> -> vector<16x64xf32>
    %101 = arith.truncf %100 : vector<16x64xf32> to vector<16x64xbf16>
    %c0_135 = arith.constant 0 : index
    %c0_136 = arith.constant 0 : index
    %102 = vector.load %arg13[%c0_135, %c0_136] : memref<64x128xbf16, #tpu.memory_space<vmem>>, vector<64x128xbf16>
    %cst_137 = arith.constant dense<0.000000e+00> : vector<16x128xf32>
    %103 = tpu.matmul %101, %102, %cst_137 {dimension_numbers = #tpu.dot_dimension_numbers<[1], [0], [0], [1], [0, 0, 1, 1], [], []>} : vector<16x64xbf16>, vector<64x128xbf16>, vector<16x128xf32> -> vector<16x128xf32>
    %c0_138 = arith.constant 0 : index
    %c0_139 = arith.constant 0 : index
    %104 = vector.load %arg14[%c0_138, %c0_139] : memref<1x128xf32, #tpu.memory_space<vmem>>, vector<1x128xf32>
    %105 = vector.broadcast %104 : vector<1x128xf32> to vector<16x128xf32>
    %106 = arith.addf %103, %105 : vector<16x128xf32>
    %cst_140 = arith.constant 0.000000e+00 : f32
    %107 = vector.broadcast %cst_140 : f32 to vector<16x128xf32>
    %108 = arith.subf %107, %106 : vector<16x128xf32>
    %109 = math.exp %108 : vector<16x128xf32>
    %cst_141 = arith.constant 1.000000e+00 : f32
    %110 = vector.broadcast %cst_141 : f32 to vector<16x128xf32>
    %111 = arith.addf %110, %109 : vector<16x128xf32>
    %112 = tpu.reciprocal %111 {approx = true} : vector<16x128xf32> -> vector<16x128xf32>
    %113 = arith.mulf %106, %112 : vector<16x128xf32>
    %cst_142 = arith.constant dense<0.000000e+00> : vector<128xf32>
    %114 = vector.multi_reduction <add>, %113, %cst_142 [0] : vector<16x128xf32> to vector<128xf32>
    %115 = vector.shape_cast %114 : vector<128xf32> to vector<1x128xf32>
    %cst_143 = arith.constant 6.250000e-02 : f32
    %116 = vector.broadcast %cst_143 : f32 to vector<1x128xf32>
    %117 = arith.mulf %115, %116 : vector<1x128xf32>
    %c0_144 = arith.constant 0 : index
    %c0_145 = arith.constant 0 : index
    %118 = vector.load %arg15[%c0_144, %c0_145] : memref<128x2xf32, #tpu.memory_space<vmem>>, vector<128x2xf32>
    %cst_146 = arith.constant dense<0.000000e+00> : vector<1x2xf32>
    %119 = tpu.matmul %117, %118, %cst_146 {dimension_numbers = #tpu.dot_dimension_numbers<[1], [0], [0], [1], [0, 0, 1, 1], [], []>} : vector<1x128xf32>, vector<128x2xf32>, vector<1x2xf32> -> vector<1x2xf32>
    %c0_147 = arith.constant 0 : index
    %c0_148 = arith.constant 0 : index
    %120 = vector.load %arg16[%c0_147, %c0_148] : memref<1x2xf32, #tpu.memory_space<vmem>>, vector<1x2xf32>
    %121 = arith.addf %119, %120 : vector<1x2xf32>
    %c0_149 = arith.constant 0 : index
    %c0_150 = arith.constant 0 : index
    %c0_151 = arith.constant 0 : index
    %122 = vector.load %arg17[%c0_149, %c0_150, %c0_151] : memref<1x1x2xf32, #tpu.memory_space<vmem>>, vector<1x1x2xf32>
    %123 = vector.shape_cast %122 : vector<1x1x2xf32> to vector<1x2xf32>
    %124 = vector.shape_cast %121 : vector<1x2xf32> to vector<1x1x2xf32>
    tpu.vector_store %arg17[%c0_149, %c0_150, %c0_151], %124 {strides = array<i32>} : memref<1x1x2xf32, #tpu.memory_space<vmem>>, vector<1x1x2xf32>,
    return
  }
  func.func @transform_0(%arg0: i32) -> (i32, i32, i32, i32) {
    %c0_i32 = arith.constant 0 : i32
    %c0_i32_0 = arith.constant 0 : i32
    %c0_i32_1 = arith.constant 0 : i32
    %c0_i32_2 = arith.constant 0 : i32
    return %arg0, %c0_i32, %c0_i32_0, %c0_i32_1 : i32, i32, i32, i32
  }
  func.func @transform_1(%arg0: i32) -> (i32, i32) {
    %c0_i32 = arith.constant 0 : i32
    %c0_i32_0 = arith.constant 0 : i32
    %c0_i32_1 = arith.constant 0 : i32
    return %c0_i32, %c0_i32_0 : i32, i32
  }
  func.func @transform_2(%arg0: i32) -> (i32, i32) {
    %c0_i32 = arith.constant 0 : i32
    %c0_i32_0 = arith.constant 0 : i32
    %c0_i32_1 = arith.constant 0 : i32
    return %c0_i32, %c0_i32_0 : i32, i32
  }
  func.func @transform_3(%arg0: i32) -> (i32, i32) {
    %c0_i32 = arith.constant 0 : i32
    %c0_i32_0 = arith.constant 0 : i32
    %c0_i32_1 = arith.constant 0 : i32
    return %c0_i32, %c0_i32_0 : i32, i32
  }
  func.func @transform_4(%arg0: i32) -> (i32, i32) {
    %c0_i32 = arith.constant 0 : i32
    %c0_i32_0 = arith.constant 0 : i32
    %c0_i32_1 = arith.constant 0 : i32
    return %c0_i32, %c0_i32_0 : i32, i32
  }
  func.func @transform_5(%arg0: i32) -> (i32, i32) {
    %c0_i32 = arith.constant 0 : i32
    %c0_i32_0 = arith.constant 0 : i32
    %c0_i32_1 = arith.constant 0 : i32
    return %c0_i32, %c0_i32_0 : i32, i32
  }
  func.func @transform_6(%arg0: i32) -> (i32, i32) {
    %c0_i32 = arith.constant 0 : i32
    %c0_i32_0 = arith.constant 0 : i32
    %c0_i32_1 = arith.constant 0 : i32
    return %c0_i32, %c0_i32_0 : i32, i32
  }
  func.func @transform_7(%arg0: i32) -> (i32, i32) {
    %c0_i32 = arith.constant 0 : i32
    %c0_i32_0 = arith.constant 0 : i32
    %c0_i32_1 = arith.constant 0 : i32
    return %c0_i32, %c0_i32_0 : i32, i32
  }
  func.func @transform_8(%arg0: i32) -> (i32, i32) {
    %c0_i32 = arith.constant 0 : i32
    %c0_i32_0 = arith.constant 0 : i32
    %c0_i32_1 = arith.constant 0 : i32
    return %c0_i32, %c0_i32_0 : i32, i32
  }
  func.func @transform_9(%arg0: i32) -> (i32, i32) {
    %c0_i32 = arith.constant 0 : i32
    %c0_i32_0 = arith.constant 0 : i32
    %c0_i32_1 = arith.constant 0 : i32
    return %c0_i32, %c0_i32_0 : i32, i32
  }
  func.func @transform_10(%arg0: i32) -> (i32, i32) {
    %c0_i32 = arith.constant 0 : i32
    %c0_i32_0 = arith.constant 0 : i32
    %c0_i32_1 = arith.constant 0 : i32
    return %c0_i32, %c0_i32_0 : i32, i32
  }
  func.func @transform_11(%arg0: i32) -> (i32, i32) {
    %c0_i32 = arith.constant 0 : i32
    %c0_i32_0 = arith.constant 0 : i32
    %c0_i32_1 = arith.constant 0 : i32
    return %c0_i32, %c0_i32_0 : i32, i32
  }
  func.func @transform_12(%arg0: i32) -> (i32, i32) {
    %c0_i32 = arith.constant 0 : i32
    %c0_i32_0 = arith.constant 0 : i32
    %c0_i32_1 = arith.constant 0 : i32
    return %c0_i32, %c0_i32_0 : i32, i32
  }
  func.func @transform_13(%arg0: i32) -> (i32, i32) {
    %c0_i32 = arith.constant 0 : i32
    %c0_i32_0 = arith.constant 0 : i32
    %c0_i32_1 = arith.constant 0 : i32
    return %c0_i32, %c0_i32_0 : i32, i32
  }
  func.func @transform_14(%arg0: i32) -> (i32, i32) {
    %c0_i32 = arith.constant 0 : i32
    %c0_i32_0 = arith.constant 0 : i32
    %c0_i32_1 = arith.constant 0 : i32
    return %c0_i32, %c0_i32_0 : i32, i32
  }
  func.func @transform_15(%arg0: i32) -> (i32, i32) {
    %c0_i32 = arith.constant 0 : i32
    %c0_i32_0 = arith.constant 0 : i32
    %c0_i32_1 = arith.constant 0 : i32
    return %c0_i32, %c0_i32_0 : i32, i32
  }
  func.func @transform_16(%arg0: i32) -> (i32, i32, i32) {
    %c0_i32 = arith.constant 0 : i32
    %c0_i32_0 = arith.constant 0 : i32
    %c0_i32_1 = arith.constant 0 : i32
    return %arg0, %c0_i32, %c0_i32_0 : i32, i32, i32
  }
}

</mosaic_0001>

<bundles_post_ra>
// kernel: efficientnetv2_binary_forward.1
= control target key start
LH: loop header
LB: loop body
LE: loop exit
PB: predicated region body
PF: predicated region fallthrough
CT: control target
= control target key end

     0   :  { %s7967_s0 = inlined_call_operand.vmem [shape: f32[2,16,16,3], index: 0, kind: input, shape index: {}]   ;;  %s7968_s1 = inlined_call_operand.vmem [shape: bf16[64,256], index: 1, kind: input, shape index: {}]   ;;  %s7969_s2 = inlined_call_operand.vmem [shape: bf16[16,64], index: 2, kind: input, shape index: {}]   ;;  %s7970_s3 = inlined_call_operand.vmem [shape: bf16[27,16], index: 3, kind: input, shape index: {}]   ;;  %s7971_s4 = inlined_call_operand.vmem [shape: f32[1,16], index: 4, kind: input, shape index: {}]   ;;  %s7972_s5 = inlined_call_operand.vmem [shape: f32[1,16], index: 5, kind: input, shape index: {}]   ;;  %s7973_s6 = inlined_call_operand.vmem [shape: bf16[144,16], index: 6, kind: input, shape index: {}]   ;;  %s7974_s7 = inlined_call_operand.vmem [shape: f32[1,16], index: 7, kind: input, shape index: {}]   ;;  %s7975_s8 = inlined_call_operand.vmem [shape: f32[1,16], index: 8, kind: input, shape index: {}]   ;;  %s7976_s9 = inlined_call_operand.vmem [shape: bf16[144,64], index: 9, kind: input, shape index: {}]   ;;  %s7977_s10 = inlined_call_operand.vmem [shape: f32[1,64], index: 10, kind: input, shape index: {}]   ;;  %s7978_s11 = inlined_call_operand.vmem [shape: f32[1,64], index: 11, kind: input, shape index: {}]   ;;  %s7979_s12 = inlined_call_operand.vmem [shape: bf16[64,128], index: 12, kind: input, shape index: {}]   ;;  %s7980_s13 = inlined_call_operand.vmem [shape: f32[1,128], index: 13, kind: input, shape index: {}]   ;;  %s7981_s14 = inlined_call_operand.vmem [shape: f32[128,2], index: 14, kind: input, shape index: {}]   ;;  %s7982_s15 = inlined_call_operand.vmem [shape: f32[1,2], index: 15, kind: input, shape index: {}]   ;;  %s7983_s16 = inlined_call_operand.hbm [shape: f32[2,1,2], index: 16, kind: output, shape index: {}]  }
   0x1   :  { %8011 = sst [smem:[#allocation9_spill]] %s7967_s0 }
   0x2   :  { %8012 = sst [smem:[#allocation10_spill]] %s7968_s1 }
   0x3   :  { %8013 = sst [smem:[#allocation11_spill]] %s7970_s3 }
   0x4   :  { %8014 = sst [smem:[#allocation12_spill]] %s7971_s4 }
   0x5   :  { %21 = vsyncpa [#allocation5], 0 }
   0x6   :  { %23 = vsyncpa [#allocation5 + $0x1], 0  ;;  %s6100_s21 = smov 0   ;;  %s6102_s22 = smov 0  }
   0x7   :  { %s6104_s23 = smov 0   ;;  %s6106_s24 = smov 0  }
   0x8 LB: > { %8015 = sst [smem:[#allocation7_spill]] %s5988_s23  ;;  %s6121_s25 = sadd.s32 4294967295, %s5992_s24   ;;  %s5992_s24 = sphi %s6106_s24, %s8040_s24   ;;  %s5988_s23 = sphi %s6104_s23, %s8037_s23   ;;  %s5984_s22 = sphi %s6102_s22, %s8039_s22   ;;  %s5980_s21 = sphi %s6100_s21, %s8038_s21  }
   0x9   : > { %s4428_s26 = sadd.s32 4294967294, %s5992_s24   ;;  %s6125_s27 = sadd.s32 1, %s5992_s24  }
   0xa   : > { %s377_s28 = sadd.s32 1, %s5988_s23  ;;  %s374_s29 = ssub.s32 %s5992_s24, %s6125_s27 }
   0xb   : > { %p387_p0 = scmp.ne.s32.totalorder %s5988_s23, %s5984_s22  ;;  %p375_p1 = scmp.eq.s32.totalorder %s374_s29, 0 }
   0xc   : > { %p388_p2 = scmp.eq.s32.totalorder %s6121_s25, 1  ;;  %p393_p3 = scmp.ne.s32.totalorder %s5984_s22, %s5980_s21 }
   0xd   : > { %p394_p4 = scmp.eq.s32.totalorder %s4428_s26, 1  ;;  %p4431_p7 = scmp.ge.s32.totalorder %s5992_s24, 1 }
   0xe   : > { %s6136_s30 = scalar_select %p375_p1, %s5988_s23, %s377_s28  }
   0xf   : > { %p6138_p5 = por %p388_p2, %p387_p0  ;;  %p6142_p6 = por %p394_p4, %p393_p3 }
  0x10   : > { %8016 = sst [smem:[#allocation8_spill]] %s6136_s30  ;;  %p465_p8 = scmp.lt.s32.totalorder %s5992_s24, 3 }
  0x12   : > { %p466_p9 = pnand %p4431_p7, %p465_p8 }
  0x13   : > { %vm552_vm0 = vcmask (!%p466_p9), 23552   ;;  %vm555_vm1 = vcmask (!%p466_p9), 17408   ;;  %v5994_v0 = vmov (!%p466_p9), 0.0   ;;  %p514_p10 = scmp.lt.s32.totalorder (!%p466_p9), %s6121_s25, 1  ;;  %s8019_s28 = sld [smem:[#allocation9_spill]] (!%p466_p9)  ;;  %vm2297_vm2 = vcmask (!%p466_p9), 1044480  }
  0x14   : > { %469 = sbr.rel (%p466_p9) target bundleno = 2441 (0x989), region = 84  ;;  %553 = vst.msk [vmem:[#allocation2] sm:$0xff] (!%p466_p9), %vm552_vm0, %v5994_v0  ;;  %554 = vst.msk [vmem:[#allocation2 + $0x8] sm:$0xff] (!%p466_p9), %vm552_vm0, %v5994_v0  ;;  %s7986_s20 = smov (!%p466_p9), 9   ;;  %vm2298_vm3 = vcmask (!%p466_p9), 1045504   ;;  %v6000_v48 = vmov (!%p466_p9), 65535  }
  0x15   : > { %556 = vst.msk [vmem:[#allocation2 + $0x10] sm:$0x3] (!%p466_p9), %vm555_vm1, %v5994_v0  ;;  %559 = vst.msk [vmem:[#allocation2 + $0x28] sm:$0x3] (!%p466_p9), %vm555_vm1, %v5994_v0  ;;  %s7984_s26 = smov (!%p466_p9), 12   ;;  %v2299_v49 = vsel (!%p466_p9), %vm2297_vm2, 4294967295, %v6000_v48 }
  0x16   : > { %557 = vst.msk [vmem:[#allocation2 + $0x18] sm:$0xff] (!%p466_p9), %vm552_vm0, %v5994_v0  ;;  %558 = vst.msk [vmem:[#allocation2 + $0x20] sm:$0xff] (!%p466_p9), %vm552_vm0, %v5994_v0  ;;  %s8020_s3 = sld [smem:[#allocation11_spill]] (!%p466_p9)  ;;  %v2300_v53 = vsel (!%p466_p9), %vm2298_vm3, %v2299_v49, 0  ;;  %s8027_s30 = smov (!%p466_p9), 21   ;;  %vm1986_vm4 = vcmask (!%p466_p9), 48128  }
  0x17   : > { %560 = vst.msk [vmem:[#allocation2 + $0x30] sm:$0xff] (!%p466_p9), %vm552_vm0, %v5994_v0  ;;  %561 = vst.msk [vmem:[#allocation2 + $0x38] sm:$0xff] (!%p466_p9), %vm552_vm0, %v5994_v0  ;;  %s8028_s23 = smov (!%p466_p9), 24   ;;  %vm2019_vm5 = vcmask (!%p466_p9), 72704   ;;  %vm2052_vm6 = vcmask (!%p466_p9), 97280   ;;  %vm2085_vm7 = vcmask (!%p466_p9), 121856  }
  0x18   : > { %562 = vst.msk [vmem:[#allocation2 + $0x40] sm:$0x3] (!%p466_p9), %vm555_vm1, %v5994_v0  ;;  %565 = vst.msk [vmem:[#allocation2 + $0x58] sm:$0x3] (!%p466_p9), %vm555_vm1, %v5994_v0  ;;  %vm2118_vm8 = vcmask (!%p466_p9), 146432   ;;  %vm2151_vm9 = vcmask (!%p466_p9), 171008  }
  0x19   : > { %563 = vst.msk [vmem:[#allocation2 + $0x48] sm:$0xff] (!%p466_p9), %vm552_vm0, %v5994_v0  ;;  %564 = vst.msk [vmem:[#allocation2 + $0x50] sm:$0xff] (!%p466_p9), %vm552_vm0, %v5994_v0  ;;  %vm2184_vm10 = vcmask (!%p466_p9), 195584   ;;  %vm2248_vm11 = vcmask (!%p466_p9), 220160   ;;  %s8029_s4 = sld [smem:[#allocation12_spill]] (!%p466_p9)  ;;  %s8030_s1 = sld [smem:[#allocation10_spill]] (!%p466_p9) }
  0x1a   : > { %566 = vst.msk [vmem:[#allocation2 + $0x60] sm:$0xff] (!%p466_p9), %vm552_vm0, %v5994_v0  ;;  %567 = vst.msk [vmem:[#allocation2 + $0x68] sm:$0xff] (!%p466_p9), %vm552_vm0, %v5994_v0  ;;  %vm2864_vm12 = vcmask (!%p466_p9), 130048   ;;  %vm2866_vm13 = vcmask (!%p466_p9), 123904   ;;  %vm3200_vm14 = vcmask (!%p466_p9), 261120   ;;  %vm3209_vm15 = vcmask (!%p466_p9), 392192  }
  0x1b   : > { %568 = vst.msk [vmem:[#allocation2 + $0x70] sm:$0x3] %vm555_vm1, %v5994_v0  ;;  %571 = vst.msk [vmem:[#allocation2 + $0x88] sm:$0x3] %vm555_vm1, %v5994_v0  ;;  %s515_s18 = scalar_select %p514_p10, %s6121_s25, 1  ;;  %v705_v4 = vld [vmem:[#allocation2 + $0x2] sm:$0xff] }
  0x1c   : > { %569 = vst.msk [vmem:[#allocation2 + $0x78] sm:$0xff] %vm552_vm0, %v5994_v0  ;;  %570 = vst.msk [vmem:[#allocation2 + $0x80] sm:$0xff] %vm552_vm0, %v5994_v0  ;;  %v706_v5 = vld [vmem:[#allocation2 + $0xa] sm:$0xff]  ;;  %v673_v6 = vld [vmem:[#allocation2 + $0x1] sm:$0xff]  ;;  %vm3236_vm2 = vcmask 785408   ;;  %vm3245_vm3 = vcmask 916480  }
  0x1d   : > { %572 = vst.msk [vmem:[#allocation2 + $0x90] sm:$0xff] %vm552_vm0, %v5994_v0  ;;  %573 = vst.msk [vmem:[#allocation2 + $0x98] sm:$0xff] %vm552_vm0, %v5994_v0  ;;  %s4503_s19 = sshll.u32 %s515_s18, 8  ;;  %v4776_v7 = vpack.i.bf16 %v706_v5, %v705_v4  ;;  %v674_v8 = vld [vmem:[#allocation2 + $0x9] sm:$0xff]  ;;  %s7988_s18 = smov 6   ;;  %v5691_v52 = vld [vmem:[%s8020_s3] sm:$0xff]  }
  0x1e   : > { %574 = vst.msk [vmem:[#allocation2 + $0xa0] sm:$0x3] %vm555_vm1, %v5994_v0  ;;  %577 = vst.msk [vmem:[#allocation2 + $0xb8] sm:$0x3] %vm555_vm1, %v5994_v0  ;;  %s6261_s29 = scalar_lea.vmem %s8019_s28, %s4503_s19  ;;  %v4771_v11 = vpack.i.bf16 %v674_v8, %v673_v6  ;;  %s7992_s19 = smov 3   ;;  %4589 = vmatprep.subr.bf16.mxu0 %v5691_v52  ;;  %4708 = vmatprep.subr.bf16.mxu1 %v5691_v52 }
  0x1f   : > { %575 = vst.msk [vmem:[#allocation2 + $0xa8] sm:$0xff] %vm552_vm0, %v5994_v0  ;;  %576 = vst.msk [vmem:[#allocation2 + $0xb0] sm:$0xff] %vm552_vm0, %v5994_v0  ;;  %v520_v1 = vld [vmem:[%s6261_s29] sm:$0xff]  ;;  %v521_v2 = vld [vmem:[%s6261_s29 + $0x8] sm:$0xff]  ;;  %4777 = vrot.lane.b32.xlu1 %v4776_v7, %s7988_s18  ;;  %s7990_s28 = smov 15   ;;  %4590 = vmatpush3.bf16.msra.mxu0 %v5691_v52 }
  0x20   : > { %578 = vst.msk [vmem:[#allocation2 + $0xc0] sm:$0xff] %vm552_vm0, %v5994_v0  ;;  %579 = vst.msk [vmem:[#allocation2 + $0xc8] sm:$0xff] %vm552_vm0, %v5994_v0  ;;  %v522_v3 = vld [vmem:[%s6261_s29 + $0x10] sm:$0xff]  ;;  %v523_v9 = vld [vmem:[%s6261_s29 + $0x18] sm:$0xff]  ;;  %4772 = vrot.lane.b32.xlu0 %v4771_v11, %s7992_s19  ;;  %4710 = vmatpush3.bf16.msra.mxu1 %v5691_v52 }
  0x21   : > { %580 = vst.msk [vmem:[#allocation2 + $0xd0] sm:$0x3] %vm555_vm1, %v5994_v0  ;;  %583 = vst.msk [vmem:[#allocation2 + $0xe8] sm:$0x3] %vm555_vm1, %v5994_v0  ;;  %v524_v10 = vld [vmem:[%s6261_s29 + $0x20] sm:$0xff]  ;;  %v525_v12 = vld [vmem:[%s6261_s29 + $0x28] sm:$0xff] }
  0x22   : > { %581 = vst.msk [vmem:[#allocation2 + $0xd8] sm:$0xff] %vm552_vm0, %v5994_v0  ;;  %582 = vst.msk [vmem:[#allocation2 + $0xe0] sm:$0xff] %vm552_vm0, %v5994_v0  ;;  %v526_v13 = vld [vmem:[%s6261_s29 + $0x30] sm:$0xff]  ;;  %v527_v14 = vld [vmem:[%s6261_s29 + $0x38] sm:$0xff] }
  0x23   : > { %584 = vst.msk [vmem:[#allocation2 + $0xf0] sm:$0xff] %vm552_vm0, %v5994_v0  ;;  %585 = vst.msk [vmem:[#allocation2 + $0xf8] sm:$0xff] %vm552_vm0, %v5994_v0  ;;  %v528_v15 = vld [vmem:[%s6261_s29 + $0x40] sm:$0xff]  ;;  %v529_v16 = vld [vmem:[%s6261_s29 + $0x48] sm:$0xff] }
  0x24   : > { %586 = vst.msk [vmem:[#allocation2 + $0x100] sm:$0x3] %vm555_vm1, %v5994_v0  ;;  %589 = vst.msk [vmem:[#allocation2 + $0x118] sm:$0x3] %vm555_vm1, %v5994_v0  ;;  %v530_v17 = vld [vmem:[%s6261_s29 + $0x50] sm:$0xff]  ;;  %v531_v18 = vld [vmem:[%s6261_s29 + $0x58] sm:$0xff] }
  0x25   : > { %587 = vst.msk [vmem:[#allocation2 + $0x108] sm:$0xff] %vm552_vm0, %v5994_v0  ;;  %588 = vst.msk [vmem:[#allocation2 + $0x110] sm:$0xff] %vm552_vm0, %v5994_v0  ;;  %v532_v19 = vld [vmem:[%s6261_s29 + $0x60] sm:$0xff]  ;;  %v533_v20 = vld [vmem:[%s6261_s29 + $0x68] sm:$0xff] }
  0x26   : > { %590 = vst.msk [vmem:[#allocation2 + $0x120] sm:$0xff] %vm552_vm0, %v5994_v0  ;;  %591 = vst.msk [vmem:[#allocation2 + $0x128] sm:$0xff] %vm552_vm0, %v5994_v0  ;;  %v534_v21 = vld [vmem:[%s6261_s29 + $0x70] sm:$0xff]  ;;  %v535_v22 = vld [vmem:[%s6261_s29 + $0x78] sm:$0xff] }
  0x27   : > { %592 = vst.msk [vmem:[#allocation2 + $0x130] sm:$0x3] %vm555_vm1, %v5994_v0  ;;  %595 = vst.msk [vmem:[#allocation2 + $0x148] sm:$0x3] %vm555_vm1, %v5994_v0  ;;  %v536_v23 = vld [vmem:[%s6261_s29 + $0x80] sm:$0xff]  ;;  %v537_v24 = vld [vmem:[%s6261_s29 + $0x88] sm:$0xff] }
  0x28   : > { %593 = vst.msk [vmem:[#allocation2 + $0x138] sm:$0xff] %vm552_vm0, %v5994_v0  ;;  %594 = vst.msk [vmem:[#allocation2 + $0x140] sm:$0xff] %vm552_vm0, %v5994_v0  ;;  %v538_v50 = vld [vmem:[%s6261_s29 + $0x90] sm:$0xff]  ;;  %v539_v51 = vld [vmem:[%s6261_s29 + $0x98] sm:$0xff] }
  0x29   : > { %596 = vst.msk [vmem:[#allocation2 + $0x150] sm:$0xff] %vm552_vm0, %v5994_v0  ;;  %597 = vst.msk [vmem:[#allocation2 + $0x158] sm:$0xff] %vm552_vm0, %v5994_v0  ;;  %v5692_v55 = vld [vmem:[%s8020_s3 + $0x8] sm:$0x3f]   ;;  %v540_v56 = vld [vmem:[%s6261_s29 + $0xa0] sm:$0xff]  ;;  %s8026_s3 = smov 18  }
  0x2a   : > { %598 = vst.msk [vmem:[#allocation2 + $0x160] sm:$0x3] %vm555_vm1, %v5994_v0  ;;  %601 = vst.msk [vmem:[#allocation2 + $0x178] sm:$0x3] %vm555_vm1, %v5994_v0  ;;  %v541_v57 = vld [vmem:[%s6261_s29 + $0xa8] sm:$0xff]  ;;  %v2302_v58 = vand.u32 %v5692_v55, %v2300_v53  ;;  %v550_v49 = vld [vmem:[%s6261_s29 + $0xf0] sm:$0xff] }
  0x2b   : > { %599 = vst.msk [vmem:[#allocation2 + $0x168] sm:$0xff] %vm552_vm0, %v5994_v0  ;;  %600 = vst.msk [vmem:[#allocation2 + $0x170] sm:$0xff] %vm552_vm0, %v5994_v0 }
  0x2c   : > { %602 = vst.msk [vmem:[#allocation2 + $0x180] sm:$0xff] %vm552_vm0, %v5994_v0  ;;  %603 = vst.msk [vmem:[#allocation2 + $0x188] sm:$0xff] %vm552_vm0, %v5994_v0  ;;  %4591 = vmatprep.subr.bf16.mxu0 %v2302_v58  ;;  %4709 = vmatprep.subr.bf16.mxu1 %v2302_v58 }
  0x2d   : > { %604 = vst.msk [vmem:[#allocation2 + $0x190] sm:$0x3] %vm555_vm1, %v5994_v0  ;;  %607 = vst.msk [vmem:[#allocation2 + $0x1a8] sm:$0x3] %vm555_vm1, %v5994_v0  ;;  %4592 = vmatpush3.bf16.msra.mxu0 %v2302_v58  ;;  %4711 = vmatpush3.bf16.msra.mxu1 %v2302_v58  ;;  %vm3227_vm1 = vcmask 654336  }
  0x2e   : > { %605 = vst.msk [vmem:[#allocation2 + $0x198] sm:$0xff] %vm552_vm0, %v5994_v0  ;;  %606 = vst.msk [vmem:[#allocation2 + $0x1a0] sm:$0xff] %vm552_vm0, %v5994_v0 }
  0x2f   : > { %609 = vst.msk [vmem:[#allocation2 + $0x19] sm:$0xff] %vm552_vm0, %v520_v1  ;;  %610 = vst.msk [vmem:[#allocation2 + $0x21] sm:$0xff] %vm552_vm0, %v521_v2  ;;  %v542_v1 = vld [vmem:[%s6261_s29 + $0xb0] sm:$0xff]  ;;  %v543_v2 = vld [vmem:[%s6261_s29 + $0xb8] sm:$0xff] }
  0x30   : > { %611 = vst.msk [vmem:[#allocation2 + $0x31] sm:$0xff] %vm552_vm0, %v522_v3  ;;  %612 = vst.msk [vmem:[#allocation2 + $0x39] sm:$0xff] %vm552_vm0, %v523_v9  ;;  %v544_v9 = vld [vmem:[%s6261_s29 + $0xc0] sm:$0xff] }
  0x31   : > { %613 = vst.msk [vmem:[#allocation2 + $0x49] sm:$0xff] %vm552_vm0, %v524_v10  ;;  %614 = vst.msk [vmem:[#allocation2 + $0x51] sm:$0xff] %vm552_vm0, %v525_v12  ;;  %v545_v10 = vld [vmem:[%s6261_s29 + $0xc8] sm:$0xff] }
  0x32   : > { %615 = vst.msk [vmem:[#allocation2 + $0x61] sm:$0xff] %vm552_vm0, %v526_v13  ;;  %616 = vst.msk [vmem:[#allocation2 + $0x69] sm:$0xff] %vm552_vm0, %v527_v14 }
  0x33   : > { %617 = vst.msk [vmem:[#allocation2 + $0x79] sm:$0xff] %vm552_vm0, %v528_v15  ;;  %618 = vst.msk [vmem:[#allocation2 + $0x81] sm:$0xff] %vm552_vm0, %v529_v16 }
  0x34   : > { %619 = vst.msk [vmem:[#allocation2 + $0x91] sm:$0xff] %vm552_vm0, %v530_v17  ;;  %620 = vst.msk [vmem:[#allocation2 + $0x99] sm:$0xff] %vm552_vm0, %v531_v18 }
  0x35   : > { %621 = vst.msk [vmem:[#allocation2 + $0xa9] sm:$0xff] %vm552_vm0, %v532_v19  ;;  %622 = vst.msk [vmem:[#allocation2 + $0xb1] sm:$0xff] %vm552_vm0, %v533_v20 }
  0x36   : > { %623 = vst.msk [vmem:[#allocation2 + $0xc1] sm:$0xff] %vm552_vm0, %v534_v21  ;;  %624 = vst.msk [vmem:[#allocation2 + $0xc9] sm:$0xff] %vm552_vm0, %v535_v22  ;;  %v707_v25 = vld [vmem:[#allocation2 + $0x1a] sm:$0xff]  ;;  %v708_v26 = vld [vmem:[#allocation2 + $0x22] sm:$0xff] }
  0x37   : > { %v675_v27 = vld [vmem:[#allocation2 + $0x19] sm:$0xff]  ;;  %625 = vst.msk [vmem:[#allocation2 + $0xd9] sm:$0xff] %vm552_vm0, %v536_v23  ;;  %626 = vst.msk [vmem:[#allocation2 + $0xe1] sm:$0xff] %vm552_vm0, %v537_v24  ;;  %v4786_v28 = vpack.i.bf16 %v708_v26, %v707_v25  ;;  %v676_v29 = vld [vmem:[#allocation2 + $0x21] sm:$0xff] }
  0x38   : > { %v6301_v30 = vld [vmem:[#allocation2 + $0x30] sm:$0xff]  ;;  %v6303_v31 = vld [vmem:[#allocation2 + $0x18] sm:$0xff]  ;;  %v4781_v32 = vpack.i.bf16 %v676_v29, %v675_v27  ;;  %v6307_v34 = vld [vmem:[#allocation2 + $0x20] sm:$0xff]  ;;  %627 = vst.msk [vmem:[#allocation2 + $0xf1] sm:$0xff] %vm552_vm0, %v538_v50 }
  0x39   : > { %v6305_v33 = vld [vmem:[#allocation2 + $0x38] sm:$0xff]  ;;  %4787 = vrot.lane.b32.xlu1 %v4786_v28, %s7988_s18  ;;  %v4791_v36 = vpack.i.bf16 %v6307_v34, %v6303_v31  ;;  %v6319_v43 = vld [vmem:[#allocation2 + $0x48] sm:$0xff]  ;;  %v6321_v44 = vld [vmem:[#allocation2 + $0x50] sm:$0xff]  ;;  %s7998_s18 = smov 18   ;;  %628 = vst.msk [vmem:[#allocation2 + $0xf9] sm:$0xff] %vm552_vm0, %v539_v51 }
  0x3a   : > { %v4796_v35 = vpack.i.bf16 %v6305_v33, %v6301_v30  ;;  %4782 = vrot.lane.b32.xlu0 %v4781_v32, %s7992_s19  ;;  %v771_v37 = vld [vmem:[#allocation2 + $0x31] sm:$0xff]  ;;  %v772_v38 = vld [vmem:[#allocation2 + $0x39] sm:$0xff]  ;;  %v4826_v45 = vpack.i.bf16 %v6321_v44, %v6319_v43  ;;  %v868_v46 = vld [vmem:[#allocation2 + $0x49] sm:$0xff]  ;;  %629 = vst.msk [vmem:[#allocation2 + $0x109] sm:$0xff] %vm552_vm0, %v540_v56  ;;  %s8021_s19 = smov 3  }
  0x3b   : > { %v4806_v39 = vpack.i.bf16 %v772_v38, %v771_v37  ;;  %v803_v40 = vld [vmem:[#allocation2 + $0x32] sm:$0xff]  ;;  %v804_v41 = vld [vmem:[#allocation2 + $0x3a] sm:$0xff]  ;;  %630 = vst.msk [vmem:[#allocation2 + $0x111] sm:$0xff] %vm552_vm0, %v541_v57  ;;  %v900_v59 = vld [vmem:[#allocation2 + $0x4a] sm:$0xff] }
  0x3c   : > { %v4816_v42 = vpack.i.bf16 %v804_v41, %v803_v40  ;;  %v869_v47 = vld [vmem:[#allocation2 + $0x51] sm:$0xff]  ;;  %v6347_v62 = vld [vmem:[#allocation2 + $0x60] sm:$0xff]  ;;  %v6349_v63 = vld [vmem:[#allocation2 + $0x68] sm:$0xff]  ;;  %631 = vst.msk [vmem:[#allocation2 + $0x121] sm:$0xff] %vm552_vm0, %v542_v1 }
  0x3d   : > { %4797 = vrot.lane.b32.xlu1 %v4796_v35, %s7986_s20  ;;  %v4836_v54 = vpack.i.bf16 %v869_v47, %v868_v46  ;;  %v901_v60 = vld [vmem:[#allocation2 + $0x52] sm:$0xff]  ;;  %632 = vst.msk [vmem:[#allocation2 + $0x129] sm:$0xff] %vm552_vm0, %v543_v2  ;;  %v775_v3 = vld [vmem:[#allocation2 + $0x61] sm:$0xff]  ;;  %v776_v4 = vld [vmem:[#allocation2 + $0x69] sm:$0xff]  ;;  %v4876_v5 = vpack.i.bf16 %v6349_v63, %v6347_v62 }
  0x3e   : > { %4792 = vrot.lane.b32.xlu0 %v4791_v36, %s7986_s20  ;;  %s7994_s20 = smov 21   ;;  %v4851_v61 = vpack.i.bf16 %v901_v60, %v900_v59  ;;  %v4886_v6 = vpack.i.bf16 %v776_v4, %v775_v3  ;;  %v807_v7 = vld [vmem:[#allocation2 + $0x62] sm:$0xff]  ;;  %v808_v8 = vld [vmem:[#allocation2 + $0x6a] sm:$0xff]  ;;  %633 = vst.msk [vmem:[#allocation2 + $0x139] sm:$0xff] %vm552_vm0, %v544_v9  ;;  %634 = vst.msk [vmem:[#allocation2 + $0x141] sm:$0xff] %vm552_vm0, %v545_v10 }
  0x3f   : > { %v4896_v11 = vpack.i.bf16 %v808_v8, %v807_v7  ;;  %v6369_v12 = vld [vmem:[#allocation2 + $0x78] sm:$0xff]  ;;  %v6371_v13 = vld [vmem:[#allocation2 + $0x80] sm:$0xff]  ;;  %v546_v21 = vld [vmem:[%s6261_s29 + $0xd0] sm:$0xff]  ;;  %639 = vst.msk [vmem:[#allocation2 + $0x181] sm:$0xff] %vm552_vm0, %v550_v49 }
  0x40   : > { %v4906_v14 = vpack.i.bf16 %v6371_v13, %v6369_v12  ;;  %v872_v15 = vld [vmem:[#allocation2 + $0x79] sm:$0xff]  ;;  %v873_v16 = vld [vmem:[#allocation2 + $0x81] sm:$0xff]  ;;  %635 = vst.msk [vmem:[#allocation2 + $0x151] sm:$0xff] %vm552_vm0, %v546_v21  ;;  %v747_v23 = vld [vmem:[#allocation2 + $0x90] sm:$0xff] }
  0x41   : > { %4807 = vrot.lane.b32.xlu1 %v4806_v39, %s7984_s26  ;;  %v4916_v17 = vpack.i.bf16 %v873_v16, %v872_v15  ;;  %v904_v18 = vld [vmem:[#allocation2 + $0x7a] sm:$0xff]  ;;  %v905_v19 = vld [vmem:[#allocation2 + $0x82] sm:$0xff]  ;;  %v779_v26 = vld [vmem:[#allocation2 + $0x91] sm:$0xff]  ;;  %2868 = vst.msk [vmem:[#allocation3 + $0x10] sm:$0xff] %vm2864_vm12, %v5994_v0 }
  0x42   : > { %4802 = vrot.lane.b32.xlu0 %v4781_v32, %s7984_s26  ;;  %s7996_s26 = smov 24   ;;  %v4931_v20 = vpack.i.bf16 %v905_v19, %v904_v18  ;;  %v547_v22 = vld [vmem:[%s6261_s29 + $0xd8] sm:$0xff]  ;;  %v549_v36 = vld [vmem:[%s6261_s29 + $0xe8] sm:$0xff]  ;;  %v751_v51 = vld [vmem:[#allocation2 + $0xc0] sm:$0xff]  ;;  %2869 = vst.msk [vmem:[#allocation3 + $0x18] sm:$0x3] %vm2866_vm13, %v5994_v0 }
  0x43   : > { %636 = vst.msk [vmem:[#allocation2 + $0x159] sm:$0xff] %vm552_vm0, %v547_v22  ;;  %v748_v24 = vld [vmem:[#allocation2 + $0x98] sm:$0xff]  ;;  %638 = vst.msk [vmem:[#allocation2 + $0x171] sm:$0xff] %vm552_vm0, %v549_v36  ;;  %v844_v38 = vld [vmem:[#allocation2 + $0xa8] sm:$0xff] }
  0x44   : > { %v4956_v25 = vpack.i.bf16 %v748_v24, %v747_v23  ;;  %v780_v27 = vld [vmem:[#allocation2 + $0x99] sm:$0xff]  ;;  %v876_v41 = vld [vmem:[#allocation2 + $0xa9] sm:$0xff]  ;;  %2865 = vst.msk [vmem:[#allocation3] sm:$0xff] %vm2864_vm12, %v5994_v0  ;;  %2870 = vst.msk [vmem:[#allocation3 + $0x20] sm:$0xff] %vm2864_vm12, %v5994_v0 }
  0x45   : > { %4817 = vrot.lane.b32.xlu1 %v4816_v42, %s7990_s28  ;;  %v811_v29 = vld [vmem:[#allocation2 + $0x92] sm:$0xff]  ;;  %v812_v32 = vld [vmem:[#allocation2 + $0x9a] sm:$0xff]  ;;  %v908_v46 = vld [vmem:[#allocation2 + $0xaa] sm:$0xff]  ;;  %2867 = vst.msk [vmem:[#allocation3 + $0x8] sm:$0x3] %vm2866_vm13, %v5994_v0 }
  0x46   : > { %4812 = vrot.lane.b32.xlu0 %v4786_v28, %s7990_s28  ;;  %s8022_s28 = smov 6   ;;  %v4966_v28 = vpack.i.bf16 %v780_v27, %v779_v26  ;;  %v4976_v37 = vpack.i.bf16 %v812_v32, %v811_v29  ;;  %v909_v47 = vld [vmem:[#allocation2 + $0xb2] sm:$0xff]  ;;  %v752_v52 = vld [vmem:[#allocation2 + $0xc8] sm:$0xff]  ;;  %v912_v10 = vld [vmem:[#allocation2 + $0xda] sm:$0xff]  ;;  %2871 = vst.msk [vmem:[#allocation3 + $0x28] sm:$0x3] %vm2866_vm13, %v5994_v0 }
  0x47   : > { %v5011_v48 = vpack.i.bf16 %v909_v47, %v908_v46  ;;  %v551_v50 = vld [vmem:[%s6261_s29 + $0xf8] sm:$0xff]  ;;  %v5036_v53 = vpack.i.bf16 %v752_v52, %v751_v51  ;;  %v784_v55 = vld [vmem:[#allocation2 + $0xc9] sm:$0xff]  ;;  %v641_v24 = vld [vmem:[#allocation2] sm:$0xff]  ;;  %2872 = vst.msk [vmem:[#allocation3 + $0x30] sm:$0xff] %vm2864_vm12, %v5994_v0 }
  0x48   : > { %640 = vst.msk [vmem:[#allocation2 + $0x189] sm:$0xff] %vm552_vm0, %v551_v50  ;;  %v815_v57 = vld [vmem:[#allocation2 + $0xc2] sm:$0xff]  ;;  %v816_v58 = vld [vmem:[#allocation2 + $0xca] sm:$0xff]  ;;  %v848_v60 = vld [vmem:[#allocation2 + $0xd8] sm:$0xff] }
  0x49   : > { %4827 = vrot.lane.b32.xlu1 %v4826_v45, %s7998_s18  ;;  %v5056_v59 = vpack.i.bf16 %v816_v58, %v815_v57  ;;  %v880_v4 = vld [vmem:[#allocation2 + $0xd9] sm:$0xff]  ;;  %v755_v18 = vld [vmem:[#allocation2 + $0xf0] sm:$0xff]  ;;  %v642_v23 = vld [vmem:[#allocation2 + $0x8] sm:$0xff]  ;;  %2873 = vst.msk [vmem:[#allocation3 + $0x38] sm:$0x3] %vm2866_vm13, %v5994_v0 }
  0x4a   : > { %4822 = vrot.lane.b32.xlu0 %v4796_v35, %s7998_s18  ;;  %s8025_s18 = smov 15   ;;  %v548_v35 = vld [vmem:[%s6261_s29 + $0xe0] sm:$0xff]  ;;  %v756_v19 = vld [vmem:[#allocation2 + $0xf8] sm:$0xff]  ;;  %v852_v46 = vld [vmem:[#allocation2 + $0x108] sm:$0xff]  ;;  %2874 = vst.msk [vmem:[#allocation3 + $0x40] sm:$0xff] %vm2864_vm12, %v5994_v0  ;;  %s8005_s29 = smov 80  }
  0x4b   : > { %637 = vst.msk [vmem:[#allocation2 + $0x169] sm:$0xff] %vm552_vm0, %v548_v35  ;;  %v787_v35 = vld [vmem:[#allocation2 + $0xf1] sm:$0xff]  ;;  %v788_v36 = vld [vmem:[#allocation2 + $0xf9] sm:$0xff] }
  0x4c   : > { %v853_v47 = vld [vmem:[#allocation2 + $0x110] sm:$0xff]  ;;  %2875 = vst.msk [vmem:[#allocation3 + $0x48] sm:$0x3] %vm2866_vm13, %v5994_v0  ;;  %2877 = vst.msk [vmem:[#allocation3 + $0x58] sm:$0x3] %vm2866_vm13, %v5994_v0 }
  0x4d   : > { %4837 = vrot.lane.b32.xlu1 %v4836_v54, %s7994_s20  ;;  %v6486_v57 = vpack.i.bf16 %v853_v47, %v852_v46  ;;  %2876 = vst.msk [vmem:[#allocation3 + $0x50] sm:$0xff] %vm2864_vm12, %v5994_v0  ;;  %2878 = vst.msk [vmem:[#allocation3 + $0x60] sm:$0xff] %vm2864_vm12, %v5994_v0 }
  0x4e   : > { %4832 = vrot.lane.b32.xlu0 %v4806_v39, %s7994_s20  ;;  %s8023_s20 = smov 9   ;;  %2879 = vst.msk [vmem:[#allocation3 + $0x68] sm:$0x3] %vm2866_vm13, %v5994_v0  ;;  %2881 = vst.msk [vmem:[#allocation3 + $0x78] sm:$0x3] %vm2866_vm13, %v5994_v0 }
  0x4f   : > { %2880 = vst.msk [vmem:[#allocation3 + $0x70] sm:$0xff] %vm2864_vm12, %v5994_v0  ;;  %2882 = vst.msk [vmem:[#allocation3 + $0x80] sm:$0xff] %vm2864_vm12, %v5994_v0 }
  0x50   : > { %2883 = vst.msk [vmem:[#allocation3 + $0x88] sm:$0x3] %vm2866_vm13, %v5994_v0  ;;  %2885 = vst.msk [vmem:[#allocation3 + $0x98] sm:$0x3] %vm2866_vm13, %v5994_v0 }
  0x51   : > { %4847 = vrot.lane.b32.xlu1 %v4806_v39, %s8021_s19  ;;  %v845_v39 = vld [vmem:[#allocation2 + $0xb0] sm:$0xff]  ;;  %2884 = vst.msk [vmem:[#allocation3 + $0x90] sm:$0xff] %vm2864_vm12, %v5994_v0 }
  0x52   : > { %4842 = vrot.lane.b32.xlu0 %v4816_v42, %s7996_s26  ;;  %v4986_v40 = vpack.i.bf16 %v845_v39, %v844_v38 }
  0x55   : > { %4857 = vrot.lane.b32.xlu1 %v4836_v54, %s8021_s19 }
  0x56   : > { %4852 = vrot.lane.b32.xlu0 %v4851_v61, %s7996_s26  ;;  %s8024_s26 = smov 12  }
  0x59   : > { %4867 = vrot.lane.b32.xlu1 %v4851_v61, %s8022_s28 }
  0x5a   : > { %4862 = vrot.lane.b32.xlu0 %v4816_v42, %s8022_s28  ;;  %v877_v42 = vld [vmem:[#allocation2 + $0xb1] sm:$0xff] }
  0x5d   : > { %4877 = vrot.lane.b32.xlu1 %v4876_v5, %s8023_s20 }
  0x5e   : > { %4872 = vrot.lane.b32.xlu0 %v4826_v45, %s8023_s20  ;;  %v4996_v45 = vpack.i.bf16 %v877_v42, %v876_v41 }
  0x61   : > { %4887 = vrot.lane.b32.xlu1 %v4886_v6, %s8024_s26 }
  0x62   : > { %4882 = vrot.lane.b32.xlu0 %v4836_v54, %s8024_s26  ;;  %v783_v54 = vld [vmem:[#allocation2 + $0xc1] sm:$0xff] }
  0x63   : > { %v5046_v56 = vpack.i.bf16 %v784_v55, %v783_v54  ;;  %v6478_v55 = vpack.i.bf16 %v788_v36, %v787_v35 }
  0x65   : > { %4897 = vrot.lane.b32.xlu1 %v4896_v11, %s8025_s18 }
  0x66   : > { %4892 = vrot.lane.b32.xlu0 %v4851_v61, %s8025_s18  ;;  %v849_v61 = vld [vmem:[#allocation2 + $0xe0] sm:$0xff] }
  0x67   : > { %v6422_v2 = vpack.i.bf16 %v849_v61, %v848_v60 }
  0x69   : > { %4907 = vrot.lane.b32.xlu1 %v4906_v14, %s8026_s3 }
  0x6a   : > { %4902 = vrot.lane.b32.xlu0 %v4876_v5, %s8026_s3  ;;  %v881_v5 = vld [vmem:[#allocation2 + $0xe1] sm:$0xff] }
  0x6d   : > { %4917 = vrot.lane.b32.xlu1 %v4916_v17, %s8027_s30 }
  0x6e   : > { %4912 = vrot.lane.b32.xlu0 %v4886_v6, %s8027_s30 }
  0x71   : > { %4927 = vrot.lane.b32.xlu1 %v4886_v6, %s8021_s19  ;;  %v6427_v6 = vpack.i.bf16 %v881_v5, %v880_v4 }
  0x72   : > { %4922 = vrot.lane.b32.xlu0 %v4896_v11, %s8028_s23 }
  0x75   : > { %4937 = vrot.lane.b32.xlu1 %v4916_v17, %s8021_s19 }
  0x76   : > { %4932 = vrot.lane.b32.xlu0 %v4931_v20, %s8028_s23 }
  0x79   : > { %4947 = vrot.lane.b32.xlu1 %v4931_v20, %s8022_s28 }
  0x7a   : > { %4942 = vrot.lane.b32.xlu0 %v4896_v11, %s8022_s28  ;;  %v913_v11 = vld [vmem:[#allocation2 + $0xe2] sm:$0xff] }
  0x7b   : > { %v6441_v15 = vpack.i.bf16 %v913_v11, %v912_v10 }
  0x7d   : > { %4957 = vrot.lane.b32.xlu1 %v4956_v25, %s8023_s20 }
  0x7e   : > { %4952 = vrot.lane.b32.xlu0 %v4906_v14, %s8023_s20 }
  0x81   : > { %4967 = vrot.lane.b32.xlu1 %v4966_v28, %s8024_s26 }
  0x82   : > { %4962 = vrot.lane.b32.xlu0 %v4916_v17, %s8024_s26 }
  0x85   : > { %4977 = vrot.lane.b32.xlu1 %v4976_v37, %s8025_s18 }
  0x86   : > { %4972 = vrot.lane.b32.xlu0 %v4931_v20, %s8025_s18 }
  0x89   : > { %4987 = vrot.lane.b32.xlu1 %v4986_v40, %s8026_s3 }
  0x8a   : > { %4982 = vrot.lane.b32.xlu0 %v4956_v25, %s8026_s3 }
  0x8d   : > { %4997 = vrot.lane.b32.xlu1 %v4996_v45, %s8027_s30 }
  0x8e   : > { %4992 = vrot.lane.b32.xlu0 %v4966_v28, %s8027_s30 }
  0x91   : > { %5007 = vrot.lane.b32.xlu1 %v4966_v28, %s8021_s19  ;;  %v6420_v1 = vpop.permute.xlu1 %4777  ;;  %v6457_v28 = vpack.i.bf16 %v756_v19, %v755_v18 }
  0x92   : > { %5002 = vrot.lane.b32.xlu0 %v4976_v37, %s8028_s23  ;;  %v4773_v3 = vpop.permute.xlu0 %4772  ;;  %v4780_v29 = vunpack.i.h.bf16 %v6420_v1  ;;  %v4779_v32 = vunpack.i.l.bf16 %v6420_v1 }
  0x93   : > { %v4775_v20 = vunpack.i.h.bf16 %v4773_v3  ;;  %v4774_v21 = vunpack.i.l.bf16 %v4773_v3 }
  0x95   : > { %5017 = vrot.lane.b32.xlu1 %v4996_v45, %s8021_s19  ;;  %v1955_v38 = vsel %vm552_vm0, %v642_v23, %v4775_v20  ;;  %v1954_v39 = vsel %vm552_vm0, %v641_v24, %v4774_v21 }
  0x96   : > { %5012 = vrot.lane.b32.xlu0 %v5011_v48, %s8028_s23 }
  0x99   : > { %5027 = vrot.lane.b32.xlu1 %v5011_v48, %s8022_s28 }
  0x9a   : > { %5022 = vrot.lane.b32.xlu0 %v4976_v37, %s8022_s28  ;;  %v819_v37 = vld [vmem:[#allocation2 + $0xf2] sm:$0xff] }
  0x9d   : > { %5037 = vrot.lane.b32.xlu1 %v5036_v53, %s8023_s20 }
  0x9e   : > { %5032 = vrot.lane.b32.xlu0 %v4986_v40, %s8023_s20 }
  0xa1   : > { %5047 = vrot.lane.b32.xlu1 %v5046_v56, %s8024_s26 }
  0xa2   : > { %5042 = vrot.lane.b32.xlu0 %v4996_v45, %s8024_s26  ;;  %v820_v45 = vld [vmem:[#allocation2 + $0xfa] sm:$0xff] }
  0xa5   : > { %5057 = vrot.lane.b32.xlu1 %v5056_v59, %s8025_s18 }
  0xa6   : > { %5052 = vrot.lane.b32.xlu0 %v5011_v48, %s8025_s18 }
  0xa9   : > { %5067 = vrot.lane.b32.xlu1 %v6422_v2, %s8026_s3 }
  0xaa   : > { %5062 = vrot.lane.b32.xlu0 %v5036_v53, %s8026_s3 }
  0xab   : > { %v6430_v7 = vpop.permute.xlu1 %4787 }
  0xac   : > { %v4783_v8 = vpop.permute.xlu0 %4782  ;;  %v4790_v40 = vunpack.i.h.bf16 %v6430_v7  ;;  %v4789_v41 = vunpack.i.l.bf16 %v6430_v7 }
  0xad   : > { %5077 = vrot.lane.b32.xlu1 %v6427_v6, %s8027_s30  ;;  %v4785_v25 = vunpack.i.h.bf16 %v4783_v8  ;;  %v4784_v26 = vunpack.i.l.bf16 %v4783_v8 }
  0xae   : > { %5072 = vrot.lane.b32.xlu0 %v5046_v56, %s8027_s30 }
  0xaf   : > { %v6435_v9 = vpop.permute.xlu1 %4797  ;;  %v1956_v48 = vsel %vm552_vm0, %v6303_v31, %v4784_v26  ;;  %v1957_v49 = vsel %vm552_vm0, %v6307_v34, %v4785_v25  ;;  %v1987_v31 = vsel %vm1986_vm4, %v1954_v39, %v4779_v32  ;;  %v6484_v34 = vpack.i.bf16 %v820_v45, %v819_v37  ;;  %v884_v37 = vld [vmem:[#allocation2 + $0x109] sm:$0xff] }
  0xb0   : > { %v6437_v14 = vpop.permute.xlu0 %4792  ;;  %v4800_v50 = vunpack.i.h.bf16 %v6435_v9  ;;  %v4799_v51 = vunpack.i.l.bf16 %v6435_v9  ;;  %v1989_v58 = vsel %vm1986_vm4, %v1956_v48, %v4789_v41 }
  0xb1   : > { %5087 = vrot.lane.b32.xlu1 %v5046_v56, %s8021_s19  ;;  %v4795_v53 = vunpack.i.h.bf16 %v6437_v14  ;;  %v4794_v54 = vunpack.i.l.bf16 %v6437_v14  ;;  %v1988_v56 = vsel %vm1986_vm4, %v1955_v38, %v4780_v29  ;;  %v885_v38 = vld [vmem:[#allocation2 + $0x111] sm:$0xff] }
  0xb2   : > { %5082 = vrot.lane.b32.xlu0 %v5056_v59, %s8028_s23  ;;  %v2022_v3 = vsel %vm2019_vm5, %v1989_v58, %v4799_v51 }
  0xb3   : > { %v6443_v16 = vpop.permute.xlu1 %4807  ;;  %v2021_v8 = vsel %vm2019_vm5, %v1988_v56, %v4795_v53  ;;  %v2020_v9 = vsel %vm2019_vm5, %v1987_v31, %v4794_v54  ;;  %v6530_v53 = vpack.i.bf16 %v885_v38, %v884_v37 }
  0xb4   : > { %v6445_v17 = vpop.permute.xlu0 %4802  ;;  %v4810_v14 = vunpack.i.h.bf16 %v6443_v16 }
  0xb5   : > { %5097 = vrot.lane.b32.xlu1 %v6427_v6, %s8021_s19  ;;  %v4805_v60 = vunpack.i.h.bf16 %v6445_v17  ;;  %v4804_v61 = vunpack.i.l.bf16 %v6445_v17  ;;  %v4809_v17 = vunpack.i.l.bf16 %v6443_v16 }
  0xb6   : > { %5092 = vrot.lane.b32.xlu0 %v6441_v15, %s8028_s23 }
  0xb7   : > { %v6451_v22 = vpop.permute.xlu1 %4817  ;;  %v2053_v20 = vsel %vm2052_vm6, %v2020_v9, %v4804_v61  ;;  %v2054_v21 = vsel %vm2052_vm6, %v2021_v8, %v4805_v60  ;;  %v2055_v45 = vsel %vm2052_vm6, %v2022_v3, %v4809_v17  ;;  %v760_v17 = vld [vmem:[#allocation2 + $0x128] sm:$0xff] }
  0xb8   : > { %v6453_v27 = vpop.permute.xlu0 %4812  ;;  %v4820_v23 = vunpack.i.h.bf16 %v6451_v22  ;;  %v4819_v24 = vunpack.i.l.bf16 %v6451_v22 }
  0xb9   : > { %5107 = vrot.lane.b32.xlu1 %v6441_v15, %s8022_s28  ;;  %v4814_v5 = vunpack.i.l.bf16 %v6453_v27 }
  0xba   : > { %5102 = vrot.lane.b32.xlu0 %v5056_v59, %s8022_s28  ;;  %v1990_v59 = vsel %vm1986_vm4, %v1957_v49, %v4790_v40 }
  0xbb   : > { %v6466_v42 = vpop.permute.xlu1 %4827  ;;  %v2023_v4 = vsel %vm2019_vm5, %v1990_v59, %v4800_v50  ;;  %v2086_v26 = vsel %vm2085_vm7, %v2053_v20, %v4814_v5  ;;  %v2088_v50 = vsel %vm2085_vm7, %v2055_v45, %v4819_v24  ;;  %v792_v20 = vld [vmem:[#allocation2 + $0x129] sm:$0xff] }
  0xbc   : > { %v4823_v52 = vpop.permute.xlu0 %4822  ;;  %v4830_v16 = vunpack.i.h.bf16 %v6466_v42  ;;  %v4829_v29 = vunpack.i.l.bf16 %v6466_v42  ;;  %v2056_v46 = vsel %vm2052_vm6, %v2023_v4, %v4810_v14  ;;  %v759_v14 = vld [vmem:[#allocation2 + $0x120] sm:$0xff] }
  0xbd   : > { %5117 = vrot.lane.b32.xlu1 %v6457_v28, %s8023_s20  ;;  %v4825_v10 = vunpack.i.h.bf16 %v4823_v52  ;;  %v4824_v11 = vunpack.i.l.bf16 %v4823_v52  ;;  %v2089_v51 = vsel %vm2085_vm7, %v2056_v46, %v4820_v23 }
  0xbe   : > { %5112 = vrot.lane.b32.xlu0 %v6422_v2, %s8023_s20  ;;  %v4815_v2 = vunpack.i.h.bf16 %v6453_v27  ;;  %v2121_v54 = vsel %vm2118_vm8, %v2088_v50, %v4829_v29  ;;  %v2122_v31 = vsel %vm2118_vm8, %v2089_v51, %v4830_v16  ;;  %v856_v16 = vld [vmem:[#allocation2 + $0x138] sm:$0xff]  ;;  %v857_v29 = vld [vmem:[#allocation2 + $0x140] sm:$0xff] }
  0xbf   : > { %v4838_v1 = vpop.permute.xlu1 %4837  ;;  %v2119_v36 = vsel %vm2118_vm8, %v2086_v26, %v4824_v11  ;;  %v6570_v26 = vpack.i.bf16 %v760_v17, %v759_v14  ;;  %v6582_v46 = vpack.i.bf16 %v857_v29, %v856_v16 }
  0xc0   : > { %v4833_v7 = vpop.permute.xlu0 %4832  ;;  %v2087_v27 = vsel %vm2085_vm7, %v2054_v21, %v4815_v2  ;;  %v4840_v39 = vunpack.i.h.bf16 %v4838_v1  ;;  %v4839_v40 = vunpack.i.l.bf16 %v4838_v1  ;;  %v823_v21 = vld [vmem:[#allocation2 + $0x122] sm:$0xff] }
  0xc1   : > { %5127 = vrot.lane.b32.xlu1 %v6478_v55, %s8024_s26  ;;  %v4835_v18 = vunpack.i.h.bf16 %v4833_v7  ;;  %v4834_v19 = vunpack.i.l.bf16 %v4833_v7  ;;  %v2120_v22 = vsel %vm2118_vm8, %v2087_v27, %v4825_v10  ;;  %v916_v7 = vld [vmem:[#allocation2 + $0x10a] sm:$0xff] }
  0xc2   : > { %5122 = vrot.lane.b32.xlu0 %v6427_v6, %s8024_s26  ;;  %v2154_v59 = vsel %vm2151_vm9, %v2121_v54, %v4839_v40  ;;  %v2155_v60 = vsel %vm2151_vm9, %v2122_v31, %v4840_v39  ;;  %v824_v27 = vld [vmem:[#allocation2 + $0x12a] sm:$0xff] }
  0xc3   : > { %v6508_v25 = vpop.permute.xlu1 %4847  ;;  %v2152_v41 = vsel %vm2151_vm9, %v2119_v36, %v4834_v19  ;;  %v2153_v42 = vsel %vm2151_vm9, %v2120_v22, %v4835_v18  ;;  %v791_v19 = vld [vmem:[#allocation2 + $0x121] sm:$0xff]  ;;  %v6580_v45 = vpack.i.bf16 %v824_v27, %v823_v21 }
  0xc4   : > { %v4843_v32 = vpop.permute.xlu0 %4842  ;;  %v6578_v39 = vpack.i.bf16 %v792_v20, %v791_v19  ;;  %v889_v27 = vld [vmem:[#allocation2 + $0x141] sm:$0xff] }
  0xc5   : > { %v4845_v6 = vunpack.i.h.bf16 %v4843_v32  ;;  %v4844_v35 = vunpack.i.l.bf16 %v4843_v32  ;;  %5137 = vrot.lane.b32.xlu1 %v6484_v34, %s8025_s18  ;;  %v4850_v32 = vunpack.i.h.bf16 %v6508_v25 }
  0xc6   : > { %5132 = vrot.lane.b32.xlu0 %v6441_v15, %s8025_s18 }
  0xc7   : > { %v6524_v47 = vpop.permute.xlu1 %4857  ;;  %v2185_v48 = vsel %vm2184_vm10, %v2152_v41, %v4844_v35  ;;  %v2186_v49 = vsel %vm2184_vm10, %v2153_v42, %v4845_v6  ;;  %v4849_v6 = vunpack.i.l.bf16 %v6508_v25 }
  0xc8   : > { %v4853_v52 = vpop.permute.xlu0 %4852  ;;  %v2217_v15 = vpack.c.bf16 %v2186_v49, %v2185_v48  ;;  %v4860_v23 = vunpack.i.h.bf16 %v6524_v47  ;;  %v4859_v24 = vunpack.i.l.bf16 %v6524_v47  ;;  %v1959_v49 = vsel %vm552_vm0, %v6305_v33, %v4850_v32 }
  0xc9   : > { %v4855_v56 = vunpack.i.h.bf16 %v4853_v52  ;;  %v4854_v58 = vunpack.i.l.bf16 %v4853_v52  ;;  %5147 = vrot.lane.b32.xlu1 %v6486_v57, %s8026_s3  ;;  %v1958_v50 = vsel %vm552_vm0, %v6301_v30, %v4849_v6 }
  0xca   : > { %5142 = vrot.lane.b32.xlu0 %v6457_v28, %s8026_s3  ;;  %4593 = vmatprep.mubr.msk.bf16.mxu0 %vm2248_vm11, %v2217_v15  ;;  %v917_v28 = vld [vmem:[#allocation2 + $0x112] sm:$0xff]  ;;  %v1961_v25 = vsel %vm552_vm0, %v6321_v44, %v4860_v23  ;;  %v1960_v47 = vsel %vm552_vm0, %v6319_v43, %v4859_v24 }
  0xcb   : > { %v2187_v61 = vsel %vm2184_vm10, %v2154_v59, %v4854_v58  ;;  %v2188_v1 = vsel %vm2184_vm10, %v2155_v60, %v4855_v56  ;;  %v4868_v3 = vpop.permute.xlu1 %4867  ;;  %v6552_v9 = vpack.i.bf16 %v917_v28, %v916_v7 }
  0xcc   : > { %v4863_v4 = vpop.permute.xlu0 %4862  ;;  %v2218_v2 = vpack.c.bf16 %v2188_v1, %v2187_v61  ;;  %v4870_v35 = vunpack.i.h.bf16 %v4868_v3  ;;  %v4869_v36 = vunpack.i.l.bf16 %v4868_v3 }
  0xcd   : > { %5157 = vrot.lane.b32.xlu1 %v6530_v53, %s8027_s30  ;;  %v4865_v22 = vunpack.i.h.bf16 %v4863_v4  ;;  %v4864_v37 = vunpack.i.l.bf16 %v4863_v4 }
  0xce   : > { %5152 = vrot.lane.b32.xlu0 %v6478_v55, %s8027_s30  ;;  %4594 = vmatmul.mubr.msk.bf16.vlgmr.msra.gmra.mrb[0].mxu0 %vm2248_vm11, %v2218_v2  ;;  %v1993_v51 = vsel %vm1986_vm4, %v1960_v47, %v4869_v36  ;;  %v1994_v52 = vsel %vm1986_vm4, %v1961_v25, %v4870_v35 }
  0xcf   : > { %v4878_v5 = vpop.permute.xlu1 %4877  ;;  %v1992_v43 = vsel %vm1986_vm4, %v1959_v49, %v4865_v22  ;;  %v1991_v44 = vsel %vm1986_vm4, %v1958_v50, %v4864_v37 }
  0xd0   : > { %v4873_v8 = vpop.permute.xlu0 %4872  ;;  %v4880_v40 = vunpack.i.h.bf16 %v4878_v5  ;;  %v4879_v41 = vunpack.i.l.bf16 %v4878_v5 }
  0xd1   : > { %5167 = vrot.lane.b32.xlu1 %v6478_v55, %s8021_s19  ;;  %v4874_v48 = vunpack.i.l.bf16 %v4873_v8 }
  0xd2   : > { %5162 = vrot.lane.b32.xlu0 %v6484_v34, %s8028_s23  ;;  %v2026_v33 = vsel %vm2019_vm5, %v1993_v51, %v4879_v41  ;;  %v2027_v30 = vsel %vm2019_vm5, %v1994_v52, %v4880_v40 }
  0xd3   : > { %v6554_v10 = vpop.permute.xlu1 %4887 }
  0xd4   : > { %v6556_v11 = vpop.permute.xlu0 %4882  ;;  %v4890_v3 = vunpack.i.h.bf16 %v6554_v10  ;;  %v4889_v4 = vunpack.i.l.bf16 %v6554_v10 }
  0xd5   : > { %5177 = vrot.lane.b32.xlu1 %v6530_v53, %s8021_s19  ;;  %v4885_v15 = vunpack.i.h.bf16 %v6556_v11  ;;  %v4884_v54 = vunpack.i.l.bf16 %v6556_v11 }
  0xd6   : > { %5172 = vrot.lane.b32.xlu0 %v6552_v9, %s8028_s23  ;;  %v2059_v35 = vsel %vm2052_vm6, %v2026_v33, %v4889_v4  ;;  %v2060_v36 = vsel %vm2052_vm6, %v2027_v30, %v4890_v3  ;;  %v920_v33 = vld [vmem:[#allocation2 + $0x13a] sm:$0xff]  ;;  %v827_v4 = vld [vmem:[#allocation2 + $0x152] sm:$0xff] }
  0xd7   : > { %v6562_v18 = vpop.permute.xlu1 %4897  ;;  %v796_v3 = vld [vmem:[#allocation2 + $0x159] sm:$0xff] }
  0xd8   : > { %v6564_v55 = vpop.permute.xlu0 %4892  ;;  %v4899_v11 = vunpack.i.l.bf16 %v6562_v18 }
  0xd9   : > { %5187 = vrot.lane.b32.xlu1 %v6552_v9, %s8022_s28  ;;  %v4895_v56 = vunpack.i.h.bf16 %v6564_v55  ;;  %v4894_v58 = vunpack.i.l.bf16 %v6564_v55 }
  0xda   : > { %5182 = vrot.lane.b32.xlu0 %v6484_v34, %s8022_s28  ;;  %v4875_v34 = vunpack.i.h.bf16 %v4873_v8  ;;  %v4900_v8 = vunpack.i.h.bf16 %v6562_v18  ;;  %v888_v18 = vld [vmem:[#allocation2 + $0x139] sm:$0xff]  ;;  %v2092_v40 = vsel %vm2085_vm7, %v2059_v35, %v4899_v11  ;;  %v6690_v11 = vld [vmem:[#allocation2 + $0x170] sm:$0xff] }
  0xdb   : > { %v6576_v38 = vpop.permute.xlu1 %4907  ;;  %v6640_v47 = vpack.i.bf16 %v889_v27, %v888_v18 }
  0xdc   : > { %v4903_v42 = vpop.permute.xlu0 %4902  ;;  %v2025_v60 = vsel %vm2019_vm5, %v1992_v43, %v4875_v34  ;;  %v4910_v10 = vunpack.i.h.bf16 %v6576_v38  ;;  %v4909_v19 = vunpack.i.l.bf16 %v6576_v38  ;;  %v2093_v41 = vsel %vm2085_vm7, %v2060_v36, %v4900_v8  ;;  %v6688_v8 = vld [vmem:[#allocation2 + $0x168] sm:$0xff] }
  0xdd   : > { %5197 = vrot.lane.b32.xlu1 %v6570_v26, %s8023_s20  ;;  %v4905_v61 = vunpack.i.h.bf16 %v4903_v42  ;;  %v4904_v1 = vunpack.i.l.bf16 %v4903_v42  ;;  %v2058_v28 = vsel %vm2052_vm6, %v2025_v60, %v4885_v15  ;;  %v6674_v60 = vld [vmem:[#allocation2 + $0x158] sm:$0xff] }
  0xde   : > { %5192 = vrot.lane.b32.xlu0 %v6486_v57, %s8023_s20  ;;  %v2024_v57 = vsel %vm2019_vm5, %v1991_v44, %v4874_v48  ;;  %v2091_v55 = vsel %vm2085_vm7, %v2058_v28, %v4895_v56  ;;  %v2126_v34 = vsel %vm2118_vm8, %v2093_v41, %v4910_v10  ;;  %v828_v28 = vld [vmem:[#allocation2 + $0x15a] sm:$0xff] }
  0xdf   : > { %v4918_v31 = vpop.permute.xlu1 %4917  ;;  %v2057_v7 = vsel %vm2052_vm6, %v2024_v57, %v4884_v54  ;;  %v2124_v21 = vsel %vm2118_vm8, %v2091_v55, %v4905_v61  ;;  %v6672_v57 = vld [vmem:[#allocation2 + $0x150] sm:$0xff] }
  0xe0   : > { %v4913_v59 = vpop.permute.xlu0 %4912  ;;  %v2090_v17 = vsel %vm2085_vm7, %v2057_v7, %v4894_v58  ;;  %v4920_v16 = vunpack.i.h.bf16 %v4918_v31  ;;  %v4919_v29 = vunpack.i.l.bf16 %v4918_v31  ;;  %v6686_v7 = vpack.i.bf16 %v6674_v60, %v6672_v57 }
  0xe1   : > { %5207 = vrot.lane.b32.xlu1 %v6578_v39, %s8024_s26  ;;  %v4915_v2 = vunpack.i.h.bf16 %v4913_v59  ;;  %v4914_v5 = vunpack.i.l.bf16 %v4913_v59 }
  0xe2   : > { %5202 = vrot.lane.b32.xlu0 %v6530_v53, %s8024_s26  ;;  %v2123_v53 = vsel %vm2118_vm8, %v2090_v17, %v4904_v1  ;;  %v2159_v51 = vsel %vm2151_vm9, %v2126_v34, %v4920_v16  ;;  %v795_v1 = vld [vmem:[#allocation2 + $0x151] sm:$0xff]  ;;  %v6700_v16 = vpack.i.bf16 %v828_v28, %v827_v4 }
  0xe3   : > { %v6618_v14 = vpop.permute.xlu1 %4927  ;;  %v2156_v32 = vsel %vm2151_vm9, %v2123_v53, %v4914_v5  ;;  %v2157_v6 = vsel %vm2151_vm9, %v2124_v21, %v4915_v2 }
  0xe4   : > { %v4923_v20 = vpop.permute.xlu0 %4922  ;;  %v4930_v17 = vunpack.i.h.bf16 %v6618_v14  ;;  %v4929_v55 = vunpack.i.l.bf16 %v6618_v14 }
  0xe5   : > { %v4925_v23 = vunpack.i.h.bf16 %v4923_v20  ;;  %v4924_v24 = vunpack.i.l.bf16 %v4923_v20  ;;  %5217 = vrot.lane.b32.xlu1 %v6580_v45, %s8025_s18 }
  0xe6   : > { %5212 = vrot.lane.b32.xlu0 %v6552_v9, %s8025_s18  ;;  %v2125_v9 = vsel %vm2118_vm8, %v2092_v40, %v4909_v19  ;;  %v1963_v35 = vsel %vm552_vm0, %v6349_v63, %v4930_v17  ;;  %v1962_v36 = vsel %vm552_vm0, %v6347_v62, %v4929_v55 }
  0xe7   : > { %v2189_v22 = vsel %vm2184_vm10, %v2156_v32, %v4924_v24  ;;  %v2190_v37 = vsel %vm2184_vm10, %v2157_v6, %v4925_v23  ;;  %v6636_v38 = vpop.permute.xlu1 %4937  ;;  %v2158_v50 = vsel %vm2151_vm9, %v2125_v9, %v4919_v29  ;;  %v6698_v23 = vpack.i.bf16 %v796_v3, %v795_v1 }
  0xe8   : > { %v4933_v42 = vpop.permute.xlu0 %4932  ;;  %v2219_v25 = vpack.c.bf16 %v2190_v37, %v2189_v22  ;;  %v4940_v2 = vunpack.i.h.bf16 %v6636_v38  ;;  %v4939_v5 = vunpack.i.l.bf16 %v6636_v38  ;;  %v6704_v29 = vpack.i.bf16 %v6690_v11, %v6688_v8 }
  0xe9   : > { %v4935_v48 = vunpack.i.h.bf16 %v4933_v42  ;;  %v4934_v49 = vunpack.i.l.bf16 %v4933_v42  ;;  %5227 = vrot.lane.b32.xlu1 %v6582_v46, %s8026_s3 }
  0xea   : > { %5222 = vrot.lane.b32.xlu0 %v6570_v26, %s8026_s3  ;;  %4597 = vmatprep.mubr.msk.bf16.mxu0 %vm2248_vm11, %v2219_v25  ;;  %v921_v26 = vld [vmem:[#allocation2 + $0x142] sm:$0xff]  ;;  %v1965_v14 = vsel %vm552_vm0, %v6371_v13, %v4940_v2  ;;  %v893_v2 = vld [vmem:[#allocation2 + $0x171] sm:$0xff] }
  0xeb   : > { %v2192_v52 = vsel %vm2184_vm10, %v2159_v51, %v4935_v48  ;;  %v2191_v43 = vsel %vm2184_vm10, %v2158_v50, %v4934_v49  ;;  %v4948_v44 = vpop.permute.xlu1 %4947  ;;  %v6662_v56 = vpack.i.bf16 %v921_v26, %v920_v33 }
  0xec   : > { %v4943_v15 = vpop.permute.xlu0 %4942  ;;  %v2220_v54 = vpack.c.bf16 %v2192_v52, %v2191_v43  ;;  %v4950_v10 = vunpack.i.h.bf16 %v4948_v44  ;;  %v4949_v19 = vunpack.i.l.bf16 %v4948_v44 }
  0xed   : > { %5237 = vrot.lane.b32.xlu1 %v6640_v47, %s8027_s30  ;;  %v4945_v20 = vunpack.i.h.bf16 %v4943_v15  ;;  %v4944_v53 = vunpack.i.l.bf16 %v4943_v15 }
  0xee   : > { %5232 = vrot.lane.b32.xlu0 %v6578_v39, %s8027_s30  ;;  %4598 = vmatmul.mubr.msk.bf16.gmra.mrb[4].mxu0 %vm2248_vm11, %v2220_v54  ;;  %v1998_v37 = vsel %vm1986_vm4, %v1965_v14, %v4950_v10 }
  0xef   : > { %v4958_v31 = vpop.permute.xlu1 %4957  ;;  %v1995_v13 = vsel %vm1986_vm4, %v1962_v36, %v4944_v53 }
  0xf0   : > { %v4953_v30 = vpop.permute.xlu0 %4952  ;;  %v4960_v24 = vunpack.i.h.bf16 %v4958_v31  ;;  %v4959_v18 = vunpack.i.l.bf16 %v4958_v31 }
  0xf1   : > { %5247 = vrot.lane.b32.xlu1 %v6578_v39, %s8021_s19  ;;  %v4955_v32 = vunpack.i.h.bf16 %v4953_v30  ;;  %v4954_v6 = vunpack.i.l.bf16 %v4953_v30 }
  0xf2   : > { %5242 = vrot.lane.b32.xlu0 %v6580_v45, %s8028_s23  ;;  %v2031_v62 = vsel %vm2019_vm5, %v1998_v37, %v4960_v24 }
  0xf3   : > { %v6664_v58 = vpop.permute.xlu1 %4967 }
  0xf4   : > { %v6666_v59 = vpop.permute.xlu0 %4962  ;;  %v4970_v50 = vunpack.i.h.bf16 %v6664_v58  ;;  %v4969_v51 = vunpack.i.l.bf16 %v6664_v58 }
  0xf5   : > { %5257 = vrot.lane.b32.xlu1 %v6640_v47, %s8021_s19  ;;  %v4965_v38 = vunpack.i.h.bf16 %v6666_v59  ;;  %v4964_v40 = vunpack.i.l.bf16 %v6666_v59 }
  0xf6   : > { %5252 = vrot.lane.b32.xlu0 %v6662_v56, %s8028_s23 }
  0xf7   : > { %v6676_v39 = vpop.permute.xlu1 %4977 }
  0xf8   : > { %v6678_v61 = vpop.permute.xlu0 %4972  ;;  %v4980_v54 = vunpack.i.h.bf16 %v6676_v39  ;;  %v4979_v31 = vunpack.i.l.bf16 %v6676_v39  ;;  %v892_v39 = vld [vmem:[#allocation2 + $0x169] sm:$0xff] }
  0xf9   : > { %5267 = vrot.lane.b32.xlu1 %v6662_v56, %s8022_s28  ;;  %v4975_v42 = vunpack.i.h.bf16 %v6678_v61  ;;  %v4974_v25 = vunpack.i.l.bf16 %v6678_v61 }
  0xfa   : > { %5262 = vrot.lane.b32.xlu0 %v6580_v45, %s8022_s28  ;;  %v1964_v45 = vsel %vm552_vm0, %v6369_v12, %v4939_v5  ;;  %v1996_v12 = vsel %vm1986_vm4, %v1963_v35, %v4945_v20 }
  0xfb   : > { %v6696_v21 = vpop.permute.xlu1 %4987  ;;  %v1997_v22 = vsel %vm1986_vm4, %v1964_v45, %v4949_v19  ;;  %v2029_v34 = vsel %vm2019_vm5, %v1996_v12, %v4955_v32  ;;  %v2064_v19 = vsel %vm2052_vm6, %v2031_v62, %v4970_v50  ;;  %v6762_v45 = vpack.i.bf16 %v893_v2, %v892_v39  ;;  %v800_v50 = vld [vmem:[#allocation2 + $0x189] sm:$0xff] }
  0xfc   : > { %v4983_v27 = vpop.permute.xlu0 %4982  ;;  %v2030_v63 = vsel %vm2019_vm5, %v1997_v22, %v4959_v18  ;;  %v2062_v15 = vsel %vm2052_vm6, %v2029_v34, %v4965_v38  ;;  %v4990_v58 = vunpack.i.h.bf16 %v6696_v21  ;;  %v4989_v59 = vunpack.i.l.bf16 %v6696_v21  ;;  %v768_v34 = vld [vmem:[#allocation2 + $0x188] sm:$0xff] }
  0xfd   : > { %5277 = vrot.lane.b32.xlu1 %v6686_v7, %s8023_s20  ;;  %v4985_v48 = vunpack.i.h.bf16 %v4983_v27  ;;  %v4984_v49 = vunpack.i.l.bf16 %v4983_v27  ;;  %v2095_v30 = vsel %vm2085_vm7, %v2062_v15, %v4975_v42  ;;  %v2063_v10 = vsel %vm2052_vm6, %v2030_v63, %v4969_v51  ;;  %v924_v63 = vld [vmem:[#allocation2 + $0x16a] sm:$0xff]  ;;  %v831_v51 = vld [vmem:[#allocation2 + $0x182] sm:$0xff] }
  0xfe   : > { %5272 = vrot.lane.b32.xlu0 %v6582_v46, %s8023_s20  ;;  %v2028_v46 = vsel %vm2019_vm5, %v1995_v13, %v4954_v6  ;;  %v2096_v24 = vsel %vm2085_vm7, %v2063_v10, %v4979_v31  ;;  %v2097_v18 = vsel %vm2085_vm7, %v2064_v19, %v4980_v54  ;;  %v832_v15 = vld [vmem:[#allocation2 + $0x18a] sm:$0xff]  ;;  %v6806_v54 = vld [vmem:[#allocation2 + $0x198] sm:$0xff]  ;;  %v6808_v31 = vld [vmem:[#allocation2 + $0x1a0] sm:$0xff] }
  0xff   : > { %v4998_v41 = vpop.permute.xlu1 %4997  ;;  %v2061_v44 = vsel %vm2052_vm6, %v2028_v46, %v4964_v40  ;;  %v2128_v1 = vsel %vm2118_vm8, %v2095_v30, %v4985_v48  ;;  %v2130_v32 = vsel %vm2118_vm8, %v2097_v18, %v4990_v58  ;;  %v767_v46 = vld [vmem:[#allocation2 + $0x180] sm:$0xff]  ;;  %v655_v58 = vld [vmem:[#allocation2 + $0xa8] sm:$0xff]  ;;  %v6818_v10 = vpack.i.bf16 %v832_v15, %v831_v51 }
 0x100   : > { %v4993_v9 = vpop.permute.xlu0 %4992  ;;  %v2094_v26 = vsel %vm2085_vm7, %v2061_v44, %v4974_v25  ;;  %v5000_v5 = vunpack.i.h.bf16 %v4998_v41  ;;  %v4999_v28 = vunpack.i.l.bf16 %v4998_v41  ;;  %v6804_v44 = vpack.i.bf16 %v768_v34, %v767_v46 }
 0x101   : > { %5287 = vrot.lane.b32.xlu1 %v6698_v23, %s8024_s26  ;;  %v4995_v52 = vunpack.i.h.bf16 %v4993_v9  ;;  %v4994_v43 = vunpack.i.l.bf16 %v4993_v9 }
 0x102   : > { %5282 = vrot.lane.b32.xlu0 %v6640_v47, %s8024_s26  ;;  %v2127_v47 = vsel %vm2118_vm8, %v2094_v26, %v4984_v49  ;;  %v2163_v22 = vsel %vm2151_vm9, %v2130_v32, %v5000_v5  ;;  %v799_v49 = vld [vmem:[#allocation2 + $0x181] sm:$0xff] }
 0x103   : > { %v6740_v33 = vpop.permute.xlu1 %5007  ;;  %v2160_v17 = vsel %vm2151_vm9, %v2127_v47, %v4994_v43  ;;  %v2161_v55 = vsel %vm2151_vm9, %v2128_v1, %v4995_v52  ;;  %v653_v1 = vld [vmem:[#allocation2 + $0x90] sm:$0xff]  ;;  %v6816_v5 = vpack.i.bf16 %v800_v50, %v799_v49 }
 0x104   : > { %v5003_v61 = vpop.permute.xlu0 %5002  ;;  %v5010_v26 = vunpack.i.h.bf16 %v6740_v33  ;;  %v5009_v30 = vunpack.i.l.bf16 %v6740_v33  ;;  %v5386_v33 = vpack.i.bf16 %v6808_v31, %v6806_v54 }
 0x105   : > { %v5005_v3 = vunpack.i.h.bf16 %v5003_v61  ;;  %v5004_v4 = vunpack.i.l.bf16 %v5003_v61  ;;  %5297 = vrot.lane.b32.xlu1 %v6700_v16, %s8025_s18 }
 0x106   : > { %5292 = vrot.lane.b32.xlu0 %v6662_v56, %s8025_s18  ;;  %v2129_v56 = vsel %vm2118_vm8, %v2096_v24, %v4989_v59  ;;  %v656_v59 = vld [vmem:[#allocation2 + $0xb0] sm:$0xff]  ;;  %v1966_v24 = vsel %vm552_vm0, %v653_v1, %v5009_v30 }
 0x107   : > { %v2193_v20 = vsel %vm2184_vm10, %v2160_v17, %v5004_v4  ;;  %v2194_v53 = vsel %vm2184_vm10, %v2161_v55, %v5005_v3  ;;  %v6758_v21 = vpop.permute.xlu1 %5017  ;;  %v2162_v36 = vsel %vm2151_vm9, %v2129_v56, %v4999_v28  ;;  %v654_v3 = vld [vmem:[#allocation2 + $0x98] sm:$0xff] }
 0x108   : > { %v5013_v27 = vpop.permute.xlu0 %5012  ;;  %v2221_v14 = vpack.c.bf16 %v2194_v53, %v2193_v20  ;;  %v5020_v52 = vunpack.i.h.bf16 %v6758_v21  ;;  %v5019_v43 = vunpack.i.l.bf16 %v6758_v21  ;;  %v1967_v21 = vsel %vm552_vm0, %v654_v3, %v5010_v26 }
 0x109   : > { %v5015_v6 = vunpack.i.h.bf16 %v5013_v27  ;;  %v5014_v35 = vunpack.i.l.bf16 %v5013_v27  ;;  %5307 = vrot.lane.b32.xlu1 %v6704_v29, %s8026_s3 }
 0x10a   : > { %5302 = vrot.lane.b32.xlu0 %v6686_v7, %s8026_s3  ;;  %4601 = vmatprep.mubr.msk.bf16.mxu0 %vm2248_vm11, %v2221_v14  ;;  %v925_v7 = vld [vmem:[#allocation2 + $0x172] sm:$0xff]  ;;  %v1969_v19 = vsel %vm552_vm0, %v656_v59, %v5020_v52  ;;  %v897_v59 = vld [vmem:[#allocation2 + $0x1a1] sm:$0xff] }
 0x10b   : > { %v2196_v37 = vsel %vm2184_vm10, %v2163_v22, %v5015_v6  ;;  %v2195_v12 = vsel %vm2184_vm10, %v2162_v36, %v5014_v35  ;;  %v5028_v13 = vpop.permute.xlu1 %5027  ;;  %v6786_v42 = vpack.i.bf16 %v925_v7, %v924_v63 }
 0x10c   : > { %v5023_v38 = vpop.permute.xlu0 %5022  ;;  %v2222_v40 = vpack.c.bf16 %v2196_v37, %v2195_v12  ;;  %v5030_v61 = vunpack.i.h.bf16 %v5028_v13  ;;  %v5029_v47 = vunpack.i.l.bf16 %v5028_v13 }
 0x10d   : > { %5317 = vrot.lane.b32.xlu1 %v6762_v45, %s8027_s30  ;;  %v5025_v4 = vunpack.i.h.bf16 %v5023_v38  ;;  %v5024_v39 = vunpack.i.l.bf16 %v5023_v38 }
 0x10e   : > { %5312 = vrot.lane.b32.xlu0 %v6698_v23, %s8027_s30  ;;  %4602 = vmatmul.mubr.msk.bf16.gmra.mrb[8].mxu0 %vm2248_vm11, %v2222_v40  ;;  %v2002_v27 = vsel %vm1986_vm4, %v1969_v19, %v5030_v61 }
 0x10f   : > { %v5038_v41 = vpop.permute.xlu1 %5037  ;;  %v2000_v14 = vsel %vm1986_vm4, %v1967_v21, %v5025_v4  ;;  %v1999_v56 = vsel %vm1986_vm4, %v1966_v24, %v5024_v39 }
 0x110   : > { %v6780_v62 = vpop.permute.xlu0 %5032  ;;  %v5040_v28 = vunpack.i.h.bf16 %v5038_v41  ;;  %v5039_v17 = vunpack.i.l.bf16 %v5038_v41 }
 0x111   : > { %5327 = vrot.lane.b32.xlu1 %v6698_v23, %s8021_s19  ;;  %v5035_v20 = vunpack.i.h.bf16 %v6780_v62  ;;  %v5034_v53 = vunpack.i.l.bf16 %v6780_v62 }
 0x112   : > { %5322 = vrot.lane.b32.xlu0 %v6700_v16, %s8028_s23  ;;  %v2035_v22 = vsel %vm2019_vm5, %v2002_v27, %v5040_v28 }
 0x113   : > { %v6788_v25 = vpop.permute.xlu1 %5047  ;;  %v2033_v38 = vsel %vm2019_vm5, %v2000_v14, %v5035_v20 }
 0x114   : > { %v6790_v9 = vpop.permute.xlu0 %5042  ;;  %v5050_v63 = vunpack.i.h.bf16 %v6788_v25  ;;  %v5049_v7 = vunpack.i.l.bf16 %v6788_v25 }
 0x115   : > { %5337 = vrot.lane.b32.xlu1 %v6762_v45, %s8021_s19  ;;  %v5045_v32 = vunpack.i.h.bf16 %v6790_v9  ;;  %v5044_v6 = vunpack.i.l.bf16 %v6790_v9  ;;  %s6005_s19 = smov 32  }
 0x116   : > { %5332 = vrot.lane.b32.xlu0 %v6786_v42, %s8028_s23  ;;  %v2068_v39 = vsel %vm2052_vm6, %v2035_v22, %v5050_v63  ;;  %v659_v63 = vld [vmem:[#allocation2 + $0xd8] sm:$0xff] }
 0x117   : > { %v6796_v48 = vpop.permute.xlu1 %5057  ;;  %v2066_v34 = vsel %vm2052_vm6, %v2033_v38, %v5045_v32  ;;  %v929_v32 = vld [vmem:[#allocation2 + $0x1a2] sm:$0xff] }
 0x118   : > { %v6798_v23 = vpop.permute.xlu0 %5052  ;;  %v5059_v49 = vunpack.i.l.bf16 %v6796_v48 }
 0x119   : > { %5347 = vrot.lane.b32.xlu1 %v6786_v42, %s8022_s28  ;;  %v5055_v37 = vunpack.i.h.bf16 %v6798_v23  ;;  %v5054_v12 = vunpack.i.l.bf16 %v6798_v23  ;;  %v5060_v23 = vunpack.i.h.bf16 %v6796_v48  ;;  %v896_v48 = vld [vmem:[#allocation2 + $0x199] sm:$0xff] }
 0x11a   : > { %5342 = vrot.lane.b32.xlu0 %v6700_v16, %s8022_s28  ;;  %v1968_v16 = vsel %vm552_vm0, %v655_v58, %v5019_v43  ;;  %s8031_s28 = smov 64  }
 0x11b   : > { %v6814_v2 = vpop.permute.xlu1 %5067  ;;  %v2001_v18 = vsel %vm1986_vm4, %v1968_v16, %v5029_v47  ;;  %v2099_v52 = vsel %vm2085_vm7, %v2066_v34, %v5055_v37  ;;  %v2101_v19 = vsel %vm2085_vm7, %v2068_v39, %v5060_v23  ;;  %v658_v34 = vld [vmem:[#allocation2 + $0xc8] sm:$0xff] }
 0x11c   : > { %v5063_v55 = vpop.permute.xlu0 %5062  ;;  %v2034_v36 = vsel %vm2019_vm5, %v2001_v18, %v5039_v17  ;;  %v5070_v25 = vunpack.i.h.bf16 %v6814_v2  ;;  %v5069_v43 = vunpack.i.l.bf16 %v6814_v2 }
 0x11d   : > { %5357 = vrot.lane.b32.xlu1 %v6804_v44, %s8023_s20  ;;  %v5065_v40 = vunpack.i.h.bf16 %v5063_v55  ;;  %v5064_v41 = vunpack.i.l.bf16 %v5063_v55  ;;  %v2067_v4 = vsel %vm2052_vm6, %v2034_v36, %v5049_v7  ;;  %v660_v7 = vld [vmem:[#allocation2 + $0xe0] sm:$0xff] }
 0x11e   : > { %5352 = vrot.lane.b32.xlu0 %v6704_v29, %s8023_s20  ;;  %v2032_v29 = vsel %vm2019_vm5, %v1999_v56, %v5034_v53  ;;  %v2100_v55 = vsel %vm2085_vm7, %v2067_v4, %v5059_v49  ;;  %v5396_v53 = vpack.i.bf16 %v897_v59, %v896_v48  ;;  %v928_v56 = vld [vmem:[#allocation2 + $0x19a] sm:$0xff]  ;;  %s8034_s20 = smov 112  }
 0x11f   : > { %v5078_v35 = vpop.permute.xlu1 %5077  ;;  %v2065_v46 = vsel %vm2052_vm6, %v2032_v29, %v5044_v6  ;;  %v2132_v26 = vsel %vm2118_vm8, %v2099_v52, %v5065_v40  ;;  %v2133_v21 = vsel %vm2118_vm8, %v2100_v55, %v5069_v43  ;;  %v5406_v54 = vpack.i.bf16 %v929_v32, %v928_v56 }
 0x120   : > { %v5073_v13 = vpop.permute.xlu0 %5072  ;;  %v2098_v51 = vsel %vm2085_vm7, %v2065_v46, %v5054_v12  ;;  %v5080_v61 = vunpack.i.h.bf16 %v5078_v35  ;;  %v5079_v47 = vunpack.i.l.bf16 %v5078_v35  ;;  %v657_v46 = vld [vmem:[#allocation2 + $0xc0] sm:$0xff] }
 0x121   : > { %5367 = vrot.lane.b32.xlu1 %v6816_v5, %s8024_s26  ;;  %v5075_v62 = vunpack.i.h.bf16 %v5073_v13  ;;  %v5074_v9 = vunpack.i.l.bf16 %v5073_v13 }
 0x122   : > { %5362 = vrot.lane.b32.xlu0 %v6762_v45, %s8024_s26  ;;  %v2131_v45 = vsel %vm2118_vm8, %v2098_v51, %v5064_v41  ;;  %v2166_v27 = vsel %vm2151_vm9, %v2133_v21, %v5079_v47  ;;  %s6006_s26 = smov 16  }
 0x123   : > { %v6854_v50 = vpop.permute.xlu1 %5087  ;;  %v2164_v1 = vsel %vm2151_vm9, %v2131_v45, %v5074_v9  ;;  %v2165_v3 = vsel %vm2151_vm9, %v2132_v26, %v5075_v62 }
 0x124   : > { %v5083_v15 = vpop.permute.xlu0 %5082  ;;  %v5090_v41 = vunpack.i.h.bf16 %v6854_v50 }
 0x125   : > { %v5085_v30 = vunpack.i.h.bf16 %v5083_v15  ;;  %v5084_v58 = vunpack.i.l.bf16 %v5083_v15  ;;  %5377 = vrot.lane.b32.xlu1 %v6818_v10, %s8025_s18 }
 0x126   : > { %5372 = vrot.lane.b32.xlu0 %v6786_v42, %s8025_s18  ;;  %v2134_v42 = vsel %vm2118_vm8, %v2101_v19, %v5070_v25  ;;  %s8003_s18 = smov 112  }
 0x127   : > { %v2197_v2 = vsel %vm2184_vm10, %v2164_v1, %v5084_v58  ;;  %v2198_v28 = vsel %vm2184_vm10, %v2165_v3, %v5085_v30  ;;  %v5098_v17 = vpop.permute.xlu1 %5097  ;;  %v2167_v14 = vsel %vm2151_vm9, %v2134_v42, %v5080_v61 }
 0x128   : > { %v5093_v16 = vpop.permute.xlu0 %5092  ;;  %v2223_v20 = vpack.c.bf16 %v2198_v28, %v2197_v2  ;;  %v5100_v38 = vunpack.i.h.bf16 %v5098_v17  ;;  %v5099_v40 = vunpack.i.l.bf16 %v5098_v17 }
 0x129   : > { %v5095_v24 = vunpack.i.h.bf16 %v5093_v16  ;;  %v5094_v18 = vunpack.i.l.bf16 %v5093_v16  ;;  %5387 = vrot.lane.b32.xlu1 %v5386_v33, %s8026_s3 }
 0x12a   : > { %5382 = vrot.lane.b32.xlu0 %v6804_v44, %s8026_s3  ;;  %4605 = vmatprep.mubr.msk.bf16.mxu0 %vm2248_vm11, %v2223_v20  ;;  %v1973_v43 = vsel %vm552_vm0, %v660_v7, %v5100_v38  ;;  %v1972_v15 = vsel %vm552_vm0, %v659_v63, %v5099_v40  ;;  %s8032_s3 = smov 48  }
 0x12b   : > { %v2200_v6 = vsel %vm2184_vm10, %v2167_v14, %v5095_v24  ;;  %v2199_v35 = vsel %vm2184_vm10, %v2166_v27, %v5094_v18  ;;  %v5108_v36 = vpop.permute.xlu1 %5107 }
 0x12c   : > { %v5103_v22 = vpop.permute.xlu0 %5102  ;;  %v2224_v37 = vpack.c.bf16 %v2200_v6, %v2199_v35  ;;  %v5110_v62 = vunpack.i.h.bf16 %v5108_v36  ;;  %v5109_v9 = vunpack.i.l.bf16 %v5108_v36 }
 0x12d   : > { %5397 = vrot.lane.b32.xlu1 %v5396_v53, %s8027_s30  ;;  %v5105_v23 = vunpack.i.h.bf16 %v5103_v22 }
 0x12e   : > { %5392 = vrot.lane.b32.xlu0 %v6816_v5, %s8027_s30  ;;  %4606 = vmatmul.mubr.msk.bf16.gmra.mrb[12].mxu0 %vm2248_vm11, %v2224_v37  ;;  %v5089_v5 = vunpack.i.l.bf16 %v6854_v50  ;;  %v1971_v50 = vsel %vm552_vm0, %v658_v34, %v5090_v41  ;;  %v2005_v58 = vsel %vm1986_vm4, %v1972_v15, %v5109_v9  ;;  %v2006_v48 = vsel %vm1986_vm4, %v1973_v43, %v5110_v62  ;;  %s8001_s30 = smov 96  }
 0x12f   : > { %v5118_v44 = vpop.permute.xlu1 %5117  ;;  %v2004_v59 = vsel %vm1986_vm4, %v1971_v50, %v5105_v23 }
 0x130   : > { %v5113_v31 = vpop.permute.xlu0 %5112  ;;  %v5120_v51 = vunpack.i.h.bf16 %v5118_v44  ;;  %v5119_v52 = vunpack.i.l.bf16 %v5118_v44  ;;  %v1970_v30 = vsel %vm552_vm0, %v657_v46, %v5089_v5 }
 0x131   : > { %5407 = vrot.lane.b32.xlu1 %v5406_v54, %s8028_s23  ;;  %v5115_v45 = vunpack.i.h.bf16 %v5113_v31  ;;  %v5114_v26 = vunpack.i.l.bf16 %v5113_v31 }
 0x132   : > { %5402 = vrot.lane.b32.xlu0 %v6818_v10, %s8028_s23  ;;  %v5104_v10 = vunpack.i.l.bf16 %v5103_v22  ;;  %v2038_v4 = vsel %vm2019_vm5, %v2005_v58, %v5119_v52  ;;  %v2039_v39 = vsel %vm2019_vm5, %v2006_v48, %v5120_v51  ;;  %s8007_s23 = smov 48  }
 0x133   : > { %v6894_v33 = vpop.permute.xlu1 %5127  ;;  %v2037_v19 = vsel %vm2019_vm5, %v2004_v59, %v5115_v45 }
 0x134   : > { %v5123_v12 = vpop.permute.xlu0 %5122  ;;  %v2003_v61 = vsel %vm1986_vm4, %v1970_v30, %v5104_v10  ;;  %v5130_v53 = vunpack.i.h.bf16 %v6894_v33  ;;  %v5129_v21 = vunpack.i.l.bf16 %v6894_v33 }
 0x135   : > { %v5125_v47 = vunpack.i.h.bf16 %v5123_v12  ;;  %v5124_v1 = vunpack.i.l.bf16 %v5123_v12  ;;  %v2036_v55 = vsel %vm2019_vm5, %v2003_v61, %v5114_v26 }
 0x136   : > { %v2071_v40 = vsel %vm2052_vm6, %v2038_v4, %v5129_v21  ;;  %v2072_v41 = vsel %vm2052_vm6, %v2039_v39, %v5130_v53 }
 0x137   : > { %v6896_v13 = vpop.permute.xlu1 %5137  ;;  %v2069_v18 = vsel %vm2052_vm6, %v2036_v55, %v5124_v1  ;;  %v2070_v27 = vsel %vm2052_vm6, %v2037_v19, %v5125_v47  ;;  %v661_v19 = vld [vmem:[#allocation2 + $0xf0] sm:$0xff] }
 0x138   : > { %v5133_v29 = vpop.permute.xlu0 %5132  ;;  %v5140_v14 = vunpack.i.h.bf16 %v6896_v13  ;;  %v5139_v56 = vunpack.i.l.bf16 %v6896_v13 }
 0x139   : > { %v5135_v2 = vunpack.i.h.bf16 %v5133_v29  ;;  %v5134_v28 = vunpack.i.l.bf16 %v5133_v29 }
 0x13a   : > { %v2104_v62 = vsel %vm2085_vm7, %v2071_v40, %v5139_v56  ;;  %v2105_v9 = vsel %vm2085_vm7, %v2072_v41, %v5140_v14 }
 0x13b   : > { %v5148_v49 = vpop.permute.xlu1 %5147  ;;  %v2102_v6 = vsel %vm2085_vm7, %v2069_v18, %v5134_v28  ;;  %v2103_v35 = vsel %vm2085_vm7, %v2070_v27, %v5135_v2  ;;  %v663_v2 = vld [vmem:[#allocation2 + $0x108] sm:$0xff]  ;;  %v664_v28 = vld [vmem:[#allocation2 + $0x110] sm:$0xff] }
 0x13c   : > { %v5143_v25 = vpop.permute.xlu0 %5142  ;;  %v5150_v36 = vunpack.i.h.bf16 %v5148_v49  ;;  %v5149_v22 = vunpack.i.l.bf16 %v5148_v49 }
 0x13d   : > { %v5145_v16 = vunpack.i.h.bf16 %v5143_v25  ;;  %v5144_v20 = vunpack.i.l.bf16 %v5143_v25 }
 0x13e   : > { %v2137_v23 = vsel %vm2118_vm8, %v2104_v62, %v5149_v22  ;;  %v2138_v10 = vsel %vm2118_vm8, %v2105_v9, %v5150_v36 }
 0x13f   : > { %v5158_v3 = vpop.permute.xlu1 %5157  ;;  %v2135_v54 = vsel %vm2118_vm8, %v2102_v6, %v5144_v20  ;;  %v2136_v44 = vsel %vm2118_vm8, %v2103_v35, %v5145_v16  ;;  %v662_v16 = vld [vmem:[#allocation2 + $0xf8] sm:$0xff] }
 0x140   : > { %v5153_v17 = vpop.permute.xlu0 %5152  ;;  %v5160_v12 = vunpack.i.h.bf16 %v5158_v3  ;;  %v5159_v29 = vunpack.i.l.bf16 %v5158_v3 }
 0x141   : > { %v5155_v42 = vunpack.i.h.bf16 %v5153_v17  ;;  %v5154_v24 = vunpack.i.l.bf16 %v5153_v17 }
 0x142   : > { %v2170_v52 = vsel %vm2151_vm9, %v2137_v23, %v5159_v29  ;;  %v2171_v25 = vsel %vm2151_vm9, %v2138_v10, %v5160_v12 }
 0x143   : > { %v6918_v32 = vpop.permute.xlu1 %5167  ;;  %v2168_v38 = vsel %vm2151_vm9, %v2135_v54, %v5154_v24  ;;  %v2169_v13 = vsel %vm2151_vm9, %v2136_v44, %v5155_v42 }
 0x144   : > { %v5163_v37 = vpop.permute.xlu0 %5162  ;;  %v5170_v4 = vunpack.i.h.bf16 %v6918_v32  ;;  %v5169_v39 = vunpack.i.l.bf16 %v6918_v32 }
 0x145   : > { %v5165_v31 = vunpack.i.h.bf16 %v5163_v37  ;;  %v5164_v33 = vunpack.i.l.bf16 %v5163_v37 }
 0x146   : > { %v1975_v32 = vsel %vm552_vm0, %v662_v16, %v5170_v4  ;;  %v1974_v35 = vsel %vm552_vm0, %v661_v19, %v5169_v39 }
 0x147   : > { %v2201_v5 = vsel %vm2184_vm10, %v2168_v38, %v5164_v33  ;;  %v2202_v63 = vsel %vm2184_vm10, %v2169_v13, %v5165_v31  ;;  %v5178_v7 = vpop.permute.xlu1 %5177 }
 0x148   : > { %v5173_v46 = vpop.permute.xlu0 %5172  ;;  %v2225_v34 = vpack.c.bf16 %v2202_v63, %v2201_v5  ;;  %v5180_v1 = vunpack.i.h.bf16 %v5178_v7  ;;  %v5179_v3 = vunpack.i.l.bf16 %v5178_v7 }
 0x149   : > { %v5175_v49 = vunpack.i.h.bf16 %v5173_v46  ;;  %v5174_v51 = vunpack.i.l.bf16 %v5173_v46 }
 0x14a   : > { %4609 = vmatprep.mubr.msk.bf16.mxu0 %vm2248_vm11, %v2225_v34  ;;  %v1977_v27 = vsel %vm552_vm0, %v664_v28, %v5180_v1  ;;  %v1976_v14 = vsel %vm552_vm0, %v663_v2, %v5179_v3 }
 0x14b   : > { %v2204_v43 = vsel %vm2184_vm10, %v2171_v25, %v5175_v49  ;;  %v2203_v15 = vsel %vm2184_vm10, %v2170_v52, %v5174_v51  ;;  %v5188_v45 = vpop.permute.xlu1 %5187 }
 0x14c   : > { %v5183_v26 = vpop.permute.xlu0 %5182  ;;  %v2226_v50 = vpack.c.bf16 %v2204_v43, %v2203_v15  ;;  %v5190_v17 = vunpack.i.h.bf16 %v5188_v45  ;;  %v5189_v55 = vunpack.i.l.bf16 %v5188_v45 }
 0x14d   : > { %v5185_v20 = vunpack.i.h.bf16 %v5183_v26  ;;  %v5184_v53 = vunpack.i.l.bf16 %v5183_v26 }
 0x14e   : > { %4610 = vmatmul.mubr.msk.bf16.gmra.mrb[16].mxu0 %vm2248_vm11, %v2226_v50  ;;  %v2009_v36 = vsel %vm1986_vm4, %v1976_v14, %v5189_v55  ;;  %v2010_v22 = vsel %vm1986_vm4, %v1977_v27, %v5190_v17 }
 0x14f   : > { %v5198_v30 = vpop.permute.xlu1 %5197  ;;  %v2008_v37 = vsel %vm1986_vm4, %v1975_v32, %v5185_v20  ;;  %v2007_v54 = vsel %vm1986_vm4, %v1974_v35, %v5184_v53 }
 0x150   : > { %v5193_v58 = vpop.permute.xlu0 %5192  ;;  %v5200_v42 = vunpack.i.h.bf16 %v5198_v30  ;;  %v5199_v24 = vunpack.i.l.bf16 %v5198_v30 }
 0x151   : > { %v5195_v56 = vunpack.i.h.bf16 %v5193_v58  ;;  %v5194_v6 = vunpack.i.l.bf16 %v5193_v58 }
 0x152   : > { %v2042_v12 = vsel %vm2019_vm5, %v2009_v36, %v5199_v24  ;;  %v2043_v29 = vsel %vm2019_vm5, %v2010_v22, %v5200_v42 }
 0x153   : > { %v6940_v48 = vpop.permute.xlu1 %5207  ;;  %v2040_v41 = vsel %vm2019_vm5, %v2007_v54, %v5194_v6  ;;  %v2041_v5 = vsel %vm2019_vm5, %v2008_v37, %v5195_v56 }
 0x154   : > { %v5203_v59 = vpop.permute.xlu0 %5202  ;;  %v5210_v62 = vunpack.i.h.bf16 %v6940_v48  ;;  %v5209_v9 = vunpack.i.l.bf16 %v6940_v48 }
 0x155   : > { %v5205_v44 = vunpack.i.h.bf16 %v5203_v59  ;;  %v5204_v31 = vunpack.i.l.bf16 %v5203_v59 }
 0x156   : > { %v2075_v3 = vsel %vm2052_vm6, %v2042_v12, %v5209_v9  ;;  %v2076_v4 = vsel %vm2052_vm6, %v2043_v29, %v5210_v62 }
 0x157   : > { %v6942_v61 = vpop.permute.xlu1 %5217  ;;  %v2073_v23 = vsel %vm2052_vm6, %v2040_v41, %v5204_v31  ;;  %v2074_v10 = vsel %vm2052_vm6, %v2041_v5, %v5205_v44  ;;  %v666_v41 = vld [vmem:[#allocation2 + $0x128] sm:$0xff] }
 0x158   : > { %v5213_v47 = vpop.permute.xlu0 %5212  ;;  %v5220_v49 = vunpack.i.h.bf16 %v6942_v61  ;;  %v5219_v51 = vunpack.i.l.bf16 %v6942_v61 }
 0x159   : > { %v5215_v38 = vunpack.i.h.bf16 %v5213_v47  ;;  %v5214_v13 = vunpack.i.l.bf16 %v5213_v47 }
 0x15a   : > { %v2108_v17 = vsel %vm2085_vm7, %v2075_v3, %v5219_v51  ;;  %v2109_v55 = vsel %vm2085_vm7, %v2076_v4, %v5220_v49 }
 0x15b   : > { %v5228_v21 = vpop.permute.xlu1 %5227  ;;  %v2106_v25 = vsel %vm2085_vm7, %v2073_v23, %v5214_v13  ;;  %v2107_v43 = vsel %vm2085_vm7, %v2074_v10, %v5215_v38  ;;  %v5929_v10 = vld [vmem:[#allocation2 + $0x138] sm:$0xff] }
 0x15c   : > { %v5223_v18 = vpop.permute.xlu0 %5222  ;;  %v5230_v15 = vunpack.i.h.bf16 %v5228_v21  ;;  %v5229_v45 = vunpack.i.l.bf16 %v5228_v21 }
 0x15d   : > { %v5225_v63 = vunpack.i.h.bf16 %v5223_v18  ;;  %v5224_v7 = vunpack.i.l.bf16 %v5223_v18 }
 0x15e   : > { %v2141_v20 = vsel %vm2118_vm8, %v2108_v17, %v5229_v45  ;;  %v2142_v53 = vsel %vm2118_vm8, %v2109_v55, %v5230_v15 }
 0x15f   : > { %v5238_v33 = vpop.permute.xlu1 %5237  ;;  %v2139_v50 = vsel %vm2118_vm8, %v2106_v25, %v5224_v7  ;;  %v2140_v30 = vsel %vm2118_vm8, %v2107_v43, %v5225_v63 }
 0x160   : > { %v5233_v40 = vpop.permute.xlu0 %5232  ;;  %v5240_v59 = vunpack.i.h.bf16 %v5238_v33  ;;  %v5239_v47 = vunpack.i.l.bf16 %v5238_v33 }
 0x161   : > { %v5235_v46 = vunpack.i.h.bf16 %v5233_v40  ;;  %v5234_v34 = vunpack.i.l.bf16 %v5233_v40  ;;  %v665_v40 = vld [vmem:[#allocation2 + $0x120] sm:$0xff] }
 0x162   : > { %v2174_v24 = vsel %vm2151_vm9, %v2141_v20, %v5239_v47  ;;  %v2175_v18 = vsel %vm2151_vm9, %v2142_v53, %v5240_v59 }
 0x163   : > { %v6964_v52 = vpop.permute.xlu1 %5247  ;;  %v2172_v1 = vsel %vm2151_vm9, %v2139_v50, %v5234_v34  ;;  %v2173_v61 = vsel %vm2151_vm9, %v2140_v30, %v5235_v46  ;;  %v5928_v34 = vld [vmem:[#allocation2 + $0x140] sm:$0xff] }
 0x164   : > { %v5243_v26 = vpop.permute.xlu0 %5242  ;;  %v5250_v12 = vunpack.i.h.bf16 %v6964_v52  ;;  %v5249_v29 = vunpack.i.l.bf16 %v6964_v52 }
 0x165   : > { %v5245_v58 = vunpack.i.h.bf16 %v5243_v26  ;;  %v5244_v48 = vunpack.i.l.bf16 %v5243_v26 }
 0x166   : > { %v1979_v52 = vsel %vm552_vm0, %v666_v41, %v5250_v12  ;;  %v1978_v43 = vsel %vm552_vm0, %v665_v40, %v5249_v29 }
 0x167   : > { %v5258_v39 = vpop.permute.xlu1 %5257  ;;  %v2205_v2 = vsel %vm2184_vm10, %v2172_v1, %v5244_v48  ;;  %v2206_v28 = vsel %vm2184_vm10, %v2173_v61, %v5245_v58 }
 0x168   : > { %v5253_v19 = vpop.permute.xlu0 %5252  ;;  %v2227_v16 = vpack.c.bf16 %v2206_v28, %v2205_v2  ;;  %v5260_v31 = vunpack.i.h.bf16 %v5258_v39  ;;  %v5259_v33 = vunpack.i.l.bf16 %v5258_v39 }
 0x169   : > { %v5255_v21 = vunpack.i.h.bf16 %v5253_v19  ;;  %v5254_v42 = vunpack.i.l.bf16 %v5253_v19 }
 0x16a   : > { %4613 = vmatprep.mubr.msk.bf16.mxu1 %vm2248_vm11, %v2227_v16  ;;  %v1981_v23 = vsel %vm552_vm0, %v5928_v34, %v5260_v31  ;;  %v1980_v49 = vsel %vm552_vm0, %v5929_v10, %v5259_v33 }
 0x16b   : > { %v2208_v27 = vsel %vm2184_vm10, %v2175_v18, %v5255_v21  ;;  %v2207_v14 = vsel %vm2184_vm10, %v2174_v24, %v5254_v42  ;;  %v5268_v56 = vpop.permute.xlu1 %5267 }
 0x16c   : > { %v2228_v6 = vpack.c.bf16 %v2208_v27, %v2207_v14  ;;  %v5263_v32 = vpop.permute.xlu0 %5262  ;;  %v5270_v38 = vunpack.i.h.bf16 %v5268_v56  ;;  %v5269_v13 = vunpack.i.l.bf16 %v5268_v56 }
 0x16d   : > { %v5265_v5 = vunpack.i.h.bf16 %v5263_v32  ;;  %v5264_v63 = vunpack.i.l.bf16 %v5263_v32 }
 0x16e   : > { %4614 = vmatmul.mubr.msk.bf16.vlgmr.msra.gmra.mrb[0].mxu1 %vm2248_vm11, %v2228_v6  ;;  %v2013_v15 = vsel %vm1986_vm4, %v1980_v49, %v5269_v13  ;;  %v2014_v45 = vsel %vm1986_vm4, %v1981_v23, %v5270_v38 }
 0x16f   : > { %v5278_v35 = vpop.permute.xlu1 %5277  ;;  %v2012_v26 = vsel %vm1986_vm4, %v1979_v52, %v5265_v5  ;;  %v2011_v50 = vsel %vm1986_vm4, %v1978_v43, %v5264_v63 }
 0x170   : > { %v5273_v36 = vpop.permute.xlu0 %5272  ;;  %v5280_v62 = vunpack.i.h.bf16 %v5278_v35  ;;  %v5279_v9 = vunpack.i.l.bf16 %v5278_v35 }
 0x171   : > { %v5275_v51 = vunpack.i.h.bf16 %v5273_v36  ;;  %v5274_v25 = vunpack.i.l.bf16 %v5273_v36 }
 0x172   : > { %v2046_v59 = vsel %vm2019_vm5, %v2013_v15, %v5279_v9  ;;  %v2047_v47 = vsel %vm2019_vm5, %v2014_v45, %v5280_v62 }
 0x173   : > { %v6986_v22 = vpop.permute.xlu1 %5287  ;;  %v2044_v4 = vsel %vm2019_vm5, %v2011_v50, %v5274_v25  ;;  %v2045_v39 = vsel %vm2019_vm5, %v2012_v26, %v5275_v51 }
 0x174   : > { %v5283_v37 = vpop.permute.xlu0 %5282  ;;  %v5290_v17 = vunpack.i.h.bf16 %v6986_v22  ;;  %v5289_v55 = vunpack.i.l.bf16 %v6986_v22 }
 0x175   : > { %v5285_v30 = vunpack.i.h.bf16 %v5283_v37  ;;  %v5284_v58 = vunpack.i.l.bf16 %v5283_v37 }
 0x176   : > { %v2079_v33 = vsel %vm2052_vm6, %v2046_v59, %v5289_v55  ;;  %v2080_v12 = vsel %vm2052_vm6, %v2047_v47, %v5290_v17 }
 0x177   : > { %v6988_v54 = vpop.permute.xlu1 %5297  ;;  %v2077_v20 = vsel %vm2052_vm6, %v2044_v4, %v5284_v58  ;;  %v2078_v53 = vsel %vm2052_vm6, %v2045_v39, %v5285_v30 }
 0x178   : > { %v5293_v44 = vpop.permute.xlu0 %5292  ;;  %v5300_v21 = vunpack.i.h.bf16 %v6988_v54  ;;  %v5299_v42 = vunpack.i.l.bf16 %v6988_v54 }
 0x179   : > { %v5295_v1 = vunpack.i.h.bf16 %v5293_v44  ;;  %v5294_v61 = vunpack.i.l.bf16 %v5293_v44 }
 0x17a   : > { %v2112_v40 = vsel %vm2085_vm7, %v2079_v33, %v5299_v42  ;;  %v2113_v41 = vsel %vm2085_vm7, %v2080_v12, %v5300_v21 }
 0x17b   : > { %v5308_v7 = vpop.permute.xlu1 %5307  ;;  %v2110_v18 = vsel %vm2085_vm7, %v2077_v20, %v5294_v61  ;;  %v2111_v27 = vsel %vm2085_vm7, %v2078_v53, %v5295_v1 }
 0x17c   : > { %v5303_v46 = vpop.permute.xlu0 %5302  ;;  %v5310_v14 = vunpack.i.h.bf16 %v5308_v7  ;;  %v5309_v56 = vunpack.i.l.bf16 %v5308_v7 }
 0x17d   : > { %v5305_v2 = vunpack.i.h.bf16 %v5303_v46  ;;  %v5304_v28 = vunpack.i.l.bf16 %v5303_v46 }
 0x17e   : > { %v2145_v7 = vsel %vm2118_vm8, %v2112_v40, %v5309_v56  ;;  %v2146_v62 = vsel %vm2118_vm8, %v2113_v41, %v5310_v14 }
 0x17f   : > { %v5318_v48 = vpop.permute.xlu1 %5317  ;;  %v2143_v32 = vsel %vm2118_vm8, %v2110_v18, %v5304_v28  ;;  %v2144_v35 = vsel %vm2118_vm8, %v2111_v27, %v5305_v2 }
 0x180   : > { %v5313_v3 = vpop.permute.xlu0 %5312  ;;  %v5320_v37 = vunpack.i.h.bf16 %v5318_v48  ;;  %v5319_v44 = vunpack.i.l.bf16 %v5318_v48 }
 0x181   : > { %v5315_v19 = vunpack.i.h.bf16 %v5313_v3  ;;  %v5314_v16 = vunpack.i.l.bf16 %v5313_v3 }
 0x182   : > { %v2178_v34 = vsel %vm2151_vm9, %v2145_v7, %v5319_v44  ;;  %v2179_v23 = vsel %vm2151_vm9, %v2146_v62, %v5320_v37 }
 0x183   : > { %v5328_v24 = vpop.permute.xlu1 %5327  ;;  %v2176_v31 = vsel %vm2151_vm9, %v2143_v32, %v5314_v16  ;;  %v2177_v54 = vsel %vm2151_vm9, %v2144_v35, %v5315_v19 }
 0x184   : > { %v5323_v6 = vpop.permute.xlu0 %5322  ;;  %v5330_v45 = vunpack.i.h.bf16 %v5328_v24  ;;  %v5329_v26 = vunpack.i.l.bf16 %v5328_v24 }
 0x185   : > { %v5325_v36 = vunpack.i.h.bf16 %v5323_v6  ;;  %v5324_v22 = vunpack.i.l.bf16 %v5323_v6 }
 0x186   : > { %v1983_v3 = vsel %vm552_vm0, %v6674_v60, %v5330_v45  ;;  %v1982_v4 = vsel %vm552_vm0, %v6672_v57, %v5329_v26 }
 0x187   : > { %v2209_v29 = vsel %vm2184_vm10, %v2176_v31, %v5324_v22  ;;  %v2210_v38 = vsel %vm2184_vm10, %v2177_v54, %v5325_v36  ;;  %v5338_v13 = vpop.permute.xlu1 %5337 }
 0x188   : > { %v2229_v5 = vpack.c.bf16 %v2210_v38, %v2209_v29  ;;  %v5333_v63 = vpop.permute.xlu0 %5332  ;;  %v5340_v30 = vunpack.i.h.bf16 %v5338_v13  ;;  %v5339_v58 = vunpack.i.l.bf16 %v5338_v13 }
 0x189   : > { %v5335_v9 = vunpack.i.h.bf16 %v5333_v63  ;;  %v5334_v46 = vunpack.i.l.bf16 %v5333_v63  ;;  %v7055_v63 = vld [vmem:[%s8029_s4] ss:$0 sm:$0xff]  ;;  %s8009_s4 = smov 64  }
 0x18a   : > { %4617 = vmatprep.mubr.msk.bf16.mxu1 %vm2248_vm11, %v2229_v5  ;;  %v1985_v2 = vsel %vm552_vm0, %v6690_v11, %v5340_v30  ;;  %v1984_v28 = vsel %vm552_vm0, %v6688_v8, %v5339_v58  ;;  %vm3218_vm0 = vcmask 523264  }
 0x18b   : > { %v2212_v10 = vsel %vm2184_vm10, %v2179_v23, %v5335_v9  ;;  %v2211_v49 = vsel %vm2184_vm10, %v2178_v34, %v5334_v46  ;;  %v5348_v51 = vpop.permute.xlu1 %5347 }
 0x18c   : > { %v2230_v25 = vpack.c.bf16 %v2212_v10, %v2211_v49  ;;  %v5343_v52 = vpop.permute.xlu0 %5342  ;;  %v5350_v59 = vunpack.i.h.bf16 %v5348_v51  ;;  %v5349_v47 = vunpack.i.l.bf16 %v5348_v51 }
 0x18d   : > { %v5345_v1 = vunpack.i.h.bf16 %v5343_v52  ;;  %v5344_v61 = vunpack.i.l.bf16 %v5343_v52  ;;  %v7064_v52 = vld [vmem:[%s7972_s5] ss:$0 sm:$0xff] }
 0x18e   : > { %4618 = vmatmul.mubr.msk.bf16.gmra.mrb[4].mxu1 %vm2248_vm11, %v2230_v25  ;;  %v2017_v16 = vsel %vm1986_vm4, %v1984_v28, %v5349_v47  ;;  %v2018_v20 = vsel %vm1986_vm4, %v1985_v2, %v5350_v59 }
 0x18f   : > { %v5358_v43 = vpop.permute.xlu1 %5357  ;;  %v2016_v60 = vsel %vm1986_vm4, %v1983_v3, %v5345_v1  ;;  %v2015_v57 = vsel %vm1986_vm4, %v1982_v4, %v5344_v61  ;;  %vm6012_vm4 = vmmov 0  }
 0x190   : > { %v5353_v15 = vpop.permute.xlu0 %5352  ;;  %v5360_v17 = vunpack.i.h.bf16 %v5358_v43  ;;  %v5359_v55 = vunpack.i.l.bf16 %v5358_v43 }
 0x191   : > { %v5355_v53 = vunpack.i.h.bf16 %v5353_v15  ;;  %v5354_v21 = vunpack.i.l.bf16 %v5353_v15 }
 0x192   : > { %v2050_v56 = vsel %vm2019_vm5, %v2017_v16, %v5359_v55  ;;  %v2051_v6 = vsel %vm2019_vm5, %v2018_v20, %v5360_v17 }
 0x193   : > { %v5368_v50 = vpop.permute.xlu1 %5367  ;;  %v2048_v22 = vsel %vm2019_vm5, %v2015_v57, %v5354_v21  ;;  %v2049_v37 = vsel %vm2019_vm5, %v2016_v60, %v5355_v53  ;;  %vm4358_vm5 = vcmask 8192  }
 0x194   : > { %v5363_v48 = vpop.permute.xlu0 %5362  ;;  %v5370_v42 = vunpack.i.h.bf16 %v5368_v50  ;;  %v5369_v24 = vunpack.i.l.bf16 %v5368_v50 }
 0x195   : > { %v5365_v18 = vunpack.i.h.bf16 %v5363_v48  ;;  %v5364_v11 = vunpack.i.l.bf16 %v5363_v48 }
 0x196   : > { %v2083_v54 = vsel %vm2052_vm6, %v2050_v56, %v5369_v24  ;;  %v2084_v33 = vsel %vm2052_vm6, %v2051_v6, %v5370_v42 }
 0x197   : > { %v5378_v39 = vpop.permute.xlu1 %5377  ;;  %v2081_v38 = vsel %vm2052_vm6, %v2048_v22, %v5364_v11  ;;  %v2082_v13 = vsel %vm2052_vm6, %v2049_v37, %v5365_v18 }
 0x198   : > { %v5373_v19 = vpop.permute.xlu0 %5372  ;;  %v5380_v27 = vunpack.i.h.bf16 %v5378_v39  ;;  %v5379_v14 = vunpack.i.l.bf16 %v5378_v39 }
 0x199   : > { %v5375_v32 = vunpack.i.h.bf16 %v5373_v19  ;;  %v5374_v35 = vunpack.i.l.bf16 %v5373_v19 }
 0x19a   : > { %v2116_v40 = vsel %vm2085_vm7, %v2083_v54, %v5379_v14  ;;  %v2117_v41 = vsel %vm2085_vm7, %v2084_v33, %v5380_v27 }
 0x19b   : > { %v5388_v8 = vpop.permute.xlu1 %5387  ;;  %v2114_v7 = vsel %vm2085_vm7, %v2081_v38, %v5374_v35  ;;  %v2115_v62 = vsel %vm2085_vm7, %v2082_v13, %v5375_v32 }
 0x19c   : > { %v5383_v36 = vpop.permute.xlu0 %5382  ;;  %v5390_v44 = vunpack.i.h.bf16 %v5388_v8  ;;  %v5389_v31 = vunpack.i.l.bf16 %v5388_v8 }
 0x19d   : > { %v5385_v12 = vunpack.i.h.bf16 %v5383_v36  ;;  %v5384_v29 = vunpack.i.l.bf16 %v5383_v36 }
 0x19e   : > { %v2149_v23 = vsel %vm2118_vm8, %v2116_v40, %v5389_v31  ;;  %v2150_v10 = vsel %vm2118_vm8, %v2117_v41, %v5390_v44 }
 0x19f   : > { %v5398_v5 = vpop.permute.xlu1 %5397  ;;  %v2147_v43 = vsel %vm2118_vm8, %v2114_v7, %v5384_v29  ;;  %v2148_v15 = vsel %vm2118_vm8, %v2115_v62, %v5385_v12 }
 0x1a0   : > { %v5400_v9 = vunpack.i.h.bf16 %v5398_v5  ;;  %v5399_v46 = vunpack.i.l.bf16 %v5398_v5  ;;  %v5393_v34 = vpop.permute.xlu0 %5392 }
 0x1a1   : > { %v5395_v49 = vunpack.i.h.bf16 %v5393_v34  ;;  %v5394_v51 = vunpack.i.l.bf16 %v5393_v34  ;;  %v4595_v25 = vpop.f32.mrb[0].mxu0 }
 0x1a2   : > { %v2182_v45 = vsel %vm2151_vm9, %v2149_v23, %v5399_v46  ;;  %v2474_v26 = vmul.f32 %v4595_v25, %v7055_v63  ;;  %v2338_v50 = vpop.f32.mrb[1].mxu0  ;;  %v2183_v30 = vsel %vm2151_vm9, %v2150_v10, %v5400_v9 }
 0x1a3   : > { %v2180_v58 = vsel %vm2151_vm9, %v2147_v43, %v5394_v51  ;;  %v2181_v48 = vsel %vm2151_vm9, %v2148_v15, %v5395_v49  ;;  %v2472_v59 = vmul.f32 %v7055_v63, %v2338_v50  ;;  %v4596_v47 = vpop.f32.mrb[2].mxu0  ;;  %v5408_v1 = vpop.permute.xlu1 %5407 }
 0x1a4   : > { %v2513_v61 = vadd.f32 %v7064_v52, %v2474_v26  ;;  %v2475_v3 = vmul.f32 %v4596_v47, %v7055_v63  ;;  %v5410_v4 = vunpack.i.h.bf16 %v5408_v1  ;;  %v5409_v39 = vunpack.i.l.bf16 %v5408_v1  ;;  %v5403_v2 = vpop.permute.xlu0 %5402  ;;  %v2341_v28 = vpop.f32.mrb[3].mxu0 }
 0x1a5   : > { %v2511_v17 = vadd.f32 %v7064_v52, %v2472_v59  ;;  %v5405_v55 = vunpack.i.h.bf16 %v5403_v2  ;;  %v5404_v19 = vunpack.i.l.bf16 %v5403_v2  ;;  %v2473_v16 = vmul.f32 %v7055_v63, %v2341_v28 }
 0x1a6   : > { %v2545_v20 = vsub.f32 0.0, %v2513_v61  ;;  %v2514_v53 = vadd.f32 %v7064_v52, %v2475_v3  ;;  %v2215_v21 = vsel %vm2184_vm10, %v2182_v45, %v5409_v39  ;;  %v2216_v60 = vsel %vm2184_vm10, %v2183_v30, %v5410_v4 }
 0x1a7   : > { %v2543_v57 = vsub.f32 0.0, %v2511_v17  ;;  %v2232_v42 = vpack.c.bf16 %v2216_v60, %v2215_v21  ;;  %v2213_v24 = vsel %vm2184_vm10, %v2180_v58, %v5404_v19  ;;  %v2214_v18 = vsel %vm2184_vm10, %v2181_v48, %v5405_v55 }
 0x1a8   : > { %v2579_v11 = vmul.f32 1.442695, %v2545_v20  ;;  %v2546_v27 = vsub.f32 0.0, %v2514_v53  ;;  %v2231_v14 = vpack.c.bf16 %v2214_v18, %v2213_v24  ;;  %v2512_v8 = vadd.f32 %v7064_v52, %v2473_v16 }
 0x1a9   : > { %v2575_v56 = vmul.f32 1.442695, %v2543_v57 }
 0x1aa   : > { %5728 = vpow2.f32 %v2579_v11  ;;  %v2581_v6 = vmul.f32 1.442695, %v2546_v27  ;;  %v2544_v32 = vsub.f32 0.0, %v2512_v8  ;;  %4621 = vmatprep.mubr.msk.bf16.mxu1 %vm2248_vm11, %v2231_v14 }
 0x1ab   : > { %5730 = vpow2.f32 %v2575_v56  ;;  %4622 = vmatmul.mubr.msk.bf16.gmra.mrb[8].mxu1 %vm2248_vm11, %v2232_v42 }
 0x1ac   : > { %5732 = vpow2.f32 %v2581_v6  ;;  %v2577_v35 = vmul.f32 1.442695, %v2544_v32 }
 0x1ae   : > { %5734 = vpow2.f32 %v2577_v35 }
 0x1b4   : > { %v5729_v36 = vpop.eup %5728 }
 0x1b5   : > { %v5731_v22 = vpop.eup %5730  ;;  %v2641_v37 = vadd.f32 1.0, %v5729_v36 }
 0x1b6   : > { %v5733_v44 = vpop.eup %5732  ;;  %v2639_v31 = vadd.f32 1.0, %v5731_v22 }
 0x1b7   : > { %5736 = vrcp.f32 %v2641_v37  ;;  %v2642_v54 = vadd.f32 1.0, %v5733_v44 }
 0x1b8   : > { %v5735_v33 = vpop.eup %5734  ;;  %5738 = vrcp.f32 %v2639_v31 }
 0x1b9   : > { %5740 = vrcp.f32 %v2642_v54  ;;  %v2640_v12 = vadd.f32 1.0, %v5735_v33 }
 0x1bb   : > { %5742 = vrcp.f32 %v2640_v12 }
 0x1c1   : > { %v5737_v29 = vpop.eup %5736  ;;  %v4599_v38 = vpop.f32.mrb[4].mxu0 }
 0x1c2   : > { %v5739_v13 = vpop.eup %5738  ;;  %v2478_v40 = vmul.f32 %v4599_v38, %v7055_v63  ;;  %v2354_v41 = vpop.f32.mrb[5].mxu0  ;;  %v7088_v9 = vmul.f32 %v5737_v29, %v2513_v61 }
 0x1c3   : > { %v5741_v5 = vpop.eup %5740  ;;  %v2476_v7 = vmul.f32 %v7055_v63, %v2354_v41  ;;  %v4600_v62 = vpop.f32.mrb[6].mxu0  ;;  %v7094_v51 = vmul.f32 %v5739_v13, %v2511_v17 }
 0x1c4   : > { %v7090_v46 = vmul.f32 %v5741_v5, %v2514_v53  ;;  %v2517_v34 = vadd.f32 %v7064_v52, %v2478_v40  ;;  %v2479_v23 = vmul.f32 %v4600_v62, %v7055_v63  ;;  %v2357_v10 = vpop.f32.mrb[7].mxu0 }
 0x1c5   : > { %v5743_v49 = vpop.eup %5742  ;;  %v2515_v25 = vadd.f32 %v7064_v52, %v2476_v7  ;;  %v2477_v43 = vmul.f32 %v7055_v63, %v2357_v10 }
 0x1c6   : > { %v2744_v15 = vpack.c.bf16 %v7090_v46, %v7088_v9  ;;  %v7100_v45 = vmul.f32 %v5743_v49, %v2512_v8  ;;  %v2549_v26 = vsub.f32 0.0, %v2517_v34  ;;  %v2518_v50 = vadd.f32 %v7064_v52, %v2479_v23 }
 0x1c7   : > { %v2547_v30 = vsub.f32 0.0, %v2515_v25  ;;  %v2516_v58 = vadd.f32 %v7064_v52, %v2477_v43 }
 0x1c8   : > { %v2743_v48 = vpack.c.bf16 %v7100_v45, %v7094_v51  ;;  %v2587_v59 = vmul.f32 1.442695, %v2549_v26  ;;  %v2550_v47 = vsub.f32 0.0, %v2518_v50 }
 0x1c9   : > { %v2583_v1 = vmul.f32 1.442695, %v2547_v30  ;;  %v2548_v61 = vsub.f32 0.0, %v2516_v58 }
 0x1ca   : > { %5744 = vpow2.f32 %v2587_v59  ;;  %v2589_v3 = vmul.f32 1.442695, %v2550_v47 }
 0x1cb   : > { %5746 = vpow2.f32 %v2583_v1  ;;  %v2585_v4 = vmul.f32 1.442695, %v2548_v61 }
 0x1cc   : > { %5748 = vpow2.f32 %v2589_v3 }
 0x1cd   : > { %5750 = vpow2.f32 %v2585_v4 }
 0x1d4   : > { %v5745_v39 = vpop.eup %5744 }
 0x1d5   : > { %v5747_v2 = vpop.eup %5746  ;;  %v2645_v28 = vadd.f32 1.0, %v5745_v39 }
 0x1d6   : > { %v5749_v17 = vpop.eup %5748  ;;  %v2643_v55 = vadd.f32 1.0, %v5747_v2 }
 0x1d7   : > { %v5751_v19 = vpop.eup %5750  ;;  %5752 = vrcp.f32 %v2645_v28  ;;  %v2646_v16 = vadd.f32 1.0, %v5749_v17 }
 0x1d8   : > { %5754 = vrcp.f32 %v2643_v55  ;;  %v2644_v20 = vadd.f32 1.0, %v5751_v19 }
 0x1d9   : > { %5756 = vrcp.f32 %v2646_v16 }
 0x1da   : > { %5758 = vrcp.f32 %v2644_v20 }
 0x1e1   : > { %v5753_v53 = vpop.eup %5752  ;;  %v4603_v21 = vpop.f32.mrb[8].mxu0 }
 0x1e2   : > { %v5755_v60 = vpop.eup %5754  ;;  %v2482_v57 = vmul.f32 %v4603_v21, %v7055_v63  ;;  %v2370_v42 = vpop.f32.mrb[9].mxu0  ;;  %v7108_v14 = vmul.f32 %v5753_v53, %v2517_v34 }
 0x1e3   : > { %v5757_v24 = vpop.eup %5756  ;;  %v2480_v18 = vmul.f32 %v7055_v63, %v2370_v42  ;;  %v4604_v11 = vpop.f32.mrb[10].mxu0  ;;  %v7114_v35 = vmul.f32 %v5755_v60, %v2515_v25 }
 0x1e4   : > { %v5759_v27 = vpop.eup %5758  ;;  %v7110_v8 = vmul.f32 %v5757_v24, %v2518_v50  ;;  %v2521_v56 = vadd.f32 %v7064_v52, %v2482_v57  ;;  %v2483_v6 = vmul.f32 %v4604_v11, %v7055_v63  ;;  %v2373_v32 = vpop.f32.mrb[11].mxu0 }
 0x1e5   : > { %v7116_v36 = vmul.f32 %v5759_v27, %v2516_v58  ;;  %v2519_v22 = vadd.f32 %v7064_v52, %v2480_v18  ;;  %v2481_v37 = vmul.f32 %v7055_v63, %v2373_v32 }
 0x1e6   : > { %v2746_v44 = vpack.c.bf16 %v7110_v8, %v7108_v14  ;;  %v2553_v31 = vsub.f32 0.0, %v2521_v56  ;;  %v2522_v54 = vadd.f32 %v7064_v52, %v2483_v6 }
 0x1e7   : > { %v2745_v33 = vpack.c.bf16 %v7116_v36, %v7114_v35  ;;  %v2551_v12 = vsub.f32 0.0, %v2519_v22  ;;  %v2520_v29 = vadd.f32 %v7064_v52, %v2481_v37 }
 0x1e8   : > { %v2595_v38 = vmul.f32 1.442695, %v2553_v31  ;;  %v2554_v13 = vsub.f32 0.0, %v2522_v54 }
 0x1e9   : > { %v2591_v40 = vmul.f32 1.442695, %v2551_v12  ;;  %v2552_v41 = vsub.f32 0.0, %v2520_v29 }
 0x1ea   : > { %5760 = vpow2.f32 %v2595_v38  ;;  %v2597_v5 = vmul.f32 1.442695, %v2554_v13 }
 0x1eb   : > { %5762 = vpow2.f32 %v2591_v40  ;;  %v2593_v7 = vmul.f32 1.442695, %v2552_v41 }
 0x1ec   : > { %5764 = vpow2.f32 %v2597_v5 }
 0x1ed   : > { %5766 = vpow2.f32 %v2593_v7 }
 0x1f4   : > { %v5761_v62 = vpop.eup %5760 }
 0x1f5   : > { %v5763_v34 = vpop.eup %5762  ;;  %v2649_v23 = vadd.f32 1.0, %v5761_v62 }
 0x1f6   : > { %v5765_v10 = vpop.eup %5764  ;;  %v2647_v49 = vadd.f32 1.0, %v5763_v34 }
 0x1f7   : > { %v5767_v25 = vpop.eup %5766  ;;  %5768 = vrcp.f32 %v2649_v23  ;;  %v2650_v43 = vadd.f32 1.0, %v5765_v10 }
 0x1f8   : > { %5770 = vrcp.f32 %v2647_v49  ;;  %v2648_v26 = vadd.f32 1.0, %v5767_v25 }
 0x1f9   : > { %5772 = vrcp.f32 %v2650_v43 }
 0x1fa   : > { %5774 = vrcp.f32 %v2648_v26 }
 0x201   : > { %v5769_v50 = vpop.eup %5768  ;;  %v4607_v30 = vpop.f32.mrb[12].mxu0 }
 0x202   : > { %v5771_v58 = vpop.eup %5770  ;;  %v2486_v59 = vmul.f32 %v4607_v30, %v7055_v63  ;;  %v2386_v47 = vpop.f32.mrb[13].mxu0  ;;  %v7128_v39 = vmul.f32 %v5769_v50, %v2521_v56 }
 0x203   : > { %v5773_v1 = vpop.eup %5772  ;;  %v2484_v61 = vmul.f32 %v7055_v63, %v2386_v47  ;;  %v4608_v3 = vpop.f32.mrb[14].mxu0  ;;  %v7134_v19 = vmul.f32 %v5771_v58, %v2519_v22 }
 0x204   : > { %v5775_v4 = vpop.eup %5774  ;;  %v7130_v2 = vmul.f32 %v5773_v1, %v2522_v54  ;;  %v2525_v28 = vadd.f32 %v7064_v52, %v2486_v59  ;;  %v2487_v17 = vmul.f32 %v4608_v3, %v7055_v63  ;;  %v2389_v55 = vpop.f32.mrb[15].mxu0 }
 0x205   : > { %v7136_v16 = vmul.f32 %v5775_v4, %v2520_v29  ;;  %v2523_v20 = vadd.f32 %v7064_v52, %v2484_v61  ;;  %v2485_v53 = vmul.f32 %v7055_v63, %v2389_v55 }
 0x206   : > { %v2748_v21 = vpack.c.bf16 %v7130_v2, %v7128_v39  ;;  %v2557_v60 = vsub.f32 0.0, %v2525_v28  ;;  %v2526_v57 = vadd.f32 %v7064_v52, %v2487_v17 }
 0x207   : > { %v2747_v42 = vpack.c.bf16 %v7136_v16, %v7134_v19  ;;  %v2555_v24 = vsub.f32 0.0, %v2523_v20  ;;  %v2524_v18 = vadd.f32 %v7064_v52, %v2485_v53 }
 0x208   : > { %v2603_v11 = vmul.f32 1.442695, %v2557_v60  ;;  %v2558_v27 = vsub.f32 0.0, %v2526_v57 }
 0x209   : > { %v2599_v56 = vmul.f32 1.442695, %v2555_v24  ;;  %v2556_v6 = vsub.f32 0.0, %v2524_v18 }
 0x20a   : > { %5776 = vpow2.f32 %v2603_v11  ;;  %v2605_v32 = vmul.f32 1.442695, %v2558_v27  ;;  %v5695_v27 = vld [vmem:[%s8030_s1 + $0x4] ss:$8 sps:$4 sm:$0xff]  }
 0x20b   : > { %5778 = vpow2.f32 %v2599_v56  ;;  %v2601_v22 = vmul.f32 1.442695, %v2556_v6  ;;  %2831 = vmatprep.mubr.bf16.mxu1 %v5695_v27 }
 0x20c   : > { %5780 = vpow2.f32 %v2605_v32 }
 0x20d   : > { %5782 = vpow2.f32 %v2601_v22 }
 0x214   : > { %v5777_v37 = vpop.eup %5776 }
 0x215   : > { %v5779_v31 = vpop.eup %5778  ;;  %v2653_v54 = vadd.f32 1.0, %v5777_v37 }
 0x216   : > { %v5781_v12 = vpop.eup %5780  ;;  %v2651_v29 = vadd.f32 1.0, %v5779_v31 }
 0x217   : > { %v5783_v38 = vpop.eup %5782  ;;  %5784 = vrcp.f32 %v2653_v54  ;;  %v2654_v13 = vadd.f32 1.0, %v5781_v12 }
 0x218   : > { %5786 = vrcp.f32 %v2651_v29  ;;  %v2652_v40 = vadd.f32 1.0, %v5783_v38 }
 0x219   : > { %5788 = vrcp.f32 %v2654_v13 }
 0x21a   : > { %5790 = vrcp.f32 %v2652_v40 }
 0x221   : > { %v5785_v41 = vpop.eup %5784  ;;  %v4611_v5 = vpop.f32.mrb[16].mxu0 }
 0x222   : > { %v5787_v7 = vpop.eup %5786  ;;  %v2490_v62 = vmul.f32 %v4611_v5, %v7055_v63  ;;  %v2402_v34 = vpop.f32.mrb[17].mxu0  ;;  %v7148_v43 = vmul.f32 %v5785_v41, %v2525_v28 }
 0x223   : > { %v5789_v23 = vpop.eup %5788  ;;  %v2488_v10 = vmul.f32 %v7055_v63, %v2402_v34  ;;  %v4612_v49 = vpop.f32.mrb[18].mxu0  ;;  %v7154_v59 = vmul.f32 %v5787_v7, %v2523_v20 }
 0x224   : > { %v5791_v25 = vpop.eup %5790  ;;  %v7150_v26 = vmul.f32 %v5789_v23, %v2526_v57  ;;  %v2529_v50 = vadd.f32 %v7064_v52, %v2490_v62  ;;  %v2491_v30 = vmul.f32 %v4612_v49, %v7055_v63  ;;  %v2405_v58 = vpop.f32.mrb[19].mxu0 }
 0x225   : > { %v7156_v47 = vmul.f32 %v5791_v25, %v2524_v18  ;;  %v2527_v1 = vadd.f32 %v7064_v52, %v2488_v10  ;;  %v2489_v61 = vmul.f32 %v7055_v63, %v2405_v58 }
 0x226   : > { %v2750_v3 = vpack.c.bf16 %v7150_v26, %v7148_v43  ;;  %v2561_v4 = vsub.f32 0.0, %v2529_v50  ;;  %v2530_v28 = vadd.f32 %v7064_v52, %v2491_v30  ;;  %v5701_v43 = vld [vmem:[%s8030_s1 + $0x20] ss:$8 sps:$4 sm:$0xff]   ;;  %v5702_v26 = vld [vmem:[%s8030_s1 + $0x34] ss:$8 sps:$4 sm:$0xff]  }
 0x227   : > { %v2749_v17 = vpack.c.bf16 %v7156_v47, %v7154_v59  ;;  %v2559_v55 = vsub.f32 0.0, %v2527_v1  ;;  %v2528_v53 = vadd.f32 %v7064_v52, %v2489_v61  ;;  %v5698_v59 = vld [vmem:[%s8030_s1 + $0x10] ss:$8 sps:$4 sm:$0xff]   ;;  %v5699_v47 = vld [vmem:[%s8030_s1 + $0x24] ss:$8 sps:$4 sm:$0xff]  }
 0x228   : > { %v2611_v20 = vmul.f32 1.442695, %v2561_v4  ;;  %v2562_v60 = vsub.f32 0.0, %v2530_v28 }
 0x229   : > { %v2607_v57 = vmul.f32 1.442695, %v2559_v55  ;;  %v2560_v24 = vsub.f32 0.0, %v2528_v53 }
 0x22a   : > { %5792 = vpow2.f32 %v2611_v20  ;;  %v2613_v18 = vmul.f32 1.442695, %v2562_v60 }
 0x22b   : > { %5794 = vpow2.f32 %v2607_v57  ;;  %v2609_v11 = vmul.f32 1.442695, %v2560_v24 }
 0x22c   : > { %5796 = vpow2.f32 %v2613_v18 }
 0x22d   : > { %5798 = vpow2.f32 %v2609_v11 }
 0x234   : > { %v5793_v56 = vpop.eup %5792 }
 0x235   : > { %v5795_v6 = vpop.eup %5794  ;;  %v2657_v32 = vadd.f32 1.0, %v5793_v56 }
 0x236   : > { %v5797_v22 = vpop.eup %5796  ;;  %v2655_v37 = vadd.f32 1.0, %v5795_v6 }
 0x237   : > { %v5799_v31 = vpop.eup %5798  ;;  %5800 = vrcp.f32 %v2657_v32  ;;  %v2658_v54 = vadd.f32 1.0, %v5797_v22 }
 0x238   : > { %5802 = vrcp.f32 %v2655_v37  ;;  %v2656_v12 = vadd.f32 1.0, %v5799_v31 }
 0x239   : > { %5804 = vrcp.f32 %v2658_v54 }
 0x23a   : > { %5806 = vrcp.f32 %v2656_v12 }
 0x241   : > { %v5801_v29 = vpop.eup %5800  ;;  %v4615_v38 = vpop.f32.mrb[0].mxu1 }
 0x242   : > { %v5803_v13 = vpop.eup %5802  ;;  %v2494_v40 = vmul.f32 %v4615_v38, %v7055_v63  ;;  %v2418_v41 = vpop.f32.mrb[1].mxu1  ;;  %v2721_v23 = vmul.f32 %v5801_v29, %v2529_v50 }
 0x243   : > { %v5805_v5 = vpop.eup %5804  ;;  %v2492_v7 = vmul.f32 %v7055_v63, %v2418_v41  ;;  %v4616_v62 = vpop.f32.mrb[2].mxu1  ;;  %v2719_v58 = vmul.f32 %v5803_v13, %v2527_v1 }
 0x244   : > { %v5807_v34 = vpop.eup %5806  ;;  %v2722_v10 = vmul.f32 %v5805_v5, %v2530_v28  ;;  %v2533_v49 = vadd.f32 %v7064_v52, %v2494_v40  ;;  %v2495_v25 = vmul.f32 %v4616_v62, %v7055_v63  ;;  %v2421_v30 = vpop.f32.mrb[3].mxu1 }
 0x245   : > { %v2720_v61 = vmul.f32 %v5807_v34, %v2528_v53  ;;  %v2531_v4 = vadd.f32 %v7064_v52, %v2492_v7  ;;  %v2493_v55 = vmul.f32 %v7055_v63, %v2421_v30 }
 0x246   : > { %v2565_v20 = vsub.f32 0.0, %v2533_v49  ;;  %v2534_v60 = vadd.f32 %v7064_v52, %v2495_v25  ;;  %v2752_v57 = vpack.c.bf16 %v2722_v10, %v2721_v23 }
 0x247   : > { %v2563_v24 = vsub.f32 0.0, %v2531_v4  ;;  %v2532_v18 = vadd.f32 %v7064_v52, %v2493_v55  ;;  %v2751_v50 = vpack.c.bf16 %v2720_v61, %v2719_v58 }
 0x248   : > { %v2619_v28 = vmul.f32 1.442695, %v2565_v20  ;;  %v2566_v11 = vsub.f32 0.0, %v2534_v60 }
 0x249   : > { %v2615_v27 = vmul.f32 1.442695, %v2563_v24  ;;  %v2564_v56 = vsub.f32 0.0, %v2532_v18  ;;  %4522 = vmatprep.subr.bf16.mxu1 %v2751_v50 }
 0x24a   : > { %5808 = vpow2.f32 %v2619_v28  ;;  %v2621_v1 = vmul.f32 1.442695, %v2566_v11  ;;  %4523 = vmatpush3.bf16.msra.mxu1 %v2743_v48 }
 0x24b   : > { %5810 = vpow2.f32 %v2615_v27  ;;  %v2617_v53 = vmul.f32 1.442695, %v2564_v56  ;;  %4524 = vmatprep.subr.bf16.mxu1 %v2752_v57 }
 0x24c   : > { %5812 = vpow2.f32 %v2621_v1 }
 0x24d   : > { %5814 = vpow2.f32 %v2617_v53 }
 0x24e   : > { %4525 = vmatpush3.bf16.msra.mxu1 %v2744_v15 }
 0x254   : > { %v5809_v6 = vpop.eup %5808 }
 0x255   : > { %v5811_v32 = vpop.eup %5810  ;;  %v2661_v22 = vadd.f32 1.0, %v5809_v6 }
 0x256   : > { %v5813_v37 = vpop.eup %5812  ;;  %v2659_v31 = vadd.f32 1.0, %v5811_v32 }
 0x257   : > { %v5815_v54 = vpop.eup %5814  ;;  %5816 = vrcp.f32 %v2661_v22  ;;  %v2662_v12 = vadd.f32 1.0, %v5813_v37 }
 0x258   : > { %5818 = vrcp.f32 %v2659_v31  ;;  %v2660_v51 = vadd.f32 1.0, %v5815_v54 }
 0x259   : > { %5820 = vrcp.f32 %v2662_v12 }
 0x25a   : > { %5822 = vrcp.f32 %v2660_v51 }
 0x261   : > { %v5817_v45 = vpop.eup %5816  ;;  %v4619_v48 = vpop.f32.mrb[4].mxu1 }
 0x262   : > { %v5819_v29 = vpop.eup %5818  ;;  %v2498_v38 = vmul.f32 %v4619_v48, %v7055_v63  ;;  %v2434_v13 = vpop.f32.mrb[5].mxu1  ;;  %v2725_v41 = vmul.f32 %v5817_v45, %v2533_v49 }
 0x263   : > { %v5821_v9 = vpop.eup %5820  ;;  %v2496_v46 = vmul.f32 %v7055_v63, %v2434_v13  ;;  %v4620_v15 = vpop.f32.mrb[6].mxu1  ;;  %v2723_v23 = vmul.f32 %v5819_v29, %v2531_v4 }
 0x264   : > { %v5823_v40 = vpop.eup %5822  ;;  %v2726_v5 = vmul.f32 %v5821_v9, %v2534_v60  ;;  %v2537_v7 = vadd.f32 %v7064_v52, %v2498_v38  ;;  %v2499_v62 = vmul.f32 %v4620_v15, %v7055_v63  ;;  %v2437_v34 = vpop.f32.mrb[7].mxu1 }
 0x265   : > { %v2724_v10 = vmul.f32 %v5823_v40, %v2532_v18  ;;  %v2535_v25 = vadd.f32 %v7064_v52, %v2496_v46  ;;  %v2497_v30 = vmul.f32 %v7055_v63, %v2437_v34 }
 0x266   : > { %v2569_v58 = vsub.f32 0.0, %v2537_v7  ;;  %v2538_v61 = vadd.f32 %v7064_v52, %v2499_v62  ;;  %v2754_v55 = vpack.c.bf16 %v2726_v5, %v2725_v41 }
 0x267   : > { %v2567_v20 = vsub.f32 0.0, %v2535_v25  ;;  %v2536_v57 = vadd.f32 %v7064_v52, %v2497_v30  ;;  %v2753_v49 = vpack.c.bf16 %v2724_v10, %v2723_v23 }
 0x268   : > { %v2627_v60 = vmul.f32 1.442695, %v2569_v58  ;;  %v2570_v24 = vsub.f32 0.0, %v2538_v61 }
 0x269   : > { %v2623_v50 = vmul.f32 1.442695, %v2567_v20  ;;  %v2568_v28 = vsub.f32 0.0, %v2536_v57  ;;  %4526 = vmatprep.subr.bf16.mxu1 %v2753_v49 }
 0x26a   : > { %5824 = vpow2.f32 %v2627_v60  ;;  %v2629_v4 = vmul.f32 1.442695, %v2570_v24  ;;  %4527 = vmatpush3.bf16.msra.mxu1 %v2745_v33 }
 0x26b   : > { %5826 = vpow2.f32 %v2623_v50  ;;  %v2625_v18 = vmul.f32 1.442695, %v2568_v28  ;;  %4528 = vmatprep.subr.bf16.mxu1 %v2754_v55 }
 0x26c   : > { %5828 = vpow2.f32 %v2629_v4 }
 0x26d   : > { %5830 = vpow2.f32 %v2625_v18  ;;  %v5693_v18 = vld [vmem:[%s8030_s1] ss:$8 sps:$4 sm:$0xff]  }
 0x26e   : > { %4529 = vmatpush3.bf16.msra.mxu1 %v2746_v44 }
 0x274   : > { %v5825_v11 = vpop.eup %5824 }
 0x275   : > { %v5827_v27 = vpop.eup %5826  ;;  %v2665_v56 = vadd.f32 1.0, %v5825_v11  ;;  %v5696_v11 = vld [vmem:[%s8030_s1 + $0x14] ss:$8 sps:$4 sm:$0xff]  }
 0x276   : > { %v5829_v1 = vpop.eup %5828  ;;  %v2663_v53 = vadd.f32 1.0, %v5827_v27  ;;  %v7280_v27 = vld [vmem:[#allocation3 + $0x1] sm:$0xff] }
 0x277   : > { %v5831_v6 = vpop.eup %5830  ;;  %5832 = vrcp.f32 %v2665_v56  ;;  %v2666_v32 = vadd.f32 1.0, %v5829_v1  ;;  %v7284_v56 = vld [vmem:[#allocation3 + $0x91] sm:$0xff] }
 0x278   : > { %5834 = vrcp.f32 %v2663_v53  ;;  %v2664_v35 = vadd.f32 1.0, %v5831_v6  ;;  %v7286_v1 = vld [vmem:[#allocation3 + $0x90] sm:$0xff] }
 0x279   : > { %5836 = vrcp.f32 %v2666_v32  ;;  %v7288_v53 = vld [vmem:[#allocation3 + $0x92] sm:$0xff]  ;;  %v6004_v32 = vmov 0  }
 0x27a   : > { %5838 = vrcp.f32 %v2664_v35  ;;  %3515 = vst.msk [vmem:[#allocation3 + $0x90] sm:$0xff] %vm2864_vm12, %v5994_v0  ;;  %v5705_v6 = vld [vmem:[%s7973_s6] sm:$0xff]   ;;  %3969 = vmatprep.subr.bf16.mxu0 %v6004_v32  ;;  %v5706_v35 = vld [vmem:[%s7973_s6 + $0x8] sm:$0xff]  }
 0x27b   : > { %3516 = vst.msk [vmem:[#allocation3 + $0x98] sm:$0x3] %vm2866_vm13, %v5994_v0 }
 0x27e   : > { %v4623_v36 = vpop.f32.mrb[8].mxu1 }
 0x27f   : > { %v2502_v33 = vmul.f32 %v4623_v36, %v7055_v63  ;;  %v2450_v22 = vpop.f32.mrb[9].mxu1  ;;  %v5707_v36 = vld [vmem:[%s7973_s6 + $0x10] sm:$0xff]  }
 0x280   : > { %v2500_v37 = vmul.f32 %v7055_v63, %v2450_v22  ;;  %v4624_v14 = vpop.f32.mrb[10].mxu1  ;;  %v5709_v22 = vld [vmem:[%s7973_s6 + $0x20] sm:$0xff]  }
 0x281   : > { %v5833_v8 = vpop.eup %5832  ;;  %v2541_v44 = vadd.f32 %v7064_v52, %v2502_v33  ;;  %v2503_v31 = vmul.f32 %v4624_v14, %v7055_v63  ;;  %v2453_v54 = vpop.f32.mrb[11].mxu1  ;;  %v5708_v33 = vld [vmem:[%s7973_s6 + $0x18] sm:$0xff]  }
 0x282   : > { %v5835_v12 = vpop.eup %5834  ;;  %v2539_v51 = vadd.f32 %v7064_v52, %v2500_v37  ;;  %v2501_v45 = vmul.f32 %v7055_v63, %v2453_v54  ;;  %v2729_v9 = vmul.f32 %v5833_v8, %v2537_v7  ;;  %v7316_v8 = vld [vmem:[#allocation3] sm:$0xff]  ;;  %v5710_v54 = vld [vmem:[%s7973_s6 + $0x28] sm:$0xff]  }
 0x283   : > { %v5837_v48 = vpop.eup %5836  ;;  %v2573_v29 = vsub.f32 0.0, %v2541_v44  ;;  %v2542_v38 = vadd.f32 %v7064_v52, %v2503_v31  ;;  %v2727_v41 = vmul.f32 %v5835_v12, %v2535_v25 }
 0x284   : > { %v5839_v13 = vpop.eup %5838  ;;  %v2730_v46 = vmul.f32 %v5837_v48, %v2538_v61  ;;  %v2571_v15 = vsub.f32 0.0, %v2539_v51  ;;  %v2540_v40 = vadd.f32 %v7064_v52, %v2501_v45  ;;  %v5711_v45 = vld [vmem:[%s7973_s6 + $0x30] sm:$0xff]  }
 0x285   : > { %v2728_v5 = vmul.f32 %v5839_v13, %v2536_v57  ;;  %v2635_v62 = vmul.f32 1.442695, %v2573_v29  ;;  %v2574_v34 = vsub.f32 0.0, %v2542_v38 }
 0x286   : > { %v2631_v23 = vmul.f32 1.442695, %v2571_v15  ;;  %v2572_v10 = vsub.f32 0.0, %v2540_v40  ;;  %v2756_v30 = vpack.c.bf16 %v2730_v46, %v2729_v9  ;;  %v5712_v9 = vld [vmem:[%s7973_s6 + $0x38] sm:$0xff]  }
 0x287   : > { %5840 = vpow2.f32 %v2635_v62  ;;  %v2637_v58 = vmul.f32 1.442695, %v2574_v34  ;;  %v2755_v63 = vpack.c.bf16 %v2728_v5, %v2727_v41 }
 0x288   : > { %5842 = vpow2.f32 %v2631_v23  ;;  %v2633_v55 = vmul.f32 1.442695, %v2572_v10 }
 0x289   : > { %5844 = vpow2.f32 %v2637_v58  ;;  %4530 = vmatprep.subr.bf16.mxu1 %v2755_v63  ;;  %v5713_v58 = vld [vmem:[%s7973_s6 + $0x40] sm:$0xff]  }
 0x28a   : > { %5846 = vpow2.f32 %v2633_v55  ;;  %4531 = vmatpush3.bf16.msra.mxu1 %v2747_v42 }
 0x28b   : > { %4532 = vmatprep.subr.bf16.mxu1 %v2756_v30 }
 0x28e   : > { %4533 = vmatpush3.bf16.msra.mxu1 %v2748_v21 }
 0x291   : > { %v5841_v52 = vpop.eup %5840 }
 0x292   : > { %v5843_v7 = vpop.eup %5842  ;;  %v2669_v25 = vadd.f32 1.0, %v5841_v52 }
 0x293   : > { %v5845_v61 = vpop.eup %5844  ;;  %v2667_v20 = vadd.f32 1.0, %v5843_v7 }
 0x294   : > { %v5847_v57 = vpop.eup %5846  ;;  %5848 = vrcp.f32 %v2669_v25  ;;  %v2670_v49 = vadd.f32 1.0, %v5845_v61 }
 0x295   : > { %5850 = vrcp.f32 %v2667_v20  ;;  %v2668_v60 = vadd.f32 1.0, %v5847_v57 }
 0x296   : > { %5852 = vrcp.f32 %v2670_v49 }
 0x297   : > { %5854 = vrcp.f32 %v2668_v60 }
 0x29e   : > { %v5849_v24 = vpop.eup %5848 }
 0x29f   : > { %v5851_v19 = vpop.eup %5850  ;;  %v2733_v50 = vmul.f32 %v5849_v24, %v2541_v44 }
 0x2a0   : > { %v5853_v16 = vpop.eup %5852  ;;  %v2731_v39 = vmul.f32 %v5851_v19, %v2539_v51 }
 0x2a1   : > { %v5855_v42 = vpop.eup %5854  ;;  %v2734_v28 = vmul.f32 %v5853_v16, %v2542_v38 }
 0x2a2   : > { %v2732_v2 = vmul.f32 %v5855_v42, %v2540_v40 }
 0x2a3   : > { %v2758_v21 = vpack.c.bf16 %v2734_v28, %v2733_v50 }
 0x2a4   : > { %v2757_v4 = vpack.c.bf16 %v2732_v2, %v2731_v39 }
 0x2a6   : > { %4534 = vmatprep.subr.bf16.mxu1 %v2757_v4 }
 0x2a7   : > { %4535 = vmatpush3.bf16.msra.mxu1 %v2749_v17  ;;  %v7278_v17 = vld [vmem:[#allocation3 + $0x2] sm:$0xff] }
 0x2a8   : > { %4536 = vmatprep.subr.bf16.mxu1 %v2758_v21  ;;  %3498 = vst.msk [vmem:[#allocation3 + $0x8] sm:$0x3] %vm2866_vm13, %v5994_v0 }
 0x2a9   : > { %3497 = vst.msk [vmem:[#allocation3] sm:$0xff] %vm2864_vm12, %v5994_v0 }
 0x2ab   : > { %4537 = vmatpush3.bf16.msra.mxu1 %v2750_v3  ;;  %v5704_v3 = vld [vmem:[%s8030_s1 + $0x30] ss:$8 sps:$4 sm:$0xff]  }
 0x2ac   : > { %3346 = vmatprep.subr.bf16.mxu1 %v6004_v32 }
 0x2ae   : > { %2832 = vmatmul.mubr.bf16.vlgmr.msra.gmra.mrb[12].mxu1 %v5693_v18 }
 0x2af   : > { %2839 = vmatprep.mubr.bf16.mxu1 %v5696_v11  ;;  %3347 = vmatpush1.bf16.msra.mxu1 %v5705_v6 }
 0x2b0   : > { %3348 = vmatprep.subr.bf16.mxu1 %v6004_v32 }
 0x2b3   : > { %3349 = vmatpush1.bf16.msra.mxu1 %v5706_v35 }
 0x2b4   : > { %3350 = vmatprep.subr.bf16.mxu1 %v6004_v32 }
 0x2b6   : > { %2840 = vmatmul.mubr.bf16.gmra.mrb[16].mxu1 %v5698_v59 }
 0x2b7   : > { %2847 = vmatprep.mubr.bf16.mxu1 %v5699_v47  ;;  %3351 = vmatpush1.bf16.msra.mxu1 %v5707_v36 }
 0x2b8   : > { %3352 = vmatprep.subr.bf16.mxu1 %v6004_v32 }
 0x2bb   : > { %3353 = vmatpush1.bf16.msra.mxu1 %v5708_v33 }
 0x2bc   : > { %3354 = vmatprep.subr.bf16.mxu1 %v6004_v32 }
 0x2be   : > { %2848 = vmatmul.mubr.bf16.gmra.mrb[20].mxu1 %v5701_v43 }
 0x2bf   : > { %2855 = vmatprep.mubr.bf16.mxu1 %v5702_v26  ;;  %3355 = vmatpush1.bf16.msra.mxu1 %v5709_v22 }
 0x2c0   : > { %3356 = vmatprep.subr.bf16.mxu1 %v6004_v32 }
 0x2c3   : > { %3357 = vmatpush1.bf16.msra.mxu1 %v5710_v54 }
 0x2c4   : > { %3358 = vmatprep.subr.bf16.mxu1 %v6004_v32 }
 0x2c6   : > { %2856 = vmatmul.mubr.bf16.gmra.mrb[24].mxu1 %v5704_v3 }
 0x2c7   : > { %3359 = vmatpush1.bf16.msra.mxu1 %v5711_v45 }
 0x2c8   : > { %3360 = vmatprep.subr.bf16.mxu1 %v6004_v32 }
 0x2cb   : > { %3361 = vmatpush1.bf16.msra.mxu1 %v5712_v9 }
 0x2cc   : > { %3362 = vmatprep.subr.bf16.mxu1 %v6004_v32 }
 0x2cf   : > { %3363 = vmatpush1.bf16.msra.mxu1 %v5713_v58 }
 0x381   : > { %v4538_v37 = vpop.f32.mrb[12].mxu1 }
 0x382   : > { %v4539_v14 = vpop.f32.mrb[13].mxu1 }
 0x383   : > { %v7318_v44 = vadd.f32 %v4539_v14, %v4538_v37  ;;  %v4541_v31 = vpop.f32.mrb[14].mxu1 }
 0x384   : > { %v4542_v12 = vpop.f32.mrb[15].mxu1 }
 0x385   : > { %2887 = vst.msk [vmem:[#allocation3 + $0x11] sm:$0xff] %vm2864_vm12, %v7318_v44  ;;  %v7327_v51 = vadd.f32 %v4542_v12, %v4541_v31 }
 0x387   : > { %2888 = vst.msk [vmem:[#allocation3 + $0x21] sm:$0xff] %vm2864_vm12, %v7327_v51 }
 0x389   : > { %v4544_v48 = vpop.f32.mrb[16].mxu1 }
 0x38a   : > { %v4545_v29 = vpop.f32.mrb[17].mxu1 }
 0x38b   : > { %v7336_v38 = vadd.f32 %v4545_v29, %v4544_v48  ;;  %v4547_v13 = vpop.f32.mrb[18].mxu1 }
 0x38c   : > { %v4548_v46 = vpop.f32.mrb[19].mxu1  ;;  %v2912_v15 = vld [vmem:[#allocation3 + $0x12] sm:$0xff] }
 0x38d   : > { %v2904_v40 = vld [vmem:[#allocation3 + $0x11] sm:$0xff]  ;;  %2889 = vst.msk [vmem:[#allocation3 + $0x31] sm:$0xff] %vm2864_vm12, %v7336_v38  ;;  %v7345_v5 = vadd.f32 %v4548_v46, %v4547_v13  ;;  %v5416_v62 = vpack.i.bf16 %v2912_v15, %v7278_v17 }
 0x38e   : > { %v7341_v41 = vld [vmem:[#allocation3 + $0x10] sm:$0xff]  ;;  %v5411_v34 = vpack.i.bf16 %v2904_v40, %v7280_v27  ;;  %3500 = vst.msk [vmem:[#allocation3 + $0x18] sm:$0x3] %vm2866_vm13, %v5994_v0  ;;  %v2928_v23 = vld [vmem:[#allocation3 + $0x21] sm:$0xff] }
 0x38f   : > { %3499 = vst.msk [vmem:[#allocation3 + $0x10] sm:$0xff] %vm2864_vm12, %v5994_v0  ;;  %v7353_v10 = vld [vmem:[#allocation3 + $0x20] sm:$0xff]  ;;  %2890 = vst.msk [vmem:[#allocation3 + $0x41] sm:$0xff] %vm2864_vm12, %v7345_v5  ;;  %5417 = vrot.lane.b32.xlu1 %v5416_v62, %s6005_s19  ;;  %v5426_v55 = vpack.i.bf16 %v2928_v23, %v2904_v40 }
 0x390   : > { %v7355_v30 = vld [vmem:[#allocation3 + $0x22] sm:$0xff]  ;;  %5412 = vrot.lane.b32.xlu0 %v5411_v34, %s6006_s26  ;;  %v5421_v52 = vpack.i.bf16 %v7353_v10, %v7341_v41 }
 0x391   : > { %3502 = vst.msk [vmem:[#allocation3 + $0x28] sm:$0x3] %vm2866_vm13, %v5994_v0  ;;  %v4550_v63 = vpop.f32.mrb[20].mxu1  ;;  %v5431_v42 = vpack.i.bf16 %v7355_v30, %v2912_v15 }
 0x392   : > { %3501 = vst.msk [vmem:[#allocation3 + $0x20] sm:$0xff] %vm2864_vm12, %v5994_v0  ;;  %v4551_v7 = vpop.f32.mrb[21].mxu1 }
 0x393   : > { %v7371_v25 = vadd.f32 %v4551_v7, %v4550_v63  ;;  %5427 = vrot.lane.b32.xlu1 %v5426_v55, %s8009_s4  ;;  %v4553_v61 = vpop.f32.mrb[22].mxu1 }
 0x394   : > { %5422 = vrot.lane.b32.xlu0 %v5421_v52, %s8007_s23  ;;  %v2961_v20 = vld [vmem:[#allocation3 + $0x32] sm:$0xff]  ;;  %v4554_v49 = vpop.f32.mrb[23].mxu1 }
 0x395   : > { %v7375_v57 = vld [vmem:[#allocation3 + $0x30] sm:$0xff]  ;;  %2891 = vst.msk [vmem:[#allocation3 + $0x51] sm:$0xff] %vm2864_vm12, %v7371_v25  ;;  %v3255_v24 = vpack.c.bf16 %v2961_v20, %v7355_v30  ;;  %v7382_v16 = vadd.f32 %v4554_v49, %v4553_v61  ;;  %v5451_v27 = vpack.i.bf16 %v2961_v20, %v7355_v30 }
 0x396   : > { %v2906_v60 = vld [vmem:[#allocation3 + $0x31] sm:$0xff]  ;;  %v5436_v19 = vpack.i.bf16 %v7375_v57, %v7353_v10  ;;  %v7389_v50 = vld [vmem:[#allocation3 + $0x40] sm:$0xff] }
 0x397   : > { %3504 = vst.msk [vmem:[#allocation3 + $0x38] sm:$0x3] %vm2866_vm13, %v5994_v0  ;;  %v7391_v28 = vld [vmem:[#allocation3 + $0x42] sm:$0xff]  ;;  %4471 = vmatprep.mubr.msk.bf16.mxu1 %vm2864_vm12, %v3255_v24  ;;  %v5446_v21 = vpack.i.bf16 %v2906_v60, %v2928_v23  ;;  %v5456_v3 = vpack.i.bf16 %v7389_v50, %v7375_v57 }
 0x398   : > { %3503 = vst.msk [vmem:[#allocation3 + $0x30] sm:$0xff] %vm2864_vm12, %v5994_v0  ;;  %v2930_v39 = vld [vmem:[#allocation3 + $0x41] sm:$0xff]  ;;  %5437 = vrot.lane.b32.xlu1 %v5436_v19, %s8001_s30  ;;  %2892 = vst.msk [vmem:[#allocation3 + $0x61] sm:$0xff] %vm2864_vm12, %v7382_v16  ;;  %5432 = vrot.lane.b32.xlu0 %v5431_v42, %s8005_s29  ;;  %v5466_v33 = vpack.i.bf16 %v7391_v28, %v2961_v20 }
 0x399   : > { %3506 = vst.msk [vmem:[#allocation3 + $0x48] sm:$0x3] %vm2866_vm13, %v5994_v0  ;;  %v4556_v2 = vpop.f32.mrb[24].mxu1  ;;  %v5461_v22 = vpack.i.bf16 %v2930_v39, %v2906_v60 }
 0x39a   : > { %3505 = vst.msk [vmem:[#allocation3 + $0x40] sm:$0xff] %vm2864_vm12, %v5994_v0  ;;  %v4557_v4 = vpop.f32.mrb[25].mxu1 }
 0x39b   : > { %v7402_v18 = vadd.f32 %v4557_v4, %v4556_v2  ;;  %v4559_v11 = vpop.f32.mrb[26].mxu1 }
 0x39c   : > { %5447 = vrot.lane.b32.xlu1 %v5446_v21, %s6006_s26  ;;  %5442 = vrot.lane.b32.xlu0 %v5446_v21, %s8003_s18  ;;  %v4560_v59 = vpop.f32.mrb[27].mxu1  ;;  %v2955_v47 = vld [vmem:[#allocation3 + $0x51] sm:$0xff] }
 0x39d   : > { %v7406_v43 = vld [vmem:[#allocation3 + $0x50] sm:$0xff]  ;;  %2893 = vst.msk [vmem:[#allocation3 + $0x71] sm:$0xff] %vm2864_vm12, %v7402_v18  ;;  %v7414_v17 = vadd.f32 %v4560_v59, %v4559_v11  ;;  %v5476_v54 = vpack.i.bf16 %v2955_v47, %v2930_v39 }
 0x39e   : > { %v7408_v26 = vld [vmem:[#allocation3 + $0x52] sm:$0xff]  ;;  %v5471_v12 = vpack.i.bf16 %v7406_v43, %v7389_v50 }
 0x39f   : > { %3508 = vst.msk [vmem:[#allocation3 + $0x58] sm:$0x3] %vm2866_vm13, %v5994_v0  ;;  %v2932_v6 = vld [vmem:[#allocation3 + $0x61] sm:$0xff]  ;;  %v5486_v13 = vpack.i.bf16 %v7408_v26, %v7391_v28 }
 0x3a0   : > { %3507 = vst.msk [vmem:[#allocation3 + $0x50] sm:$0xff] %vm2864_vm12, %v5994_v0  ;;  %v7421_v35 = vld [vmem:[#allocation3 + $0x60] sm:$0xff]  ;;  %5457 = vrot.lane.b32.xlu1 %v5456_v3, %s8007_s23  ;;  %2894 = vst.msk [vmem:[#allocation3 + $0x81] sm:$0xff] %vm2864_vm12, %v7414_v17  ;;  %5452 = vrot.lane.b32.xlu0 %v5451_v27, %s6005_s19  ;;  %v5496_v9 = vpack.i.bf16 %v2932_v6, %v2955_v47 }
 0x3a1   : > { %v7423_v36 = vld [vmem:[#allocation3 + $0x62] sm:$0xff]  ;;  %v5491_v46 = vpack.i.bf16 %v7421_v35, %v7406_v43 }
 0x3a2   : > { %3510 = vst.msk [vmem:[#allocation3 + $0x68] sm:$0x3] %vm2866_vm13, %v5994_v0  ;;  %v5501_v40 = vpack.i.bf16 %v7423_v36, %v7408_v26 }
 0x3a3   : > { %3509 = vst.msk [vmem:[#allocation3 + $0x60] sm:$0xff] %vm2864_vm12, %v5994_v0 }
 0x3a4   : > { %5467 = vrot.lane.b32.xlu1 %v5466_v33, %s8005_s29  ;;  %5462 = vrot.lane.b32.xlu0 %v5461_v22, %s8009_s4  ;;  %v7436_v37 = vld [vmem:[#allocation3 + $0x70] sm:$0xff] }
 0x3a5   : > { %v2910_v14 = vld [vmem:[#allocation3 + $0x71] sm:$0xff]  ;;  %v5506_v15 = vpack.i.bf16 %v7436_v37, %v7421_v35 }
 0x3a6   : > { %v7438_v31 = vld [vmem:[#allocation3 + $0x72] sm:$0xff]  ;;  %v5516_v62 = vpack.i.bf16 %v2910_v14, %v2932_v6 }
 0x3a7   : > { %3512 = vst.msk [vmem:[#allocation3 + $0x78] sm:$0x3] %vm2866_vm13, %v5994_v0  ;;  %v2926_v45 = vld [vmem:[#allocation3 + $0x80] sm:$0xff]  ;;  %v5521_v23 = vpack.i.bf16 %v7438_v31, %v7423_v36 }
 0x3a8   : > { %3511 = vst.msk [vmem:[#allocation3 + $0x70] sm:$0xff] %vm2864_vm12, %v5994_v0  ;;  %v7446_v48 = vld [vmem:[#allocation3 + $0x82] sm:$0xff]  ;;  %5477 = vrot.lane.b32.xlu1 %v5476_v54, %s8003_s18  ;;  %5472 = vrot.lane.b32.xlu0 %v5471_v12, %s8001_s30  ;;  %v5526_v34 = vpack.i.bf16 %v2926_v45, %v7436_v37  ;;  %v5541_v55 = vpack.i.bf16 %v7286_v1, %v2926_v45 }
 0x3a9   : > { %v2934_v29 = vld [vmem:[#allocation3 + $0x81] sm:$0xff]  ;;  %v5536_v30 = vpack.i.bf16 %v7446_v48, %v7438_v31 }
 0x3aa   : > { %3513 = vst.msk [vmem:[#allocation3 + $0x80] sm:$0xff] %vm2864_vm12, %v5994_v0  ;;  %v5531_v58 = vpack.i.bf16 %v2934_v29, %v2910_v14  ;;  %v5546_v63 = vpack.i.bf16 %v7284_v56, %v2934_v29 }
 0x3ab   : > { %3514 = vst.msk [vmem:[#allocation3 + $0x88] sm:$0x3] %vm2866_vm13, %v5994_v0 }
 0x3ac   : > { %5487 = vrot.lane.b32.xlu1 %v5486_v13, %s6005_s19  ;;  %5482 = vrot.lane.b32.xlu0 %v5476_v54, %s6006_s26 }
 0x3b0   : > { %5497 = vrot.lane.b32.xlu1 %v5496_v9, %s8009_s4  ;;  %5492 = vrot.lane.b32.xlu0 %v5491_v46, %s8007_s23 }
 0x3b4   : > { %5507 = vrot.lane.b32.xlu1 %v5506_v15, %s8001_s30  ;;  %5502 = vrot.lane.b32.xlu0 %v5501_v40, %s8005_s29 }
 0x3b8   : > { %5517 = vrot.lane.b32.xlu1 %v5516_v62, %s6006_s26  ;;  %5512 = vrot.lane.b32.xlu0 %v5516_v62, %s8003_s18 }
 0x3bc   : > { %5527 = vrot.lane.b32.xlu1 %v5526_v34, %s8007_s23  ;;  %5522 = vrot.lane.b32.xlu0 %v5521_v23, %s6005_s19 }
 0x3c0   : > { %5537 = vrot.lane.b32.xlu1 %v5536_v30, %s8005_s29  ;;  %5532 = vrot.lane.b32.xlu0 %v5531_v58, %s8009_s4  ;;  %s8035_s29 = smov 96  }
 0x3c4   : > { %5547 = vrot.lane.b32.xlu1 %v5546_v63, %s8003_s18  ;;  %5542 = vrot.lane.b32.xlu0 %v5541_v55, %s8001_s30  ;;  %s8033_s30 = smov 80  }
 0x401   : > { %v5418_v52 = vpop.permute.xlu1 %5417 }
 0x402   : > { %v5413_v7 = vpop.permute.xlu0 %5412  ;;  %v5420_v49 = vunpack.i.h.bf16 %v5418_v52  ;;  %v5419_v60 = vunpack.i.l.bf16 %v5418_v52 }
 0x403   : > { %v5415_v61 = vunpack.i.h.bf16 %v5413_v7  ;;  %v5414_v20 = vunpack.i.l.bf16 %v5413_v7  ;;  %v3257_v7 = vpack.c.bf16 %v7408_v26, %v7391_v28 }
 0x405   : > { %v3192_v24 = vsel %vm2864_vm12, %v7316_v8, %v5414_v20  ;;  %v3193_v19 = vsel %vm2864_vm12, %v7341_v41, %v5415_v61  ;;  %v5428_v42 = vpop.permute.xlu1 %5427 }
 0x406   : > { %v5423_v56 = vpop.permute.xlu0 %5422  ;;  %v5430_v2 = vunpack.i.h.bf16 %v5428_v42  ;;  %v5429_v21 = vunpack.i.l.bf16 %v5428_v42  ;;  %v3201_v4 = vsel %vm3200_vm14, %v3192_v24, %v5419_v60  ;;  %v3202_v11 = vsel %vm3200_vm14, %v3193_v19, %v5420_v49 }
 0x407   : > { %v5425_v1 = vunpack.i.h.bf16 %v5423_v56  ;;  %v5424_v39 = vunpack.i.l.bf16 %v5423_v56 }
 0x409   : > { %v3210_v59 = vsel %vm3209_vm15, %v3201_v4, %v5424_v39  ;;  %v3211_v47 = vsel %vm3209_vm15, %v3202_v11, %v5425_v1 }
 0x40a   : > { %v5438_v8 = vpop.permute.xlu1 %5437  ;;  %v5433_v41 = vpop.permute.xlu0 %5432  ;;  %v3219_v22 = vsel %vm3218_vm0, %v3210_v59, %v5429_v21  ;;  %v3220_v14 = vsel %vm3218_vm0, %v3211_v47, %v5430_v2 }
 0x40b   : > { %v5435_v3 = vunpack.i.h.bf16 %v5433_v41  ;;  %v5434_v27 = vunpack.i.l.bf16 %v5433_v41  ;;  %v5440_v6 = vunpack.i.h.bf16 %v5438_v8  ;;  %v5439_v33 = vunpack.i.l.bf16 %v5438_v8 }
 0x40d   : > { %v3228_v54 = vsel %vm3227_vm1, %v3219_v22, %v5434_v27  ;;  %v3229_v12 = vsel %vm3227_vm1, %v3220_v14, %v5435_v3 }
 0x40e   : > { %v5448_v45 = vpop.permute.xlu1 %5447  ;;  %v5443_v29 = vpop.permute.xlu0 %5442  ;;  %v3237_v40 = vsel %vm3236_vm2, %v3228_v54, %v5439_v33  ;;  %v3238_v62 = vsel %vm3236_vm2, %v3229_v12, %v5440_v6 }
 0x40f   : > { %v5445_v13 = vunpack.i.h.bf16 %v5443_v29  ;;  %v5444_v9 = vunpack.i.l.bf16 %v5443_v29  ;;  %v5450_v46 = vunpack.i.h.bf16 %v5448_v45  ;;  %v5449_v15 = vunpack.i.l.bf16 %v5448_v45 }
 0x411   : > { %v3246_v34 = vsel %vm3245_vm3, %v3237_v40, %v5444_v9  ;;  %v3247_v23 = vsel %vm3245_vm3, %v3238_v62, %v5445_v13  ;;  %v3195_v61 = vsel %vm2864_vm12, %v7375_v57, %v5450_v46  ;;  %v3194_v20 = vsel %vm2864_vm12, %v7353_v10, %v5449_v15 }
 0x412   : > { %v5458_v30 = vpop.permute.xlu1 %5457  ;;  %v3254_v58 = vpack.c.bf16 %v3247_v23, %v3246_v34  ;;  %v5453_v63 = vpop.permute.xlu0 %5452  ;;  %v3259_v15 = vpack.c.bf16 %v7438_v31, %v7423_v36 }
 0x413   : > { %v5455_v55 = vunpack.i.h.bf16 %v5453_v63  ;;  %v5454_v52 = vunpack.i.l.bf16 %v5453_v63  ;;  %v5460_v49 = vunpack.i.h.bf16 %v5458_v30  ;;  %v5459_v60 = vunpack.i.l.bf16 %v5458_v30 }
 0x414   : > { %3379 = vmatmul.mubr.bf16.vlgmr.msra.gmra.mrb[28].mxu1 %v3254_v58 }
 0x415   : > { %v3204_v24 = vsel %vm3200_vm14, %v3195_v61, %v5455_v55  ;;  %v3203_v19 = vsel %vm3200_vm14, %v3194_v20, %v5454_v52  ;;  %4472 = vmatprep.mubr.msk.bf16.mxu1 %vm2864_vm12, %v3257_v7 }
 0x416   : > { %v5468_v42 = vpop.permute.xlu1 %5467  ;;  %v5463_v56 = vpop.permute.xlu0 %5462  ;;  %v3212_v57 = vsel %vm3209_vm15, %v3203_v19, %v5459_v60  ;;  %v3213_v2 = vsel %vm3209_vm15, %v3204_v24, %v5460_v49 }
 0x417   : > { %v5465_v1 = vunpack.i.h.bf16 %v5463_v56  ;;  %v5464_v39 = vunpack.i.l.bf16 %v5463_v56  ;;  %v5470_v28 = vunpack.i.h.bf16 %v5468_v42  ;;  %v5469_v26 = vunpack.i.l.bf16 %v5468_v42 }
 0x419   : > { %v3221_v10 = vsel %vm3218_vm0, %v3212_v57, %v5464_v39  ;;  %v3222_v21 = vsel %vm3218_vm0, %v3213_v2, %v5465_v1 }
 0x41a   : > { %v5478_v4 = vpop.permute.xlu1 %5477  ;;  %v5473_v47 = vpop.permute.xlu0 %5472  ;;  %v3230_v3 = vsel %vm3227_vm1, %v3221_v10, %v5469_v26  ;;  %v3231_v27 = vsel %vm3227_vm1, %v3222_v21, %v5470_v28 }
 0x41b   : > { %v5480_v11 = vunpack.i.h.bf16 %v5478_v4  ;;  %v5479_v59 = vunpack.i.l.bf16 %v5478_v4  ;;  %v5475_v8 = vunpack.i.h.bf16 %v5473_v47  ;;  %v5474_v41 = vunpack.i.l.bf16 %v5473_v47 }
 0x41d   : > { %v3239_v6 = vsel %vm3236_vm2, %v3230_v3, %v5474_v41  ;;  %v3240_v33 = vsel %vm3236_vm2, %v3231_v27, %v5475_v8  ;;  %v3261_v27 = vpack.c.bf16 %v7288_v53, %v7446_v48 }
 0x41e   : > { %v5488_v22 = vpop.permute.xlu1 %5487  ;;  %v5483_v14 = vpop.permute.xlu0 %5482  ;;  %v3248_v54 = vsel %vm3245_vm3, %v3239_v6, %v5479_v59  ;;  %v3249_v12 = vsel %vm3245_vm3, %v3240_v33, %v5480_v11 }
 0x41f   : > { %v5485_v45 = vunpack.i.h.bf16 %v5483_v14  ;;  %v5484_v29 = vunpack.i.l.bf16 %v5483_v14  ;;  %v3256_v13 = vpack.c.bf16 %v3249_v12, %v3248_v54  ;;  %v5490_v9 = vunpack.i.h.bf16 %v5488_v22 }
 0x420   : > { %v5489_v46 = vunpack.i.l.bf16 %v5488_v22 }
 0x421   : > { %v3197_v40 = vsel %vm2864_vm12, %v7406_v43, %v5485_v45  ;;  %v3196_v62 = vsel %vm2864_vm12, %v7389_v50, %v5484_v29  ;;  %3387 = vmatmul.mubr.bf16.gmra.mrb[32].mxu1 %v3256_v13 }
 0x422   : > { %v5498_v34 = vpop.permute.xlu1 %5497  ;;  %v5493_v23 = vpop.permute.xlu0 %5492  ;;  %4473 = vmatprep.mubr.msk.bf16.mxu1 %vm2864_vm12, %v3259_v15  ;;  %v3205_v52 = vsel %vm3200_vm14, %v3196_v62, %v5489_v46  ;;  %v3206_v7 = vsel %vm3200_vm14, %v3197_v40, %v5490_v9 }
 0x423   : > { %v5495_v30 = vunpack.i.h.bf16 %v5493_v23  ;;  %v5494_v58 = vunpack.i.l.bf16 %v5493_v23  ;;  %v5500_v63 = vunpack.i.h.bf16 %v5498_v34  ;;  %v5499_v55 = vunpack.i.l.bf16 %v5498_v34 }
 0x425   : > { %v3214_v36 = vsel %vm3209_vm15, %v3205_v52, %v5494_v58  ;;  %v3215_v43 = vsel %vm3209_vm15, %v3206_v7, %v5495_v30 }
 0x426   : > { %v5508_v31 = vpop.permute.xlu1 %5507  ;;  %v5503_v61 = vpop.permute.xlu0 %5502  ;;  %v3223_v24 = vsel %vm3218_vm0, %v3214_v36, %v5499_v55  ;;  %v3224_v19 = vsel %vm3218_vm0, %v3215_v43, %v5500_v63 }
 0x427   : > { %v5505_v50 = vunpack.i.h.bf16 %v5503_v61  ;;  %v5504_v20 = vunpack.i.l.bf16 %v5503_v61  ;;  %v5510_v49 = vunpack.i.h.bf16 %v5508_v31  ;;  %v5509_v60 = vunpack.i.l.bf16 %v5508_v31  ;;  %v5714_v61 = vld [vmem:[%s7976_s9] sm:$0xff]  }
 0x428   : > { %3970 = vmatpush1.bf16.msra.mxu0 %v5714_v61 }
 0x429   : > { %v3232_v42 = vsel %vm3227_vm1, %v3223_v24, %v5504_v20  ;;  %v3233_v56 = vsel %vm3227_vm1, %v3224_v19, %v5505_v50  ;;  %v5715_v50 = vld [vmem:[%s7976_s9 + $0x8] sm:$0xff]   ;;  %3971 = vmatprep.subr.bf16.mxu0 %v6004_v32  ;;  %v5716_v20 = vld [vmem:[%s7976_s9 + $0x10] sm:$0xff]   ;;  %v7580_v19 = vld [vmem:[%s7975_s8] ss:$0 sm:$0xff] }
 0x42a   : > { %v5518_v1 = vpop.permute.xlu1 %5517  ;;  %v5513_v39 = vpop.permute.xlu0 %5512  ;;  %v3241_v10 = vsel %vm3236_vm2, %v3232_v42, %v5509_v60  ;;  %v3242_v21 = vsel %vm3236_vm2, %v3233_v56, %v5510_v49  ;;  %v5717_v49 = vld [vmem:[%s7976_s9 + $0x18] sm:$0xff]   ;;  %v7575_v60 = vld [vmem:[%s7974_s7] ss:$0 sm:$0xff] }
 0x42b   : > { %v5515_v28 = vunpack.i.h.bf16 %v5513_v39  ;;  %v5514_v26 = vunpack.i.l.bf16 %v5513_v39  ;;  %v5520_v57 = vunpack.i.h.bf16 %v5518_v1  ;;  %v5519_v2 = vunpack.i.l.bf16 %v5518_v1 }
 0x42c   : > { %3972 = vmatpush1.bf16.msra.mxu0 %v5715_v50 }
 0x42d   : > { %v3250_v11 = vsel %vm3245_vm3, %v3241_v10, %v5514_v26  ;;  %v3251_v59 = vsel %vm3245_vm3, %v3242_v21, %v5515_v28  ;;  %v3199_v6 = vsel %vm2864_vm12, %v7436_v37, %v5520_v57  ;;  %v3198_v33 = vsel %vm2864_vm12, %v7421_v35, %v5519_v2  ;;  %3973 = vmatprep.subr.bf16.mxu0 %v6004_v32 }
 0x42e   : > { %v5528_v4 = vpop.permute.xlu1 %5527  ;;  %v5523_v47 = vpop.permute.xlu0 %5522  ;;  %v3258_v8 = vpack.c.bf16 %v3251_v59, %v3250_v11 }
 0x42f   : > { %v5525_v41 = vunpack.i.h.bf16 %v5523_v47  ;;  %v5524_v3 = vunpack.i.l.bf16 %v5523_v47  ;;  %v5530_v22 = vunpack.i.h.bf16 %v5528_v4  ;;  %v5529_v14 = vunpack.i.l.bf16 %v5528_v4 }
 0x430   : > { %3395 = vmatmul.mubr.bf16.gmra.mrb[36].mxu1 %v3258_v8  ;;  %3974 = vmatpush1.bf16.msra.mxu0 %v5716_v20 }
 0x431   : > { %v3208_v54 = vsel %vm3200_vm14, %v3199_v6, %v5525_v41  ;;  %v3207_v12 = vsel %vm3200_vm14, %v3198_v33, %v5524_v3  ;;  %4474 = vmatprep.mubr.msk.bf16.mxu1 %vm2864_vm12, %v3261_v27  ;;  %3975 = vmatprep.subr.bf16.mxu0 %v6004_v32 }
 0x432   : > { %v5538_v45 = vpop.permute.xlu1 %5537  ;;  %v5533_v29 = vpop.permute.xlu0 %5532  ;;  %v3216_v37 = vsel %vm3209_vm15, %v3207_v12, %v5529_v14  ;;  %v3217_v46 = vsel %vm3209_vm15, %v3208_v54, %v5530_v22 }
 0x433   : > { %v5535_v13 = vunpack.i.h.bf16 %v5533_v29  ;;  %v5534_v9 = vunpack.i.l.bf16 %v5533_v29  ;;  %v5540_v53 = vunpack.i.h.bf16 %v5538_v45  ;;  %v5539_v48 = vunpack.i.l.bf16 %v5538_v45 }
 0x434   : > { %3976 = vmatpush1.bf16.msra.mxu0 %v5717_v49 }
 0x435   : > { %v3225_v35 = vsel %vm3218_vm0, %v3216_v37, %v5534_v9  ;;  %v3226_v15 = vsel %vm3218_vm0, %v3217_v46, %v5535_v13  ;;  %3977 = vmatprep.subr.bf16.mxu0 %v6004_v32 }
 0x436   : > { %v5548_v40 = vpop.permute.xlu1 %5547  ;;  %v5543_v23 = vpop.permute.xlu0 %5542  ;;  %v3234_v63 = vsel %vm3227_vm1, %v3225_v35, %v5539_v48  ;;  %v3235_v55 = vsel %vm3227_vm1, %v3226_v15, %v5540_v53 }
 0x437   : > { %v5550_v62 = vunpack.i.h.bf16 %v5548_v40  ;;  %v5549_v34 = vunpack.i.l.bf16 %v5548_v40  ;;  %v5545_v30 = vunpack.i.h.bf16 %v5543_v23  ;;  %v5544_v58 = vunpack.i.l.bf16 %v5543_v23 }
 0x439   : > { %v3243_v52 = vsel %vm3236_vm2, %v3234_v63, %v5544_v58  ;;  %v3244_v7 = vsel %vm3236_vm2, %v3235_v55, %v5545_v30  ;;  %v5718_v55 = vld [vmem:[%s7976_s9 + $0x20] sm:$0xff]  }
 0x43a   : > { %v3252_v36 = vsel %vm3245_vm3, %v3243_v52, %v5549_v34  ;;  %v3253_v43 = vsel %vm3245_vm3, %v3244_v7, %v5550_v62  ;;  %3978 = vmatpush1.bf16.msra.mxu0 %v5718_v55 }
 0x43b   : > { %v3260_v31 = vpack.c.bf16 %v3253_v43, %v3252_v36  ;;  %3979 = vmatprep.subr.bf16.mxu0 %v6004_v32 }
 0x43d   : > { %3403 = vmatmul.mubr.bf16.gmra.mrb[40].mxu1 %v3260_v31 }
 0x43e   : > { %4681 = vmatprep.mubr.msk.f32.mxu1 %vm6012_vm4, %v5994_v0 }
 0x4e7   : > { %v3380_v24 = vpop.f32.mrb[28].mxu1 }
 0x4e8   : > { %v3418_v42 = vmul.f32 %v7575_v60, %v3380_v24  ;;  %v3382_v56 = vpop.f32.mrb[29].mxu1 }
 0x4e9   : > { %v3383_v1 = vpop.f32.mrb[30].mxu1  ;;  %v3533_v56 = vld [vmem:[#allocation3 + $0x1] sm:$0xff] }
 0x4ea   : > { %v3433_v39 = vadd.f32 %v7580_v19, %v3418_v42  ;;  %v3419_v28 = vmul.f32 %v7575_v60, %v3383_v1  ;;  %v3385_v26 = vpop.f32.mrb[31].mxu1  ;;  %v5720_v1 = vld [vmem:[%s7976_s9 + $0x30] sm:$0xff]  }
 0x4ec   : > { %v3441_v57 = vsub.f32 0.0, %v3433_v39  ;;  %v3434_v2 = vadd.f32 %v7580_v19, %v3419_v28 }
 0x4ee   : > { %v3449_v10 = vmul.f32 1.442695, %v3441_v57  ;;  %v3442_v21 = vsub.f32 0.0, %v3434_v2 }
 0x4f0   : > { %5856 = vpow2.f32 %v3449_v10  ;;  %v3451_v4 = vmul.f32 1.442695, %v3442_v21 }
 0x4f2   : > { %5858 = vpow2.f32 %v3451_v4 }
 0x4f4   : > { %v3388_v11 = vpop.f32.mrb[32].mxu1 }
 0x4f5   : > { %v3420_v59 = vmul.f32 %v7575_v60, %v3388_v11  ;;  %v3390_v47 = vpop.f32.mrb[33].mxu1  ;;  %v5721_v11 = vld [vmem:[%s7976_s9 + $0x38] sm:$0xff]  }
 0x4f6   : > { %v3391_v8 = vpop.f32.mrb[34].mxu1 }
 0x4f7   : > { %v7588_v41 = vadd.f32 %v7580_v19, %v3420_v59  ;;  %v3421_v3 = vmul.f32 %v7575_v60, %v3391_v8  ;;  %v3393_v27 = vpop.f32.mrb[35].mxu1 }
 0x4f9   : > { %v3443_v6 = vsub.f32 0.0, %v7588_v41  ;;  %v7593_v33 = vadd.f32 %v7580_v19, %v3421_v3 }
 0x4fa   : > { %v5857_v22 = vpop.eup %5856 }
 0x4fb   : > { %v3465_v14 = vadd.f32 1.0, %v5857_v22  ;;  %v3453_v54 = vmul.f32 1.442695, %v3443_v6  ;;  %v3444_v12 = vsub.f32 0.0, %v7593_v33 }
 0x4fc   : > { %v5859_v45 = vpop.eup %5858 }
 0x4fd   : > { %5860 = vrcp.f32 %v3465_v14  ;;  %v3466_v29 = vadd.f32 1.0, %v5859_v45  ;;  %v3455_v13 = vmul.f32 1.442695, %v3444_v12 }
 0x4fe   : > { %5862 = vpow2.f32 %v3453_v54 }
 0x4ff   : > { %5864 = vrcp.f32 %v3466_v29 }
 0x500   : > { %5866 = vpow2.f32 %v3455_v13 }
 0x503   : > { %v3396_v9 = vpop.f32.mrb[36].mxu1 }
 0x504   : > { %v3422_v53 = vmul.f32 %v7575_v60, %v3396_v9  ;;  %v3398_v48 = vpop.f32.mrb[37].mxu1 }
 0x505   : > { %v3399_v37 = vpop.f32.mrb[38].mxu1 }
 0x506   : > { %v7598_v46 = vadd.f32 %v7580_v19, %v3422_v53  ;;  %v3423_v35 = vmul.f32 %v7575_v60, %v3399_v37  ;;  %v3401_v15 = vpop.f32.mrb[39].mxu1 }
 0x507   : > { %v5861_v40 = vpop.eup %5860 }
 0x508   : > { %v5863_v62 = vpop.eup %5862  ;;  %v3481_v34 = vmul.f32 %v5861_v40, %v3433_v39  ;;  %v3445_v23 = vsub.f32 0.0, %v7598_v46  ;;  %v7603_v30 = vadd.f32 %v7580_v19, %v3423_v35  ;;  %v5722_v35 = vld [vmem:[%s7976_s9 + $0x40] sm:$0xff]  }
 0x509   : > { %v5865_v58 = vpop.eup %5864  ;;  %v3467_v63 = vadd.f32 1.0, %v5863_v62 }
 0x50a   : > { %v5867_v52 = vpop.eup %5866  ;;  %v3489_v7 = vadd.f32 %v7318_v44, %v3481_v34  ;;  %v3482_v36 = vmul.f32 %v5865_v58, %v3434_v2  ;;  %v3457_v43 = vmul.f32 1.442695, %v3445_v23  ;;  %v3446_v31 = vsub.f32 0.0, %v7603_v30  ;;  %v5719_v44 = vld [vmem:[%s7976_s9 + $0x28] sm:$0xff]  }
 0x50b   : > { %5868 = vrcp.f32 %v3467_v63  ;;  %v3468_v61 = vadd.f32 1.0, %v5867_v52  ;;  %3980 = vmatpush1.bf16.msra.mxu0 %v5719_v44 }
 0x50c   : > { %3517 = vst.msk [vmem:[#allocation3 + $0x11] sm:$0xff] %vm2864_vm12, %v3489_v7  ;;  %v3490_v50 = vadd.f32 %v7327_v51, %v3482_v36  ;;  %5870 = vpow2.f32 %v3457_v43  ;;  %v3459_v20 = vmul.f32 1.442695, %v3446_v31  ;;  %3981 = vmatprep.subr.bf16.mxu0 %v6004_v32  ;;  %v3541_v51 = vld [vmem:[#allocation3 + $0x2] sm:$0xff] }
 0x50d   : > { %5872 = vrcp.f32 %v3468_v61 }
 0x50e   : > { %3518 = vst.msk [vmem:[#allocation3 + $0x21] sm:$0xff] %vm2864_vm12, %v3490_v50  ;;  %5874 = vpow2.f32 %v3459_v20 }
 0x50f   : > { %3982 = vmatpush1.bf16.msra.mxu0 %v5720_v1 }
 0x510   : > { %v3404_v49 = vpop.f32.mrb[40].mxu1  ;;  %3983 = vmatprep.subr.bf16.mxu0 %v6004_v32 }
 0x511   : > { %v3424_v24 = vmul.f32 %v7575_v60, %v3404_v49  ;;  %v3406_v42 = vpop.f32.mrb[41].mxu1 }
 0x512   : > { %v3407_v39 = vpop.f32.mrb[42].mxu1 }
 0x513   : > { %v7623_v28 = vadd.f32 %v7580_v19, %v3424_v24  ;;  %v3425_v26 = vmul.f32 %v7575_v60, %v3407_v39  ;;  %v3409_v57 = vpop.f32.mrb[43].mxu1  ;;  %v3542_v2 = vld [vmem:[#allocation3 + $0x12] sm:$0xff]  ;;  %3984 = vmatpush1.bf16.msra.mxu0 %v5721_v11 }
 0x514   : > { %v3534_v10 = vld [vmem:[#allocation3 + $0x11] sm:$0xff]  ;;  %v5556_v21 = vpack.i.bf16 %v3542_v2, %v3541_v51  ;;  %3985 = vmatprep.subr.bf16.mxu0 %v6004_v32 }
 0x515   : > { %v5551_v4 = vpack.i.bf16 %v3534_v10, %v3533_v56  ;;  %v5869_v59 = vpop.eup %5868  ;;  %v3447_v47 = vsub.f32 0.0, %v7623_v28  ;;  %v7632_v8 = vadd.f32 %v7580_v19, %v3425_v26  ;;  %v3558_v3 = vld [vmem:[#allocation3 + $0x21] sm:$0xff]  ;;  %v7640_v45 = vld [vmem:[#allocation3 + $0x10] sm:$0xff] }
 0x516   : > { %v7634_v60 = vld [vmem:[#allocation3 + $0x20] sm:$0xff]  ;;  %v5871_v27 = vpop.eup %5870  ;;  %v3483_v6 = vmul.f32 %v5869_v59, %v7588_v41  ;;  %5557 = vrot.lane.b32.xlu1 %v5556_v21, %s6005_s19  ;;  %v5566_v9 = vpack.i.bf16 %v3558_v3, %v3534_v10 }
 0x517   : > { %5552 = vrot.lane.b32.xlu0 %v5551_v4, %s6006_s26  ;;  %v5873_v22 = vpop.eup %5872  ;;  %v3469_v14 = vadd.f32 1.0, %v5871_v27  ;;  %v3461_v54 = vmul.f32 1.442695, %v3447_v47  ;;  %v3448_v12 = vsub.f32 0.0, %v7632_v8  ;;  %v5561_v41 = vpack.i.bf16 %v7634_v60, %v7640_v45  ;;  %v3566_v37 = vld [vmem:[#allocation3 + $0x22] sm:$0xff]  ;;  %3986 = vmatpush1.bf16.msra.mxu0 %v5722_v35 }
 0x518   : > { %v5875_v19 = vpop.eup %5874  ;;  %v3491_v29 = vadd.f32 %v7336_v38, %v3483_v6  ;;  %v3484_v13 = vmul.f32 %v5873_v22, %v7593_v33  ;;  %v5571_v32 = vpack.i.bf16 %v3566_v37, %v3542_v2  ;;  %4625 = vmatprep.subr.bf16.mxu0 %v5994_v0 }
 0x519   : > { %5876 = vrcp.f32 %v3469_v14  ;;  %v3470_v53 = vadd.f32 1.0, %v5875_v19  ;;  %v3463_v48 = vmul.f32 1.442695, %v3448_v12 }
 0x51a   : > { %3519 = vst.msk [vmem:[#allocation3 + $0x31] sm:$0xff] %vm2864_vm12, %v3491_v29  ;;  %v3492_v38 = vadd.f32 %v7345_v5, %v3484_v13  ;;  %5878 = vpow2.f32 %v3461_v54  ;;  %5567 = vrot.lane.b32.xlu1 %v5566_v9, %s8031_s28 }
 0x51b   : > { %5562 = vrot.lane.b32.xlu0 %v5561_v41, %s8032_s3  ;;  %5880 = vrcp.f32 %v3470_v53  ;;  %v3580_v41 = vld [vmem:[#allocation3 + $0x90] sm:$0xff] }
 0x51c   : > { %3520 = vst.msk [vmem:[#allocation3 + $0x41] sm:$0xff] %vm2864_vm12, %v3492_v38  ;;  %5882 = vpow2.f32 %v3463_v48 }
 0x51f   : > { %5572 = vrot.lane.b32.xlu0 %v5571_v32, %s8033_s30 }
 0x521   : > { %v3590_v33 = vld [vmem:[#allocation3 + $0x32] sm:$0xff] }
 0x522   : > { %v3582_v15 = vld [vmem:[#allocation3 + $0x31] sm:$0xff]  ;;  %v3878_v5 = vpack.c.bf16 %v3590_v33, %v3566_v37  ;;  %v5591_v31 = vpack.i.bf16 %v3590_v33, %v3566_v37 }
 0x523   : > { %v7657_v40 = vld [vmem:[#allocation3 + $0x30] sm:$0xff]  ;;  %v5581_v62 = vpack.i.bf16 %v3582_v15, %v3558_v3  ;;  %v5877_v23 = vpop.eup %5876  ;;  %v3560_v50 = vld [vmem:[#allocation3 + $0x41] sm:$0xff] }
 0x524   : > { %v5576_v34 = vpack.i.bf16 %v7657_v40, %v7634_v60  ;;  %v5879_v58 = vpop.eup %5878  ;;  %v3485_v63 = vmul.f32 %v5877_v23, %v7598_v46  ;;  %4486 = vmatprep.mubr.msk.bf16.mxu0 %vm2864_vm12, %v3878_v5  ;;  %v7670_v20 = vld [vmem:[#allocation3 + $0x40] sm:$0xff]  ;;  %v3588_v37 = vld [vmem:[#allocation3 + $0x91] sm:$0xff] }
 0x525   : > { %5582 = vrot.lane.b32.xlu0 %v5581_v62, %s8034_s20  ;;  %v5881_v55 = vpop.eup %5880  ;;  %v3471_v52 = vadd.f32 1.0, %v5879_v58  ;;  %v7677_v44 = vld [vmem:[#allocation3 + $0x42] sm:$0xff] }
 0x526   : > { %5577 = vrot.lane.b32.xlu1 %v5576_v34, %s8035_s29  ;;  %v5883_v7 = vpop.eup %5882  ;;  %v3493_v36 = vadd.f32 %v7371_v25, %v3485_v63  ;;  %v3486_v43 = vmul.f32 %v5881_v55, %v7603_v30  ;;  %v5601_v25 = vpack.i.bf16 %v3560_v50, %v3582_v15  ;;  %v5596_v30 = vpack.i.bf16 %v7670_v20, %v7657_v40 }
 0x527   : > { %5884 = vrcp.f32 %v3471_v52  ;;  %v3472_v61 = vadd.f32 1.0, %v5883_v7 }
 0x528   : > { %3521 = vst.msk [vmem:[#allocation3 + $0x51] sm:$0xff] %vm2864_vm12, %v3493_v36  ;;  %v3494_v46 = vadd.f32 %v7382_v16, %v3486_v43  ;;  %v5606_v16 = vpack.i.bf16 %v7677_v44, %v3590_v33 }
 0x529   : > { %5592 = vrot.lane.b32.xlu0 %v5591_v31, %s6005_s19  ;;  %5886 = vrcp.f32 %v3472_v61 }
 0x52a   : > { %5587 = vrot.lane.b32.xlu1 %v5581_v62, %s6006_s26  ;;  %3522 = vst.msk [vmem:[#allocation3 + $0x61] sm:$0xff] %vm2864_vm12, %v3494_v46  ;;  %v3525_v62 = vld [vmem:[#allocation3] sm:$0xff] }
 0x52d   : > { %5602 = vrot.lane.b32.xlu0 %v5601_v25, %s8031_s28 }
 0x52e   : > { %5597 = vrot.lane.b32.xlu1 %v5596_v30, %s8032_s3 }
 0x52f   : > { %v7681_v49 = vld [vmem:[#allocation3 + $0x50] sm:$0xff] }
 0x530   : > { %v3584_v24 = vld [vmem:[#allocation3 + $0x51] sm:$0xff]  ;;  %v5611_v51 = vpack.i.bf16 %v7681_v49, %v7670_v20 }
 0x531   : > { %v7683_v42 = vld [vmem:[#allocation3 + $0x52] sm:$0xff]  ;;  %v5885_v1 = vpop.eup %5884  ;;  %v5616_v39 = vpack.i.bf16 %v3584_v24, %v3560_v50  ;;  %v7695_v21 = vld [vmem:[#allocation3 + $0x60] sm:$0xff] }
 0x532   : > { %v3880_v56 = vpack.c.bf16 %v7683_v42, %v7677_v44  ;;  %5607 = vrot.lane.b32.xlu1 %v5606_v16, %s8033_s30  ;;  %v3487_v26 = vmul.f32 %v5885_v1, %v7623_v28  ;;  %5612 = vrot.lane.b32.xlu0 %v5611_v51, %s8035_s29  ;;  %v5626_v28 = vpack.i.bf16 %v7683_v42, %v7677_v44  ;;  %v3562_v11 = vld [vmem:[#allocation3 + $0x61] sm:$0xff] }
 0x533   : > { %v5887_v57 = vpop.eup %5886  ;;  %v7706_v59 = vld [vmem:[#allocation3 + $0x62] sm:$0xff]  ;;  %v5636_v47 = vpack.i.bf16 %v3562_v11, %v3584_v24 }
 0x534   : > { %v3495_v2 = vadd.f32 %v7402_v18, %v3487_v26  ;;  %v3488_v10 = vmul.f32 %v5887_v57, %v7632_v8  ;;  %v5631_v18 = vpack.i.bf16 %v7695_v21, %v7681_v49 }
 0x536   : > { %5617 = vrot.lane.b32.xlu1 %v5616_v39, %s8034_s20  ;;  %3523 = vst.msk [vmem:[#allocation3 + $0x71] sm:$0xff] %vm2864_vm12, %v3495_v2  ;;  %v3496_v4 = vadd.f32 %v7414_v17, %v3488_v10  ;;  %5622 = vrot.lane.b32.xlu0 %v5616_v39, %s6006_s26  ;;  %v5641_v17 = vpack.i.bf16 %v7706_v59, %v7683_v42 }
 0x538   : > { %3524 = vst.msk [vmem:[#allocation3 + $0x81] sm:$0xff] %vm2864_vm12, %v3496_v4 }
 0x53a   : > { %5627 = vrot.lane.b32.xlu1 %v5626_v28, %s6005_s19  ;;  %5632 = vrot.lane.b32.xlu0 %v5631_v18, %s8032_s3 }
 0x53d   : > { %v7712_v8 = vld [vmem:[#allocation3 + $0x70] sm:$0xff] }
 0x53e   : > { %5637 = vrot.lane.b32.xlu1 %v5636_v47, %s8031_s28  ;;  %v3586_v3 = vld [vmem:[#allocation3 + $0x71] sm:$0xff]  ;;  %5642 = vrot.lane.b32.xlu0 %v5641_v17, %s8033_s30  ;;  %v5646_v6 = vpack.i.bf16 %v7712_v8, %v7695_v21 }
 0x53f   : > { %v7714_v27 = vld [vmem:[#allocation3 + $0x72] sm:$0xff]  ;;  %v5651_v14 = vpack.i.bf16 %v3586_v3, %v3562_v11  ;;  %v3556_v12 = vld [vmem:[#allocation3 + $0x80] sm:$0xff] }
 0x540   : > { %v3882_v22 = vpack.c.bf16 %v7714_v27, %v7706_v59  ;;  %v5661_v54 = vpack.i.bf16 %v7714_v27, %v7706_v59  ;;  %v3564_v19 = vld [vmem:[#allocation3 + $0x81] sm:$0xff]  ;;  %v5666_v29 = vpack.i.bf16 %v3556_v12, %v7712_v8  ;;  %v5681_v48 = vpack.i.bf16 %v3580_v41, %v3556_v12 }
 0x541   : > { %v5671_v13 = vpack.i.bf16 %v3564_v19, %v3586_v3  ;;  %v7728_v9 = vld [vmem:[#allocation3 + $0x82] sm:$0xff]  ;;  %v5686_v35 = vpack.i.bf16 %v3588_v37, %v3564_v19 }
 0x542   : > { %5647 = vrot.lane.b32.xlu1 %v5646_v6, %s8035_s29  ;;  %5652 = vrot.lane.b32.xlu0 %v5651_v14, %s8034_s20  ;;  %v5676_v53 = vpack.i.bf16 %v7728_v9, %v7714_v27 }
 0x546   : > { %5657 = vrot.lane.b32.xlu1 %v5651_v14, %s6006_s26  ;;  %5662 = vrot.lane.b32.xlu0 %v5661_v54, %s6005_s19  ;;  %s4500_s26 = sshll.u32 %s6121_s25, 4  ;;  %s6014_s25 = smov [#allocation4]  }
 0x547   : > { %s5934_s19 = sshll.u32 %s6014_s25, 4  ;;  %s5935_s19 = int_to_ptr.vmem [resolvable:$false] %s5934_s19 }
 0x548   : > { %s5936_s1 = scalar_lea.vmem %s5935_s19, 32 }
 0x54a   : > { %5667 = vrot.lane.b32.xlu1 %v5666_v29, %s8032_s3  ;;  %5672 = vrot.lane.b32.xlu0 %v5671_v13, %s8031_s28  ;;  %s7925_s3 = scalar_lea.hbm %s7983_s16, %s4500_s26 }
 0x54e   : > { %5677 = vrot.lane.b32.xlu1 %v5676_v53, %s8033_s30  ;;  %5682 = vrot.lane.b32.xlu0 %v5681_v48, %s8035_s29 }
 0x552   : > { %5687 = vrot.lane.b32.xlu1 %v5686_v35, %s8034_s20  ;;  %s512_s20 = sand.u32 1, %s5984_s22  }
 0x553   : > { %s513_s18 = scalar_lea.vmem [#allocation4], %s512_s20  ;;  %s4361_s30 = scalar_lea.sflag [#allocation5], %s512_s20 }
 0x554   : > { %s4373_s4 = sshll.u32 %s513_s18, 4  ;;  %s7927_s4 = int_to_ptr.vmem [resolvable:$true] %s4373_s4 }
 0x555   : > { %s5930_s29 = scalar_lea.vmem %s7927_s4, 16  ;;  %p5937_p0 = scmp.lt.s32.totalorder %s7927_s4, %s5935_s19 }
 0x556   : > { %p5931_p11 = scmp.ne.s32.totalorder %s7927_s4, %s5930_s29  ;;  %p5938_p1 = scmp.lt.s32.totalorder %s5936_s1, %s5930_s29 }
 0x558   : > { %p5932_p12 = pnand %p5931_p11, %p6138_p5  ;;  %p5939_p2 = por %p5938_p1, %p5937_p0 }
 0x55a   : > { %p5933_p13 = pneg %p5932_p12 }
 0x55c   : > { %p5940_p3 = pnand %p5939_p2, %p5933_p13 }
 0x588   : > { %v5558_v32 = vpop.permute.xlu1 %5557 }
 0x589   : > { %v5553_v38 = vpop.permute.xlu0 %5552  ;;  %v5560_v34 = vunpack.i.h.bf16 %v5558_v32  ;;  %v5559_v23 = vunpack.i.l.bf16 %v5558_v32 }
 0x58a   : > { %v5555_v15 = vunpack.i.h.bf16 %v5553_v38  ;;  %v5554_v5 = vunpack.i.l.bf16 %v5553_v38 }
 0x58c   : > { %v3821_v63 = vsel %vm2864_vm12, %v3525_v62, %v5554_v5  ;;  %v3822_v55 = vsel %vm2864_vm12, %v7640_v45, %v5555_v15  ;;  %v5568_v52 = vpop.permute.xlu1 %5567 }
 0x58d   : > { %v5563_v33 = vpop.permute.xlu0 %5562  ;;  %v5570_v43 = vunpack.i.h.bf16 %v5568_v52  ;;  %v5569_v31 = vunpack.i.l.bf16 %v5568_v52  ;;  %v3829_v61 = vsel %vm3200_vm14, %v3821_v63, %v5559_v23  ;;  %v3830_v50 = vsel %vm3200_vm14, %v3822_v55, %v5560_v34 }
 0x58e   : > { %v5565_v7 = vunpack.i.h.bf16 %v5563_v33  ;;  %v5564_v36 = vunpack.i.l.bf16 %v5563_v33 }
 0x590   : > { %v3838_v46 = vsel %vm3209_vm15, %v3830_v50, %v5565_v7  ;;  %v3837_v25 = vsel %vm3209_vm15, %v3829_v61, %v5564_v36 }
 0x591   : > { %v5573_v58 = vpop.permute.xlu0 %5572  ;;  %v3845_v45 = vsel %vm3218_vm0, %v3837_v25, %v5569_v31  ;;  %v3846_v26 = vsel %vm3218_vm0, %v3838_v46, %v5570_v43 }
 0x592   : > { %v5575_v30 = vunpack.i.h.bf16 %v5573_v58  ;;  %v5574_v16 = vunpack.i.l.bf16 %v5573_v58 }
 0x594   : > { %v3853_v10 = vsel %vm3227_vm1, %v3845_v45, %v5574_v16  ;;  %v3854_v4 = vsel %vm3227_vm1, %v3846_v26, %v5575_v30 }
 0x597   : > { %v5583_v24 = vpop.permute.xlu0 %5582 }
 0x598   : > { %v5585_v51 = vunpack.i.h.bf16 %v5583_v24  ;;  %v5584_v1 = vunpack.i.l.bf16 %v5583_v24  ;;  %v5578_v39 = vpop.permute.xlu1 %5577 }
 0x599   : > { %v5580_v57 = vunpack.i.h.bf16 %v5578_v39  ;;  %v5579_v2 = vunpack.i.l.bf16 %v5578_v39 }
 0x59b   : > { %v3862_v28 = vsel %vm3236_vm2, %v3854_v4, %v5580_v57  ;;  %v3861_v18 = vsel %vm3236_vm2, %v3853_v10, %v5579_v2  ;;  %v5593_v11 = vpop.permute.xlu0 %5592 }
 0x59c   : > { %v3870_v47 = vsel %vm3245_vm3, %v3862_v28, %v5585_v51  ;;  %v3869_v17 = vsel %vm3245_vm3, %v3861_v18, %v5584_v1  ;;  %v5588_v3 = vpop.permute.xlu1 %5587  ;;  %v5595_v12 = vunpack.i.h.bf16 %v5593_v11  ;;  %v5594_v19 = vunpack.i.l.bf16 %v5593_v11 }
 0x59d   : > { %v3877_v6 = vpack.c.bf16 %v3870_v47, %v3869_v17  ;;  %v5590_v14 = vunpack.i.h.bf16 %v5588_v3  ;;  %v5589_v54 = vunpack.i.l.bf16 %v5588_v3 }
 0x59f   : > { %v3823_v29 = vsel %vm2864_vm12, %v7634_v60, %v5589_v54  ;;  %v3824_v13 = vsel %vm2864_vm12, %v7657_v40, %v5590_v14  ;;  %4002 = vmatmul.mubr.bf16.vlgmr.msra.gmra.mrb[20].mxu0 %v3877_v6  ;;  %v5603_v41 = vpop.permute.xlu0 %5602 }
 0x5a0   : > { %v5598_v53 = vpop.permute.xlu1 %5597  ;;  %4487 = vmatprep.mubr.msk.bf16.mxu0 %vm2864_vm12, %v3880_v56  ;;  %v5605_v35 = vunpack.i.h.bf16 %v5603_v41  ;;  %v5604_v38 = vunpack.i.l.bf16 %v5603_v41  ;;  %v3831_v32 = vsel %vm3200_vm14, %v3823_v29, %v5594_v19  ;;  %v3832_v33 = vsel %vm3200_vm14, %v3824_v13, %v5595_v12 }
 0x5a1   : > { %v5600_v48 = vunpack.i.h.bf16 %v5598_v53  ;;  %v5599_v37 = vunpack.i.l.bf16 %v5598_v53  ;;  %v3596_v53 = vld [vmem:[#allocation3 + $0x92] sm:$0xff] }
 0x5a3   : > { %v3840_v60 = vsel %vm3209_vm15, %v3832_v33, %v5600_v48  ;;  %v3839_v40 = vsel %vm3209_vm15, %v3831_v32, %v5599_v37 }
 0x5a4   : > { %v5608_v15 = vpop.permute.xlu1 %5607  ;;  %v5613_v34 = vpop.permute.xlu0 %5612  ;;  %v3847_v44 = vsel %vm3218_vm0, %v3839_v40, %v5604_v38  ;;  %v3848_v42 = vsel %vm3218_vm0, %v3840_v60, %v5605_v35 }
 0x5a5   : > { %v5610_v5 = vunpack.i.h.bf16 %v5608_v15  ;;  %v5609_v62 = vunpack.i.l.bf16 %v5608_v15  ;;  %v5615_v56 = vunpack.i.h.bf16 %v5613_v34  ;;  %v5614_v23 = vunpack.i.l.bf16 %v5613_v34 }
 0x5a7   : > { %v3855_v58 = vsel %vm3227_vm1, %v3847_v44, %v5609_v62  ;;  %v3856_v63 = vsel %vm3227_vm1, %v3848_v42, %v5610_v5  ;;  %v3884_v5 = vpack.c.bf16 %v3596_v53, %v7728_v9 }
 0x5a8   : > { %v3864_v55 = vsel %vm3236_vm2, %v3856_v63, %v5615_v56  ;;  %v3863_v52 = vsel %vm3236_vm2, %v3855_v58, %v5614_v23  ;;  %v5618_v7 = vpop.permute.xlu1 %5617  ;;  %v5623_v31 = vpop.permute.xlu0 %5622 }
 0x5a9   : > { %v5620_v36 = vunpack.i.h.bf16 %v5618_v7  ;;  %v5619_v43 = vunpack.i.l.bf16 %v5618_v7  ;;  %v5625_v61 = vunpack.i.h.bf16 %v5623_v31  ;;  %v5624_v50 = vunpack.i.l.bf16 %v5623_v31 }
 0x5ab   : > { %v3871_v46 = vsel %vm3245_vm3, %v3863_v52, %v5619_v43  ;;  %v3872_v25 = vsel %vm3245_vm3, %v3864_v55, %v5620_v36  ;;  %v3825_v30 = vsel %vm2864_vm12, %v7670_v20, %v5624_v50  ;;  %v3826_v16 = vsel %vm2864_vm12, %v7681_v49, %v5625_v61 }
 0x5ac   : > { %v5628_v24 = vpop.permute.xlu1 %5627  ;;  %v3879_v51 = vpack.c.bf16 %v3872_v25, %v3871_v46  ;;  %v5633_v45 = vpop.permute.xlu0 %5632 }
 0x5ad   : > { %v5630_v1 = vunpack.i.h.bf16 %v5628_v24  ;;  %v5629_v39 = vunpack.i.l.bf16 %v5628_v24  ;;  %v5635_v26 = vunpack.i.h.bf16 %v5633_v45  ;;  %v5634_v57 = vunpack.i.l.bf16 %v5633_v45 }
 0x5ae   : > { %4010 = vmatmul.mubr.bf16.gmra.mrb[24].mxu0 %v3879_v51 }
 0x5af   : > { %v3833_v2 = vsel %vm3200_vm14, %v3825_v30, %v5629_v39  ;;  %v3834_v10 = vsel %vm3200_vm14, %v3826_v16, %v5630_v1  ;;  %4488 = vmatprep.mubr.msk.bf16.mxu0 %vm2864_vm12, %v3882_v22 }
 0x5b0   : > { %v3842_v20 = vsel %vm3209_vm15, %v3834_v10, %v5635_v26  ;;  %v3841_v49 = vsel %vm3209_vm15, %v3833_v2, %v5634_v57  ;;  %v5638_v4 = vpop.permute.xlu1 %5637  ;;  %v5643_v11 = vpop.permute.xlu0 %5642  ;;  %v7817_v2 = vld [vmem:[%s7977_s10] ss:$0 sm:$0xff] }
 0x5b1   : > { %v5640_v28 = vunpack.i.h.bf16 %v5638_v4  ;;  %v5639_v18 = vunpack.i.l.bf16 %v5638_v4  ;;  %v5645_v47 = vunpack.i.h.bf16 %v5643_v11  ;;  %v5644_v17 = vunpack.i.l.bf16 %v5643_v11 }
 0x5b3   : > { %v3849_v3 = vsel %vm3218_vm0, %v3841_v49, %v5639_v18  ;;  %v3850_v6 = vsel %vm3218_vm0, %v3842_v20, %v5640_v28  ;;  %v7822_v20 = vld [vmem:[%s7978_s11] ss:$0 sm:$0xff] }
 0x5b4   : > { %v3857_v14 = vsel %vm3227_vm1, %v3849_v3, %v5644_v17  ;;  %v3858_v59 = vsel %vm3227_vm1, %v3850_v6, %v5645_v47  ;;  %v5648_v27 = vpop.permute.xlu1 %5647  ;;  %v5653_v12 = vpop.permute.xlu0 %5652 }
 0x5b5   : > { %v5650_v22 = vunpack.i.h.bf16 %v5648_v27  ;;  %v5649_v54 = vunpack.i.l.bf16 %v5648_v27  ;;  %v5655_v19 = vunpack.i.h.bf16 %v5653_v12  ;;  %v5654_v29 = vunpack.i.l.bf16 %v5653_v12 }
 0x5b7   : > { %v3866_v13 = vsel %vm3236_vm2, %v3858_v59, %v5650_v22  ;;  %v3865_v41 = vsel %vm3236_vm2, %v3857_v14, %v5649_v54 }
 0x5b8   : > { %v5658_v48 = vpop.permute.xlu1 %5657  ;;  %v3873_v37 = vsel %vm3245_vm3, %v3865_v41, %v5654_v29  ;;  %v3874_v35 = vsel %vm3245_vm3, %v3866_v13, %v5655_v19  ;;  %v5663_v33 = vpop.permute.xlu0 %5662 }
 0x5b9   : > { %v5660_v38 = vunpack.i.h.bf16 %v5658_v48  ;;  %v5659_v32 = vunpack.i.l.bf16 %v5658_v48  ;;  %v3881_v60 = vpack.c.bf16 %v3874_v35, %v3873_v37  ;;  %v5665_v40 = vunpack.i.h.bf16 %v5663_v33 }
 0x5ba   : > { %v5664_v15 = vunpack.i.l.bf16 %v5663_v33 }
 0x5bb   : > { %v3827_v62 = vsel %vm2864_vm12, %v7695_v21, %v5659_v32  ;;  %v3828_v34 = vsel %vm2864_vm12, %v7712_v8, %v5660_v38  ;;  %4018 = vmatmul.mubr.bf16.gmra.mrb[28].mxu0 %v3881_v60 }
 0x5bc   : > { %v3835_v44 = vsel %vm3200_vm14, %v3827_v62, %v5664_v15  ;;  %v3836_v42 = vsel %vm3200_vm14, %v3828_v34, %v5665_v40  ;;  %v5668_v56 = vpop.permute.xlu1 %5667  ;;  %4489 = vmatprep.mubr.msk.bf16.mxu0 %vm2864_vm12, %v3884_v5  ;;  %v5673_v63 = vpop.permute.xlu0 %5672 }
 0x5bd   : > { %v5670_v23 = vunpack.i.h.bf16 %v5668_v56  ;;  %v5669_v58 = vunpack.i.l.bf16 %v5668_v56  ;;  %v5675_v55 = vunpack.i.h.bf16 %v5673_v63  ;;  %v5674_v52 = vunpack.i.l.bf16 %v5673_v63 }
 0x5bf   : > { %v3844_v9 = vsel %vm3209_vm15, %v3836_v42, %v5670_v23  ;;  %v3843_v21 = vsel %vm3209_vm15, %v3835_v44, %v5669_v58 }
 0x5c0   : > { %v3851_v7 = vsel %vm3218_vm0, %v3843_v21, %v5674_v52  ;;  %v3852_v8 = vsel %vm3218_vm0, %v3844_v9, %v5675_v55  ;;  %v5678_v36 = vpop.permute.xlu1 %5677  ;;  %v5683_v61 = vpop.permute.xlu0 %5682 }
 0x5c1   : > { %v5680_v43 = vunpack.i.h.bf16 %v5678_v36  ;;  %v5679_v31 = vunpack.i.l.bf16 %v5678_v36  ;;  %v5685_v50 = vunpack.i.h.bf16 %v5683_v61  ;;  %v5684_v46 = vunpack.i.l.bf16 %v5683_v61 }
 0x5c3   : > { %v3859_v25 = vsel %vm3227_vm1, %v3851_v7, %v5679_v31  ;;  %v3860_v30 = vsel %vm3227_vm1, %v3852_v8, %v5680_v43 }
 0x5c4   : > { %v3867_v16 = vsel %vm3236_vm2, %v3859_v25, %v5684_v46  ;;  %v3868_v24 = vsel %vm3236_vm2, %v3860_v30, %v5685_v50  ;;  %v5688_v51 = vpop.permute.xlu1 %5687 }
 0x5c5   : > { %v5690_v1 = vunpack.i.h.bf16 %v5688_v51  ;;  %v5689_v39 = vunpack.i.l.bf16 %v5688_v51 }
 0x5c7   : > { %v3875_v45 = vsel %vm3245_vm3, %v3867_v16, %v5689_v39  ;;  %v3876_v26 = vsel %vm3245_vm3, %v3868_v24, %v5690_v1 }
 0x5c8   : > { %v3883_v57 = vpack.c.bf16 %v3876_v26, %v3875_v45 }
 0x5ca   : > { %4026 = vmatmul.mubr.bf16.gmra.mrb[32].mxu0 %v3883_v57 }
 0x5cb   : > { %4633 = vmatprep.mubr.msk.bf16.mxu0 %vm6012_vm4, %v5994_v0 }
 0x672   : > { %v4003_v10 = vpop.f32.mrb[20].mxu0 }
 0x673   : > { %v4041_v49 = vmul.f32 %v7817_v2, %v4003_v10  ;;  %v4005_v4 = vpop.f32.mrb[21].mxu0 }
 0x674   : > { %v4006_v28 = vpop.f32.mrb[22].mxu0 }
 0x675   : > { %v4056_v18 = vadd.f32 %v7822_v20, %v4041_v49  ;;  %v4042_v11 = vmul.f32 %v7817_v2, %v4006_v28  ;;  %v4008_v47 = vpop.f32.mrb[23].mxu0 }
 0x677   : > { %v4064_v17 = vsub.f32 0.0, %v4056_v18  ;;  %v4057_v3 = vadd.f32 %v7822_v20, %v4042_v11 }
 0x679   : > { %v4072_v6 = vmul.f32 1.442695, %v4064_v17  ;;  %v4065_v14 = vsub.f32 0.0, %v4057_v3 }
 0x67b   : > { %5888 = vpow2.f32 %v4072_v6  ;;  %v4074_v59 = vmul.f32 1.442695, %v4065_v14 }
 0x67d   : > { %5890 = vpow2.f32 %v4074_v59 }
 0x681   : > { %v4011_v27 = vpop.f32.mrb[24].mxu0 }
 0x682   : > { %v4043_v22 = vmul.f32 %v7817_v2, %v4011_v27  ;;  %v4013_v54 = vpop.f32.mrb[25].mxu0 }
 0x683   : > { %v4014_v12 = vpop.f32.mrb[26].mxu0 }
 0x684   : > { %v4058_v19 = vadd.f32 %v7822_v20, %v4043_v22  ;;  %v4044_v29 = vmul.f32 %v7817_v2, %v4014_v12  ;;  %v4016_v13 = vpop.f32.mrb[27].mxu0 }
 0x685   : > { %v5889_v41 = vpop.eup %5888 }
 0x686   : > { %v4088_v53 = vadd.f32 1.0, %v5889_v41  ;;  %v4066_v48 = vsub.f32 0.0, %v4058_v19  ;;  %v4059_v37 = vadd.f32 %v7822_v20, %v4044_v29 }
 0x687   : > { %v5891_v35 = vpop.eup %5890 }
 0x688   : > { %5892 = vrcp.f32 %v4088_v53  ;;  %v4089_v38 = vadd.f32 1.0, %v5891_v35  ;;  %v4076_v32 = vmul.f32 1.442695, %v4066_v48  ;;  %v4067_v33 = vsub.f32 0.0, %v4059_v37  ;;  %v5723_v48 = vld [vmem:[%s7969_s2] sm:$0xff]   ;;  %v5725_v35 = vld [vmem:[%s7979_s12 + $0x8] sm:$0xff]  }
 0x68a   : > { %5894 = vrcp.f32 %v4089_v38  ;;  %v4078_v60 = vmul.f32 1.442695, %v4067_v33  ;;  %v5726_v38 = vld [vmem:[%s7979_s12 + $0x10] sm:$0xff]  }
 0x68b   : > { %5896 = vpow2.f32 %v4076_v32  ;;  %v5727_v32 = vld [vmem:[%s7979_s12 + $0x18] sm:$0xff]  }
 0x68c   : > { %5898 = vpow2.f32 %v4078_v60 }
 0x68e   : > { %v4019_v40 = vpop.f32.mrb[28].mxu0 }
 0x68f   : > { %v4045_v15 = vmul.f32 %v7817_v2, %v4019_v40  ;;  %v4021_v5 = vpop.f32.mrb[29].mxu0 }
 0x690   : > { %v4022_v62 = vpop.f32.mrb[30].mxu0 }
 0x691   : > { %v4060_v34 = vadd.f32 %v7822_v20, %v4045_v15  ;;  %v4046_v44 = vmul.f32 %v7817_v2, %v4022_v62  ;;  %v4024_v42 = vpop.f32.mrb[31].mxu0  ;;  %v4271_v62 = vld [vmem:[%s7981_s14] sm:$0xff] }
 0x692   : > { %v5893_v56 = vpop.eup %5892  ;;  %v4273_v42 = vld [vmem:[%s7981_s14 + $0x10] sm:$0xff] }
 0x693   : > { %v4068_v23 = vsub.f32 0.0, %v4060_v34  ;;  %v4061_v58 = vadd.f32 %v7822_v20, %v4046_v44  ;;  %v4104_v52 = vmul.f32 %v5893_v56, %v4056_v18  ;;  %v6013_v44 = vmov 0.0|0.0   ;;  %v4274_v56 = vld [vmem:[%s7981_s14 + $0x18] sm:$0xff] }
 0x694   : > { %v5895_v63 = vpop.eup %5894  ;;  %4684 = vmatprep.subr.bf16.mxu1 %v6013_v44 }
 0x695   : > { %v5897_v55 = vpop.eup %5896  ;;  %v4105_v9 = vmul.f32 %v5895_v63, %v4057_v3  ;;  %v4080_v21 = vmul.f32 1.442695, %v4068_v23  ;;  %v4069_v7 = vsub.f32 0.0, %v4061_v58  ;;  %v4688_v23 = vpack.c.bf16 %v4274_v56, %v4273_v42  ;;  %v4276_v63 = vld [vmem:[%s7981_s14 + $0x28] sm:$0xff] }
 0x696   : > { %v5899_v8 = vpop.eup %5898  ;;  %v4090_v36 = vadd.f32 1.0, %v5897_v55 }
 0x697   : > { %v4114_v43 = vpack.c.bf16 %v4105_v9, %v4104_v52  ;;  %v4091_v31 = vadd.f32 1.0, %v5899_v8  ;;  %5900 = vpow2.f32 %v4080_v21  ;;  %v4082_v61 = vmul.f32 1.442695, %v4069_v7  ;;  %v4277_v52 = vld [vmem:[%s7981_s14 + $0x30] sm:$0xff]  ;;  %v4278_v9 = vld [vmem:[%s7981_s14 + $0x38] sm:$0xff]  ;;  %v4279_v7 = vld [vmem:[%s7981_s14 + $0x40] sm:$0xff] }
 0x698   : > { %5902 = vrcp.f32 %v4090_v36  ;;  %v4694_v21 = vpack.c.bf16 %v4278_v9, %v4277_v52  ;;  %v4280_v8 = vld [vmem:[%s7981_s14 + $0x48] sm:$0xff] }
 0x699   : > { %5904 = vrcp.f32 %v4091_v31  ;;  %4626 = vmatpush3.bf16.msra.mxu0 %v4114_v43  ;;  %v4697_v36 = vpack.c.bf16 %v4280_v8, %v4279_v7  ;;  %v4281_v43 = vld [vmem:[%s7981_s14 + $0x50] sm:$0xff]  ;;  %v4282_v31 = vld [vmem:[%s7981_s14 + $0x58] sm:$0xff] }
 0x69a   : > { %5906 = vpow2.f32 %v4082_v61  ;;  %4627 = vmatprep.subr.bf16.mxu0 %v5994_v0  ;;  %v4700_v61 = vpack.c.bf16 %v4282_v31, %v4281_v43 }
 0x69d   : > { %v4027_v50 = vpop.f32.mrb[32].mxu0 }
 0x69e   : > { %v4047_v46 = vmul.f32 %v7817_v2, %v4027_v50  ;;  %v4029_v25 = vpop.f32.mrb[33].mxu0  ;;  %v4283_v50 = vld [vmem:[%s7981_s14 + $0x60] sm:$0xff] }
 0x69f   : > { %v4030_v30 = vpop.f32.mrb[34].mxu0 }
 0x6a0   : > { %v4062_v16 = vadd.f32 %v7822_v20, %v4047_v46  ;;  %v4048_v24 = vmul.f32 %v7817_v2, %v4030_v30  ;;  %v4032_v51 = vpop.f32.mrb[35].mxu0  ;;  %v4284_v46 = vld [vmem:[%s7981_s14 + $0x68] sm:$0xff]  ;;  %v4285_v30 = vld [vmem:[%s7981_s14 + $0x70] sm:$0xff] }
 0x6a1   : > { %v5901_v1 = vpop.eup %5900  ;;  %v4703_v25 = vpack.c.bf16 %v4284_v46, %v4283_v50  ;;  %v4494_v51 = vld [vmem:[%s7980_s13] ss:$0 sm:$0xff] }
 0x6a2   : > { %v5903_v39 = vpop.eup %5902  ;;  %v4092_v45 = vadd.f32 1.0, %v5901_v1  ;;  %v4070_v26 = vsub.f32 0.0, %v4062_v16  ;;  %v4063_v57 = vadd.f32 %v7822_v20, %v4048_v24 }
 0x6a3   : > { %v5905_v10 = vpop.eup %5904  ;;  %v4106_v4 = vmul.f32 %v5903_v39, %v4058_v19 }
 0x6a4   : > { %v5907_v49 = vpop.eup %5906  ;;  %v4107_v28 = vmul.f32 %v5905_v10, %v4059_v37  ;;  %v4084_v18 = vmul.f32 1.442695, %v4070_v26  ;;  %v4071_v11 = vsub.f32 0.0, %v4063_v57  ;;  %5908 = vrcp.f32 %v4092_v45  ;;  %v5724_v37 = vld [vmem:[%s7979_s12] sm:$0xff]  }
 0x6a5   : > { %v4093_v47 = vadd.f32 1.0, %v5907_v49 }
 0x6a6   : > { %v4115_v17 = vpack.c.bf16 %v4107_v28, %v4106_v4  ;;  %5910 = vpow2.f32 %v4084_v18  ;;  %v4086_v3 = vmul.f32 1.442695, %v4071_v11 }
 0x6a7   : > { %5912 = vrcp.f32 %v4093_v47 }
 0x6a8   : > { %5914 = vpow2.f32 %v4086_v3  ;;  %4628 = vmatpush3.bf16.msra.mxu0 %v4115_v17 }
 0x6a9   : > { %4629 = vmatprep.subr.bf16.mxu0 %v5994_v0 }
 0x6ae   : > { %v5909_v2 = vpop.eup %5908 }
 0x6af   : > { %v4108_v27 = vmul.f32 %v5909_v2, %v4060_v34 }
 0x6b0   : > { %v5911_v6 = vpop.eup %5910 }
 0x6b1   : > { %v5913_v14 = vpop.eup %5912  ;;  %v4094_v20 = vadd.f32 1.0, %v5911_v6 }
 0x6b2   : > { %v5915_v59 = vpop.eup %5914  ;;  %v4109_v22 = vmul.f32 %v5913_v14, %v4061_v58  ;;  %v4275_v58 = vld [vmem:[%s7981_s14 + $0x20] sm:$0xff] }
 0x6b3   : > { %5916 = vrcp.f32 %v4094_v20  ;;  %v4095_v54 = vadd.f32 1.0, %v5915_v59  ;;  %v4691_v55 = vpack.c.bf16 %v4276_v63, %v4275_v58 }
 0x6b4   : > { %v4116_v12 = vpack.c.bf16 %v4109_v22, %v4108_v27 }
 0x6b5   : > { %5918 = vrcp.f32 %v4095_v54 }
 0x6b6   : > { %4630 = vmatpush3.bf16.msra.mxu0 %v4116_v12 }
 0x6b7   : > { %4631 = vmatprep.subr.bf16.mxu0 %v5994_v0 }
 0x6bd   : > { %v5917_v19 = vpop.eup %5916 }
 0x6be   : > { %v4110_v13 = vmul.f32 %v5917_v19, %v4062_v16  ;;  %v4286_v16 = vld [vmem:[%s7981_s14 + $0x78] sm:$0xff] }
 0x6bf   : > { %v5919_v29 = vpop.eup %5918  ;;  %v4706_v24 = vpack.c.bf16 %v4286_v16, %v4285_v30 }
 0x6c0   : > { %v4111_v41 = vmul.f32 %v5919_v29, %v4063_v57 }
 0x6c2   : > { %v4117_v53 = vpack.c.bf16 %v4111_v41, %v4110_v13  ;;  %v4287_v41 = vld [vmem:[%s7982_s15] sm:$0x1] }
 0x6c4   : > { %4632 = vmatpush3.bf16.msra.mxu0 %v4117_v53 }
 0x6c5   : > { %4637 = vmatprep.subr.bf16.mxu0 %v5994_v0 }
 0x6c7   : > { %4634 = vmatmul.mubr.msk.bf16.vlgmr.msra.gmra.mrb[36].mxu0 %vm3218_vm0, %v5723_v48 }
 0x6c8   : > { %4638 = vmatpush3.bf16.msra.mxu0 %v5724_v37  ;;  %4645 = vmatprep.mubr.msk.bf16.mxu0 %vm6012_vm4, %v5994_v0 }
 0x6c9   : > { %4639 = vmatprep.subr.bf16.mxu0 %v5994_v0 }
 0x6cc   : > { %4640 = vmatpush3.bf16.msra.mxu0 %v5725_v35 }
 0x6cd   : > { %4641 = vmatprep.subr.bf16.mxu0 %v5994_v0 }
 0x6d0   : > { %4642 = vmatpush3.bf16.msra.mxu0 %v5726_v38 }
 0x6d1   : > { %4643 = vmatprep.subr.bf16.mxu0 %v5994_v0  ;;  %v4272_v0 = vld [vmem:[%s7981_s14 + $0x8] sm:$0xff] }
 0x6d2   : > { %v4685_v34 = vpack.c.bf16 %v4272_v0, %v4271_v62 }
 0x6d4   : > { %4644 = vmatpush3.bf16.msra.mxu0 %v5727_v32  ;;  %4686 = vmatpush3.bf16.msra.mxu1 %v4685_v34 }
 0x6d5   : > { %4687 = vmatprep.subr.bf16.mxu1 %v6013_v44 }
 0x6d8   : > { %4689 = vmatpush3.bf16.msra.mxu1 %v4688_v23 }
 0x6d9   : > { %4690 = vmatprep.subr.bf16.mxu1 %v6013_v44 }
 0x6dc   : > { %4692 = vmatpush3.bf16.msra.mxu1 %v4691_v55 }
 0x6dd   : > { %4693 = vmatprep.subr.bf16.mxu1 %v6013_v44 }
 0x6e0   : > { %4695 = vmatpush3.bf16.msra.mxu1 %v4694_v21 }
 0x6e1   : > { %4696 = vmatprep.subr.bf16.mxu1 %v6013_v44 }
 0x6e4   : > { %4698 = vmatpush3.bf16.msra.mxu1 %v4697_v36 }
 0x6e5   : > { %4699 = vmatprep.subr.bf16.mxu1 %v6013_v44 }
 0x6e8   : > { %4701 = vmatpush3.bf16.msra.mxu1 %v4700_v61 }
 0x6e9   : > { %4702 = vmatprep.subr.bf16.mxu1 %v6013_v44 }
 0x6ec   : > { %4704 = vmatpush3.bf16.msra.mxu1 %v4703_v25 }
 0x6ed   : > { %4705 = vmatprep.subr.bf16.mxu1 %v6013_v44 }
 0x6f0   : > { %4707 = vmatpush3.bf16.msra.mxu1 %v4706_v24 }
 0x79a   : > { %v4160_v33 = vpop.f32.mrb[36].mxu0 }
 0x79b   : > { %v4635_v60 = vpop.f32.mrb[37].mxu0 }
 0x79c   : > { %v4163_v40 = vpop.f32.mrb[38].mxu0 }
 0x79d   : > { %v4167_v15 = vpack.c.bf16 %v4163_v40, %v4160_v33  ;;  %v4636_v5 = vpop.f32.mrb[39].mxu0 }
 0x79f   : > { %4646 = vmatmul.mubr.msk.bf16.vlgmr.msra.gmra.mrb[40].mxu0 %vm3218_vm0, %v4167_v15 }
 0x872   : > { %v4244_v1 = vpop.f32.mrb[40].mxu0 }
 0x873   : > { %v4245_v39 = vadd.f32 %v4494_v51, %v4244_v1  ;;  %v4647_v45 = vpop.f32.mrb[41].mxu0 }
 0x874   : > { %v4247_v26 = vpop.f32.mrb[42].mxu0 }
 0x875   : > { %v4251_v57 = vsub.f32 0.0, %v4245_v39  ;;  %v4248_v10 = vadd.f32 %v4494_v51, %v4247_v26  ;;  %v4648_v49 = vpop.f32.mrb[43].mxu0 }
 0x877   : > { %v4253_v4 = vmul.f32 1.442695, %v4251_v57  ;;  %v4252_v28 = vsub.f32 0.0, %v4248_v10 }
 0x879   : > { %5920 = vpow2.f32 %v4253_v4  ;;  %v4255_v18 = vmul.f32 1.442695, %v4252_v28 }
 0x87b   : > { %5922 = vpow2.f32 %v4255_v18 }
 0x883   : > { %v5921_v11 = vpop.eup %5920 }
 0x884   : > { %v4257_v47 = vadd.f32 1.0, %v5921_v11 }
 0x885   : > { %v5923_v17 = vpop.eup %5922 }
 0x886   : > { %5924 = vrcp.f32 %v4257_v47  ;;  %v4258_v3 = vadd.f32 1.0, %v5923_v17 }
 0x888   : > { %5926 = vrcp.f32 %v4258_v3 }
 0x890   : > { %v5925_v2 = vpop.eup %5924 }
 0x891   : > { %v4261_v14 = vmul.f32 %v5925_v2, %v4245_v39 }
 0x892   : > { %v5927_v6 = vpop.eup %5926 }
 0x893   : > { %v4262_v20 = vmul.f32 %v5927_v6, %v4248_v10 }
 0x895   : > { %v4263_v59 = vadd.f32 %v4262_v20, %v4261_v14 }
 0x897   : > { %v4264_v27 = vrot.slane %v4263_v59, 4 }
 0x899   : > { %v4265_v22 = vadd.f32 %v4264_v27, %v4263_v59 }
 0x89b   : > { %v4266_v54 = vrot.slane %v4265_v22, 2 }
 0x89d   : > { %v4267_v12 = vadd.f32 %v4266_v54, %v4265_v22 }
 0x89f   : > { %v4268_v19 = vrot.slane %v4267_v12, 1 }
 0x8a1   : > { %v4269_v29 = vadd.f32 %v4268_v19, %v4267_v12 }
 0x8a3   : > { %v4270_v13 = vmul.f32 0.0625, %v4269_v29 }
 0x8a5   : > { %4682 = vmatmul.mubr.f32.vlgmr.msra.gmra.mrb[44].mxu1 %v4270_v13 }
 0x978   : > { %v4354_v53 = vpop.f32.mrb[44].mxu1 }
 0x979   : > { %v4355_v48 = vadd.f32 %v4354_v53, %v4287_v41  ;;  %v4683_v37 = vpop.f32.mrb[45].mxu1 }
 0x97b   : > { %4359 = vst.msk [vmem:[%s513_s18] sm:$0x1] %vm4358_vm5, %v4355_v48 }
 0x97c   : > { %5943 = shalt.err (!%p5940_p3)
}
 0x97d   : > { %s5944_s20 = scalar_lea.hbm %s7925_s3, 16  ;;  %s5948_s23 = scalar_lea.hbm %s7983_s16, 32 }
 0x97e   : > { %p5945_p4 = scmp.ne.s32.totalorder %s7925_s3, %s5944_s20  ;;  %p5949_p9 = scmp.lt.u32.totalorder %s7925_s3, %s7983_s16 }
 0x97f   : > { %p5950_p10 = scmp.lt.u32.totalorder %s5948_s23, %s5944_s20  ;;  %p5952_p12 = scmp.lt.u32.totalorder %s5944_s20, %s7925_s3 }
 0x980   : > { %p5946_p7 = pnand %p5945_p4, %p6138_p5 }
 0x981   : > { %p5951_p11 = por %p5950_p10, %p5949_p9 }
 0x982   : > { %p5947_p8 = pneg %p5946_p7 }
 0x983   : > { %p5953_p13 = por %p5952_p12, %p5951_p11 }
 0x985   : > { %p5954_p0 = pnand %p5953_p13, %p5947_p8 }
 0x987   : > { %5957 = shalt.err (!%p5954_p0)
}
 0x988   : > { %4712 = dma.vmem_to_hbm [thread:$0]  (%p6138_p5), %s7927_s4, 16, %s7925_s3, %s4361_s30  }
 0x989 PF: > { %p4718_p1 = scmp.ge.s32.totalorder %s5992_s24, 2  ;;  %s4385_s1 = sand.u32 1, %s5980_s21  }
 0x98a   : > { %s4386_s29 = scalar_lea.sflag [#allocation5], %s4385_s1 }
 0x98b   : > { %p4715_p2 = pnand %p4718_p1, %p6142_p6 }
 0x98d   : > { %5975 = dma.done.wait (!%p4715_p2), %s4386_s29, 16  }
 0x98e   : > { %5977 = vsyncadd (!%p4715_p2), %s4386_s29, 4294967280  ;;  %s8036_s19 = sld [smem:[#allocation7_spill]]  ;;  %s8037_s23 = sld [smem:[#allocation8_spill]] }
 0x98f   : > { %p26_p3 = scmp.ge.s32.totalorder %s6125_s27, 4   ;;  %s8038_s21 = smov %s5984_s22 }
 0x990   : > { %s8040_s24 = smov %s6125_s27 }
 0x991   :  { %28 = sbr.rel (!%p26_p3) target bundleno = 8 (0x8), region = 123 }
 0x994   : > { %s8039_s22 = smov %s8036_s19 }
 0x998   :  { %4390 = vsyncpa [#allocation5], 1 }
 0x999   :  { %4392 = vsyncpa [#allocation5 + $0x1], 1 }

</bundles_post_ra>
